<compile_context>
chip_gen: v5e
topology: v5e:2x2
jax: 0.10.0
libtpu: 0.0.40
codegen_flags: <defaults>
</compile_context>

<pallas_src>
import functools

import jax
import jax.numpy as jnp
from jax import lax
from jax.experimental import pallas as pl
from jax.experimental.pallas import tpu as pltpu


# ----------------------------------------------------------------------------
# Conv2d kernel: per-image im2col patch assembled in VMEM scratch, ONE MXU matmul
# (K = k*k*Cin), bias add, optional fused per-image BN partial statistics.
# Grid = (N,), all axes "parallel" (partial stats are reduced outside).
# ----------------------------------------------------------------------------
def _conv_bn_kernel(x_ref, w_ref, b_ref, *refs, k, d, s, Ho, Wo, Cin, with_stats):
    if with_stats:
        y_ref, ssum_ref, ssq_ref, patch_ref = refs
    else:
        y_ref, patch_ref = refs

    M = Ho * Wo

    # --- Assemble the (M, k*k*Cin) patch in VMEM (single relayout pass). ---------------
    # Column block t*Cin:(t+1)*Cin of the patch is tap t = (kh, kw), matching the
    # (k*k*Cin, Cout_pad) weight row order built in the wrapper.
    for kh in range(k):
        for kw in range(k):
            t = kh * k + kw
            if s == 1:
                tap = x_ref[pl.ds(kh * d, Ho), pl.ds(kw * d, Wo), :]
            else:
                # In-kernel strided taps: no stride-1 over-compute, no JAX subsampling.
                tap = x_ref[pl.ds(kh * d, Ho, stride=s), pl.ds(kw * d, Wo, stride=s), :]
            patch_ref[:, pl.ds(t * Cin, Cin)] = tap.reshape(M, Cin)

    # --- One bf16 MXU matmul with f32 accumulation, then bias. --------------------------
    acc = jnp.dot(patch_ref[...], w_ref[...], preferred_element_type=jnp.float32)
    acc = acc + b_ref[...]                       # (1, Cout_pad) broadcast

    y_q = acc.astype(y_ref.dtype)
    y_ref[...] = y_q                             # lane-dense store (Cout_pad % 128 == 0)

    if with_stats:
        # Partial BN statistics for THIS image, from the values actually stored
        # (bf16-rounded), so normalization is consistent with the data it is applied to.
        yf = y_q.astype(jnp.float32)
        ssum_ref[...] = jnp.sum(yf, axis=0, keepdims=True)
        ssq_ref[...] = jnp.sum(yf * yf, axis=0, keepdims=True)


def conv2d_pallas(x_nhwc, w_mat, bias_row, *, k, d, s, Ho, Wo, with_stats, out_dtype):
    """x_nhwc: (N, Hp, Wp, Cin) bf16 (spatially padded); w_mat: (k*k*Cin, Cout_pad) bf16;
    bias_row: (1, Cout_pad) f32."""
    N, Hp, Wp, Cin = x_nhwc.shape
    KK, Cp = w_mat.shape
    M = Ho * Wo

    kern = functools.partial(_conv_bn_kernel, k=k, d=d, s=s, Ho=Ho, Wo=Wo, Cin=Cin,
                             with_stats=with_stats)

    in_specs = [
        pl.BlockSpec((None, Hp, Wp, Cin), lambda n: (n, 0, 0, 0)),  # one image per step
        pl.BlockSpec((KK, Cp), lambda n: (0, 0)),                   # weights resident
        pl.BlockSpec((1, Cp), lambda n: (0, 0)),                    # bias resident
    ]
    y_shape = jax.ShapeDtypeStruct((N, M, Cp), out_dtype)
    y_spec = pl.BlockSpec((None, M, Cp), lambda n: (n, 0, 0))

    if with_stats:
        out_shape = (y_shape,
                     jax.ShapeDtypeStruct((N, 1, Cp), jnp.float32),   # per-image sum
                     jax.ShapeDtypeStruct((N, 1, Cp), jnp.float32))   # per-image sumsq
        out_specs = (y_spec,
                     pl.BlockSpec((None, 1, Cp), lambda n: (n, 0, 0)),
                     pl.BlockSpec((None, 1, Cp), lambda n: (n, 0, 0)))
    else:
        out_shape = y_shape
        out_specs = y_spec

    return pl.pallas_call(
        kern,
        out_shape=out_shape,
        grid=(N,),
        in_specs=in_specs,
        out_specs=out_specs,
        scratch_shapes=[pltpu.VMEM((M, KK), jnp.bfloat16)],   # im2col patch scratch
        compiler_params=pltpu.CompilerParams(dimension_semantics=("parallel",)),
    )(x_nhwc, w_mat, bias_row)


# ----------------------------------------------------------------------------
# BN normalization kernel: lane-dense per-channel affine on (N*Ho*Wo, Cout_pad),
# blocked in >=512-row tiles (grid scales with the tensor, both axes writable in parallel).
# ----------------------------------------------------------------------------
def _affine_kernel(y_ref, s_ref, b_ref, o_ref):
    o_ref[...] = y_ref[...].astype(jnp.float32) * s_ref[...] + b_ref[...]


def affine_pallas(y2, scale_row, shift_row, *, block_rows=512):
    """y2: (R, Cout_pad) bf16; scale_row/shift_row: (1, Cout_pad) f32."""
    R, Cp = y2.shape
    tr = min(block_rows, R)
    return pl.pallas_call(
        _affine_kernel,
        out_shape=jax.ShapeDtypeStruct((R, Cp), jnp.float32),
        grid=(pl.cdiv(R, tr),),
        in_specs=[pl.BlockSpec((tr, Cp), lambda i: (i, 0)),
                  pl.BlockSpec((1, Cp), lambda i: (0, 0)),
                  pl.BlockSpec((1, Cp), lambda i: (0, 0))],
        out_specs=pl.BlockSpec((tr, Cp), lambda i: (i, 0)),
        compiler_params=pltpu.CompilerParams(dimension_semantics=("parallel",)),
    )(y2, scale_row, shift_row)


# ----------------------------------------------------------------------------
# conv2DBatchNorm forward (training mode: BN uses batch statistics).
# ----------------------------------------------------------------------------
def conv2d_batchnorm_forward(params, x_nchw, *, k_size, stride, padding,
                             dilation=1, bias=True, with_bn=True, eps=1e-5):
    w = params["w"]                                   # (Cout, Cin, k, k) f32, PyTorch OIHW
    N, Cin, H, W = x_nchw.shape
    Cout = int(w.shape[0])
    k, s, p, d = int(k_size), int(stride), int(padding), int(dilation)

    Hp, Wp = H + 2 * p, W + 2 * p
    Ho = (Hp - d * (k - 1) - 1) // s + 1
    Wo = (Wp - d * (k - 1) - 1) // s + 1
    M = Ho * Wo
    Cp = ((Cout + 127) // 128) * 128                  # lane-dense padded channel count

    # NCHW -> NHWC, zero-pad spatially, cast to bf16 for the MXU.
    x = jnp.transpose(x_nchw, (0, 2, 3, 1)).astype(jnp.float32)
    if p > 0:
        x = jnp.pad(x, ((0, 0), (p, p), (p, p), (0, 0)))
    x = x.astype(jnp.bfloat16)

    # OIHW -> (k*k*Cin, Cout_pad): row index = (kh*k + kw)*Cin + cin; Cout zero-padded.
    w_mat = jnp.transpose(w, (2, 3, 1, 0)).reshape(k * k * Cin, Cout)
    w_mat = jnp.pad(w_mat, ((0, 0), (0, Cp - Cout))).astype(jnp.bfloat16)

    bvec = params["b"] if (bias and "b" in params) else jnp.zeros((Cout,), jnp.float32)
    bias_row = jnp.pad(bvec.astype(jnp.float32), (0, Cp - Cout)).reshape(1, Cp)

    y_dtype = jnp.bfloat16 if with_bn else jnp.float32   # bf16 intermediate when BN follows
    outs = conv2d_pallas(x, w_mat, bias_row, k=k, d=d, s=s, Ho=Ho, Wo=Wo,
                         with_stats=with_bn, out_dtype=y_dtype)

    if not with_bn:
        y = outs.reshape(N, Ho, Wo, Cp)[..., :Cout]
        return jnp.transpose(y, (0, 3, 1, 2))             # NCHW

    y, ssum, ssq = outs                                    # y: (N, M, Cp) bf16

    # Combine the per-image partial statistics (tiny per-channel vectors, plain JAX).
    cnt = jnp.float32(N * M)
    ssum_t = jnp.sum(ssum, axis=0)                         # (1, Cp)
    ssq_t = jnp.sum(ssq, axis=0)                           # (1, Cp)
    mean = ssum_t / cnt
    var = jnp.maximum(ssq_t / cnt - mean * mean, 0.0)
    inv = lax.rsqrt(var + eps)
    gamma = jnp.pad(params["gamma"].astype(jnp.float32), (0, Cp - Cout), constant_values=1.0)
    beta = jnp.pad(params["beta"].astype(jnp.float32), (0, Cp - Cout))
    scale = gamma.reshape(1, Cp) * inv
    shift = beta.reshape(1, Cp) - mean * scale

    # Lane-dense normalize on the flattened (N*Ho*Wo, Cout_pad) layout (free reshape).
    out2 = affine_pallas(y.reshape(N * M, Cp), scale, shift)   # f32 module output dtype
    out = out2.reshape(N, Ho, Wo, Cp)[..., :Cout]              # drop channel padding once
    return jnp.transpose(out, (0, 3, 1, 2))                    # back to NCHW


if __name__ == "__main__":
    key = jax.random.PRNGKey(0)
    k_w, k_b, k_g, k_be, k_x = jax.random.split(key, 5)

    # Small shapes consistent with the module.
    N, Cin, H, W = 2, 4, 16, 16
    Cout, k_size, stride, padding, dilation = 32, 3, 1, 1, 1
    eps = 1e-5

    params = {
        "w": jax.random.normal(k_w, (Cout, Cin, k_size, k_size), jnp.float32)
             / float((k_size * k_size * Cin) ** 0.5),
        "b": 0.1 * jax.random.normal(k_b, (Cout,), jnp.float32),
        "gamma": 1.0 + 0.2 * jax.random.normal(k_g, (Cout,), jnp.float32),
        "beta": 0.1 * jax.random.normal(k_be, (Cout,), jnp.float32),
    }
    x = jax.random.normal(k_x, (N, Cin, H, W), jnp.float32)

    fwd = jax.jit(functools.partial(
        conv2d_batchnorm_forward, k_size=k_size, stride=stride, padding=padding,
        dilation=dilation, bias=True, with_bn=True, eps=eps))
    out = fwd(params, x)
    jax.block_until_ready(out)

    # Reference (plain XLA) using the same bf16 quantization of x and w.
    xq = x.astype(jnp.bfloat16).astype(jnp.float32)
    wq = params["w"].astype(jnp.bfloat16).astype(jnp.float32)
    ref = lax.conv_general_dilated(
        xq, wq, window_strides=(stride, stride),
        padding=[(padding, padding), (padding, padding)],
        rhs_dilation=(dilation, dilation),
        dimension_numbers=("NCHW", "OIHW", "NCHW"))
    ref = ref + params["b"].reshape(1, Cout, 1, 1)
    mean = jnp.mean(ref, axis=(0, 2, 3), keepdims=True)
    var = jnp.mean(jnp.square(ref - mean), axis=(0, 2, 3), keepdims=True)
    ref = (params["gamma"].reshape(1, Cout, 1, 1) * (ref - mean) * lax.rsqrt(var + eps)
           + params["beta"].reshape(1, Cout, 1, 1))

    Ho = (H + 2 * padding - dilation * (k_size - 1) - 1) // stride + 1
    Wo = (W + 2 * padding - dilation * (k_size - 1) - 1) // stride + 1
    assert out.shape == (N, Cout, Ho, Wo), out.shape
    assert bool(jnp.all(jnp.isfinite(out)))
    max_err = float(jnp.max(jnp.abs(out - ref)))
    assert max_err < 0.1, max_err   # bf16 matmul / bf16 intermediate tolerance
    print("KERNEL_OK")
</pallas_src>

<mosaic_0001>
module attributes {stable_mosaic.version = 11 : i64} {
  func.func @_conv_bn_kernel(%arg0: i32, %arg1: memref<1x18x18x4xbf16, #tpu.memory_space<vmem>>, %arg2: memref<36x128xbf16, #tpu.memory_space<vmem>>, %arg3: memref<1x128xf32, #tpu.memory_space<vmem>>, %arg4: memref<1x256x128xbf16, #tpu.memory_space<vmem>>, %arg5: memref<1x1x128xf32, #tpu.memory_space<vmem>>, %arg6: memref<1x1x128xf32, #tpu.memory_space<vmem>>, %arg7: memref<256x36xbf16, #tpu.memory_space<vmem>>) attributes {dimension_semantics = [#tpu.dimension_semantics<parallel>], iteration_bounds = array<i64: 2>, scalar_prefetch = 0 : i64, scratch_operands = 1 : i64, tpu.core_type = #tpu.core_type<tc>, window_params = [{transform_indices = @transform_0, window_bounds = array<i64: 1, 18, 18, 4>}, {pipeline_mode = #tpu.pipeline_mode<synchronous>, transform_indices = @transform_1, window_bounds = array<i64: 36, 128>}, {pipeline_mode = #tpu.pipeline_mode<synchronous>, transform_indices = @transform_2, window_bounds = array<i64: 1, 128>}, {transform_indices = @transform_3, window_bounds = array<i64: 1, 256, 128>}, {transform_indices = @transform_4, window_bounds = array<i64: 1, 1, 128>}, {transform_indices = @transform_5, window_bounds = array<i64: 1, 1, 128>}]} {
    %c0 = arith.constant 0 : index
    %c0_0 = arith.constant 0 : index
    %c0_1 = arith.constant 0 : index
    %c0_2 = arith.constant 0 : index
    %0 = vector.load %arg1[%c0, %c0_0, %c0_1, %c0_2] : memref<1x18x18x4xbf16, #tpu.memory_space<vmem>>, vector<1x16x16x4xbf16>
    %1 = vector.shape_cast %0 : vector<1x16x16x4xbf16> to vector<16x16x4xbf16>
    %2 = vector.shape_cast %1 : vector<16x16x4xbf16> to vector<256x4xbf16>
    %c0_3 = arith.constant 0 : index
    %c0_4 = arith.constant 0 : index
    %3 = vector.load %arg7[%c0_3, %c0_4] : memref<256x36xbf16, #tpu.memory_space<vmem>>, vector<256x4xbf16>
    tpu.vector_store %arg7[%c0_3, %c0_4], %2 {strides = array<i32>} : memref<256x36xbf16, #tpu.memory_space<vmem>>, vector<256x4xbf16>,
    %c0_5 = arith.constant 0 : index
    %c0_6 = arith.constant 0 : index
    %c1 = arith.constant 1 : index
    %c0_7 = arith.constant 0 : index
    %4 = vector.load %arg1[%c0_5, %c0_6, %c1, %c0_7] : memref<1x18x18x4xbf16, #tpu.memory_space<vmem>>, vector<1x16x16x4xbf16>
    %5 = vector.shape_cast %4 : vector<1x16x16x4xbf16> to vector<16x16x4xbf16>
    %6 = vector.shape_cast %5 : vector<16x16x4xbf16> to vector<256x4xbf16>
    %c0_8 = arith.constant 0 : index
    %c4 = arith.constant 4 : index
    %7 = vector.load %arg7[%c0_8, %c4] : memref<256x36xbf16, #tpu.memory_space<vmem>>, vector<256x4xbf16>
    tpu.vector_store %arg7[%c0_8, %c4], %6 {strides = array<i32>} : memref<256x36xbf16, #tpu.memory_space<vmem>>, vector<256x4xbf16>,
    %c0_9 = arith.constant 0 : index
    %c0_10 = arith.constant 0 : index
    %c2 = arith.constant 2 : index
    %c0_11 = arith.constant 0 : index
    %8 = vector.load %arg1[%c0_9, %c0_10, %c2, %c0_11] : memref<1x18x18x4xbf16, #tpu.memory_space<vmem>>, vector<1x16x16x4xbf16>
    %9 = vector.shape_cast %8 : vector<1x16x16x4xbf16> to vector<16x16x4xbf16>
    %10 = vector.shape_cast %9 : vector<16x16x4xbf16> to vector<256x4xbf16>
    %c0_12 = arith.constant 0 : index
    %c8 = arith.constant 8 : index
    %11 = vector.load %arg7[%c0_12, %c8] : memref<256x36xbf16, #tpu.memory_space<vmem>>, vector<256x4xbf16>
    tpu.vector_store %arg7[%c0_12, %c8], %10 {strides = array<i32>} : memref<256x36xbf16, #tpu.memory_space<vmem>>, vector<256x4xbf16>,
    %c0_13 = arith.constant 0 : index
    %c1_14 = arith.constant 1 : index
    %c0_15 = arith.constant 0 : index
    %c0_16 = arith.constant 0 : index
    %12 = vector.load %arg1[%c0_13, %c1_14, %c0_15, %c0_16] : memref<1x18x18x4xbf16, #tpu.memory_space<vmem>>, vector<1x16x16x4xbf16>
    %13 = vector.shape_cast %12 : vector<1x16x16x4xbf16> to vector<16x16x4xbf16>
    %14 = vector.shape_cast %13 : vector<16x16x4xbf16> to vector<256x4xbf16>
    %c0_17 = arith.constant 0 : index
    %c12 = arith.constant 12 : index
    %15 = vector.load %arg7[%c0_17, %c12] : memref<256x36xbf16, #tpu.memory_space<vmem>>, vector<256x4xbf16>
    tpu.vector_store %arg7[%c0_17, %c12], %14 {strides = array<i32>} : memref<256x36xbf16, #tpu.memory_space<vmem>>, vector<256x4xbf16>,
    %c0_18 = arith.constant 0 : index
    %c1_19 = arith.constant 1 : index
    %c1_20 = arith.constant 1 : index
    %c0_21 = arith.constant 0 : index
    %16 = vector.load %arg1[%c0_18, %c1_19, %c1_20, %c0_21] : memref<1x18x18x4xbf16, #tpu.memory_space<vmem>>, vector<1x16x16x4xbf16>
    %17 = vector.shape_cast %16 : vector<1x16x16x4xbf16> to vector<16x16x4xbf16>
    %18 = vector.shape_cast %17 : vector<16x16x4xbf16> to vector<256x4xbf16>
    %c0_22 = arith.constant 0 : index
    %c16 = arith.constant 16 : index
    %19 = vector.load %arg7[%c0_22, %c16] : memref<256x36xbf16, #tpu.memory_space<vmem>>, vector<256x4xbf16>
    tpu.vector_store %arg7[%c0_22, %c16], %18 {strides = array<i32>} : memref<256x36xbf16, #tpu.memory_space<vmem>>, vector<256x4xbf16>,
    %c0_23 = arith.constant 0 : index
    %c1_24 = arith.constant 1 : index
    %c2_25 = arith.constant 2 : index
    %c0_26 = arith.constant 0 : index
    %20 = vector.load %arg1[%c0_23, %c1_24, %c2_25, %c0_26] : memref<1x18x18x4xbf16, #tpu.memory_space<vmem>>, vector<1x16x16x4xbf16>
    %21 = vector.shape_cast %20 : vector<1x16x16x4xbf16> to vector<16x16x4xbf16>
    %22 = vector.shape_cast %21 : vector<16x16x4xbf16> to vector<256x4xbf16>
    %c0_27 = arith.constant 0 : index
    %c20 = arith.constant 20 : index
    %23 = vector.load %arg7[%c0_27, %c20] : memref<256x36xbf16, #tpu.memory_space<vmem>>, vector<256x4xbf16>
    tpu.vector_store %arg7[%c0_27, %c20], %22 {strides = array<i32>} : memref<256x36xbf16, #tpu.memory_space<vmem>>, vector<256x4xbf16>,
    %c0_28 = arith.constant 0 : index
    %c2_29 = arith.constant 2 : index
    %c0_30 = arith.constant 0 : index
    %c0_31 = arith.constant 0 : index
    %24 = vector.load %arg1[%c0_28, %c2_29, %c0_30, %c0_31] : memref<1x18x18x4xbf16, #tpu.memory_space<vmem>>, vector<1x16x16x4xbf16>
    %25 = vector.shape_cast %24 : vector<1x16x16x4xbf16> to vector<16x16x4xbf16>
    %26 = vector.shape_cast %25 : vector<16x16x4xbf16> to vector<256x4xbf16>
    %c0_32 = arith.constant 0 : index
    %c24 = arith.constant 24 : index
    %27 = vector.load %arg7[%c0_32, %c24] : memref<256x36xbf16, #tpu.memory_space<vmem>>, vector<256x4xbf16>
    tpu.vector_store %arg7[%c0_32, %c24], %26 {strides = array<i32>} : memref<256x36xbf16, #tpu.memory_space<vmem>>, vector<256x4xbf16>,
    %c0_33 = arith.constant 0 : index
    %c2_34 = arith.constant 2 : index
    %c1_35 = arith.constant 1 : index
    %c0_36 = arith.constant 0 : index
    %28 = vector.load %arg1[%c0_33, %c2_34, %c1_35, %c0_36] : memref<1x18x18x4xbf16, #tpu.memory_space<vmem>>, vector<1x16x16x4xbf16>
    %29 = vector.shape_cast %28 : vector<1x16x16x4xbf16> to vector<16x16x4xbf16>
    %30 = vector.shape_cast %29 : vector<16x16x4xbf16> to vector<256x4xbf16>
    %c0_37 = arith.constant 0 : index
    %c28 = arith.constant 28 : index
    %31 = vector.load %arg7[%c0_37, %c28] : memref<256x36xbf16, #tpu.memory_space<vmem>>, vector<256x4xbf16>
    tpu.vector_store %arg7[%c0_37, %c28], %30 {strides = array<i32>} : memref<256x36xbf16, #tpu.memory_space<vmem>>, vector<256x4xbf16>,
    %c0_38 = arith.constant 0 : index
    %c2_39 = arith.constant 2 : index
    %c2_40 = arith.constant 2 : index
    %c0_41 = arith.constant 0 : index
    %32 = vector.load %arg1[%c0_38, %c2_39, %c2_40, %c0_41] : memref<1x18x18x4xbf16, #tpu.memory_space<vmem>>, vector<1x16x16x4xbf16>
    %33 = vector.shape_cast %32 : vector<1x16x16x4xbf16> to vector<16x16x4xbf16>
    %34 = vector.shape_cast %33 : vector<16x16x4xbf16> to vector<256x4xbf16>
    %c0_42 = arith.constant 0 : index
    %c32 = arith.constant 32 : index
    %35 = vector.load %arg7[%c0_42, %c32] : memref<256x36xbf16, #tpu.memory_space<vmem>>, vector<256x4xbf16>
    tpu.vector_store %arg7[%c0_42, %c32], %34 {strides = array<i32>} : memref<256x36xbf16, #tpu.memory_space<vmem>>, vector<256x4xbf16>,
    %c0_43 = arith.constant 0 : index
    %c0_44 = arith.constant 0 : index
    %36 = vector.load %arg7[%c0_43, %c0_44] : memref<256x36xbf16, #tpu.memory_space<vmem>>, vector<256x36xbf16>
    %c0_45 = arith.constant 0 : index
    %c0_46 = arith.constant 0 : index
    %37 = vector.load %arg2[%c0_45, %c0_46] : memref<36x128xbf16, #tpu.memory_space<vmem>>, vector<36x128xbf16>
    %cst = arith.constant dense<0.000000e+00> : vector<256x128xf32>
    %38 = tpu.matmul %36, %37, %cst {dimension_numbers = #tpu.dot_dimension_numbers<[1], [0], [0], [1], [0, 0, 1, 1], [], []>} : vector<256x36xbf16>, vector<36x128xbf16>, vector<256x128xf32> -> vector<256x128xf32>
    %c0_47 = arith.constant 0 : index
    %c0_48 = arith.constant 0 : index
    %39 = vector.load %arg3[%c0_47, %c0_48] : memref<1x128xf32, #tpu.memory_space<vmem>>, vector<1x128xf32>
    %40 = vector.broadcast %39 : vector<1x128xf32> to vector<256x128xf32>
    %41 = arith.addf %38, %40 : vector<256x128xf32>
    %42 = arith.truncf %41 : vector<256x128xf32> to vector<256x128xbf16>
    %c0_49 = arith.constant 0 : index
    %c0_50 = arith.constant 0 : index
    %c0_51 = arith.constant 0 : index
    %43 = vector.load %arg4[%c0_49, %c0_50, %c0_51] : memref<1x256x128xbf16, #tpu.memory_space<vmem>>, vector<1x256x128xbf16>
    %44 = vector.shape_cast %43 : vector<1x256x128xbf16> to vector<256x128xbf16>
    %45 = vector.shape_cast %42 : vector<256x128xbf16> to vector<1x256x128xbf16>
    tpu.vector_store %arg4[%c0_49, %c0_50, %c0_51], %45 {strides = array<i32>} : memref<1x256x128xbf16, #tpu.memory_space<vmem>>, vector<1x256x128xbf16>,
    %46 = arith.extf %42 : vector<256x128xbf16> to vector<256x128xf32>
    %cst_52 = arith.constant dense<0.000000e+00> : vector<128xf32>
    %47 = vector.multi_reduction <add>, %46, %cst_52 [0] : vector<256x128xf32> to vector<128xf32>
    %48 = vector.shape_cast %47 : vector<128xf32> to vector<1x128xf32>
    %c0_53 = arith.constant 0 : index
    %c0_54 = arith.constant 0 : index
    %c0_55 = arith.constant 0 : index
    %49 = vector.load %arg5[%c0_53, %c0_54, %c0_55] : memref<1x1x128xf32, #tpu.memory_space<vmem>>, vector<1x1x128xf32>
    %50 = vector.shape_cast %49 : vector<1x1x128xf32> to vector<1x128xf32>
    %51 = vector.shape_cast %48 : vector<1x128xf32> to vector<1x1x128xf32>
    tpu.vector_store %arg5[%c0_53, %c0_54, %c0_55], %51 {strides = array<i32>} : memref<1x1x128xf32, #tpu.memory_space<vmem>>, vector<1x1x128xf32>,
    %52 = arith.mulf %46, %46 : vector<256x128xf32>
    %cst_56 = arith.constant dense<0.000000e+00> : vector<128xf32>
    %53 = vector.multi_reduction <add>, %52, %cst_56 [0] : vector<256x128xf32> to vector<128xf32>
    %54 = vector.shape_cast %53 : vector<128xf32> to vector<1x128xf32>
    %c0_57 = arith.constant 0 : index
    %c0_58 = arith.constant 0 : index
    %c0_59 = arith.constant 0 : index
    %55 = vector.load %arg6[%c0_57, %c0_58, %c0_59] : memref<1x1x128xf32, #tpu.memory_space<vmem>>, vector<1x1x128xf32>
    %56 = vector.shape_cast %55 : vector<1x1x128xf32> to vector<1x128xf32>
    %57 = vector.shape_cast %54 : vector<1x128xf32> to vector<1x1x128xf32>
    tpu.vector_store %arg6[%c0_57, %c0_58, %c0_59], %57 {strides = array<i32>} : memref<1x1x128xf32, #tpu.memory_space<vmem>>, vector<1x1x128xf32>,
    return
  }
  func.func @transform_0(%arg0: i32) -> (i32, i32, i32, i32) {
    %c0_i32 = arith.constant 0 : i32
    %c0_i32_0 = arith.constant 0 : i32
    %c0_i32_1 = arith.constant 0 : i32
    %c0_i32_2 = arith.constant 0 : i32
    return %arg0, %c0_i32, %c0_i32_0, %c0_i32_1 : i32, i32, i32, i32
  }
  func.func @transform_1(%arg0: i32) -> (i32, i32) {
    %c0_i32 = arith.constant 0 : i32
    %c0_i32_0 = arith.constant 0 : i32
    %c0_i32_1 = arith.constant 0 : i32
    return %c0_i32, %c0_i32_0 : i32, i32
  }
  func.func @transform_2(%arg0: i32) -> (i32, i32) {
    %c0_i32 = arith.constant 0 : i32
    %c0_i32_0 = arith.constant 0 : i32
    %c0_i32_1 = arith.constant 0 : i32
    return %c0_i32, %c0_i32_0 : i32, i32
  }
  func.func @transform_3(%arg0: i32) -> (i32, i32, i32) {
    %c0_i32 = arith.constant 0 : i32
    %c0_i32_0 = arith.constant 0 : i32
    %c0_i32_1 = arith.constant 0 : i32
    return %arg0, %c0_i32, %c0_i32_0 : i32, i32, i32
  }
  func.func @transform_4(%arg0: i32) -> (i32, i32, i32) {
    %c0_i32 = arith.constant 0 : i32
    %c0_i32_0 = arith.constant 0 : i32
    %c0_i32_1 = arith.constant 0 : i32
    return %arg0, %c0_i32, %c0_i32_0 : i32, i32, i32
  }
  func.func @transform_5(%arg0: i32) -> (i32, i32, i32) {
    %c0_i32 = arith.constant 0 : i32
    %c0_i32_0 = arith.constant 0 : i32
    %c0_i32_1 = arith.constant 0 : i32
    return %arg0, %c0_i32, %c0_i32_0 : i32, i32, i32
  }
}

module attributes {stable_mosaic.version = 11 : i64} {
  func.func @_affine_kernel(%arg0: i32, %arg1: memref<512x128xbf16, #tpu.memory_space<vmem>>, %arg2: memref<1x128xf32, #tpu.memory_space<vmem>>, %arg3: memref<1x128xf32, #tpu.memory_space<vmem>>, %arg4: memref<512x128xf32, #tpu.memory_space<vmem>>) attributes {dimension_semantics = [#tpu.dimension_semantics<parallel>], iteration_bounds = array<i64: 1>, scalar_prefetch = 0 : i64, scratch_operands = 0 : i64, tpu.core_type = #tpu.core_type<tc>, window_params = [{transform_indices = @transform_0, window_bounds = array<i64: 512, 128>}, {pipeline_mode = #tpu.pipeline_mode<synchronous>, transform_indices = @transform_1, window_bounds = array<i64: 1, 128>}, {pipeline_mode = #tpu.pipeline_mode<synchronous>, transform_indices = @transform_2, window_bounds = array<i64: 1, 128>}, {transform_indices = @transform_3, window_bounds = array<i64: 512, 128>}]} {
    %c0 = arith.constant 0 : index
    %c0_0 = arith.constant 0 : index
    %0 = vector.load %arg1[%c0, %c0_0] : memref<512x128xbf16, #tpu.memory_space<vmem>>, vector<512x128xbf16>
    %1 = arith.extf %0 : vector<512x128xbf16> to vector<512x128xf32>
    %c0_1 = arith.constant 0 : index
    %c0_2 = arith.constant 0 : index
    %2 = vector.load %arg2[%c0_1, %c0_2] : memref<1x128xf32, #tpu.memory_space<vmem>>, vector<1x128xf32>
    %3 = vector.broadcast %2 : vector<1x128xf32> to vector<512x128xf32>
    %4 = arith.mulf %1, %3 : vector<512x128xf32>
    %c0_3 = arith.constant 0 : index
    %c0_4 = arith.constant 0 : index
    %5 = vector.load %arg3[%c0_3, %c0_4] : memref<1x128xf32, #tpu.memory_space<vmem>>, vector<1x128xf32>
    %6 = vector.broadcast %5 : vector<1x128xf32> to vector<512x128xf32>
    %7 = arith.addf %4, %6 : vector<512x128xf32>
    %c0_5 = arith.constant 0 : index
    %c0_6 = arith.constant 0 : index
    %8 = vector.load %arg4[%c0_5, %c0_6] : memref<512x128xf32, #tpu.memory_space<vmem>>, vector<512x128xf32>
    tpu.vector_store %arg4[%c0_5, %c0_6], %7 {strides = array<i32>} : memref<512x128xf32, #tpu.memory_space<vmem>>, vector<512x128xf32>,
    return
  }
  func.func @transform_0(%arg0: i32) -> (i32, i32) {
    %c0_i32 = arith.constant 0 : i32
    %c0_i32_0 = arith.constant 0 : i32
    return %arg0, %c0_i32 : i32, i32
  }
  func.func @transform_1(%arg0: i32) -> (i32, i32) {
    %c0_i32 = arith.constant 0 : i32
    %c0_i32_0 = arith.constant 0 : i32
    %c0_i32_1 = arith.constant 0 : i32
    return %c0_i32, %c0_i32_0 : i32, i32
  }
  func.func @transform_2(%arg0: i32) -> (i32, i32) {
    %c0_i32 = arith.constant 0 : i32
    %c0_i32_0 = arith.constant 0 : i32
    %c0_i32_1 = arith.constant 0 : i32
    return %c0_i32, %c0_i32_0 : i32, i32
  }
  func.func @transform_3(%arg0: i32) -> (i32, i32) {
    %c0_i32 = arith.constant 0 : i32
    %c0_i32_0 = arith.constant 0 : i32
    return %arg0, %c0_i32 : i32, i32
  }
}

</mosaic_0001>

<bundles_post_ra>
// kernel: conv2d_batchnorm_forward.3
= control target key start
LH: loop header
LB: loop body
LE: loop exit
PB: predicated region body
PF: predicated region fallthrough
CT: control target
= control target key end

     0   :  { %s957_s0 = inlined_call_operand.vmem [shape: bf16[512,128], index: 0, kind: input, shape index: {}]   ;;  %s958_s1 = inlined_call_operand.vmem [shape: f32[1,128], index: 1, kind: input, shape index: {}]   ;;  %s959_s2 = inlined_call_operand.vmem [shape: f32[1,128], index: 2, kind: input, shape index: {}]   ;;  %s960_s3 = inlined_call_operand.vmem [shape: f32[512,128], index: 3, kind: output, shape index: {}]  }
   0x1   :  { %v347_v0 = vld [vmem:[%s957_s0] sm:$0xff]   ;;  %v474_v5 = vld [vmem:[%s957_s0 + $0x8] sm:$0xff]   ;;  %v475_v8 = vld [vmem:[%s957_s0 + $0x10] sm:$0xff]  }
   0x2   :  { %v533_v1 = vld [vmem:[%s958_s1] ss:$0 sm:$0xff]  ;;  %v348_v2 = vunpack.c.l.bf16 %v347_v0  ;;  %v349_v4 = vunpack.c.h.bf16 %v347_v0  ;;  %v352_v6 = vunpack.c.l.bf16 %v474_v5  ;;  %v353_v7 = vunpack.c.h.bf16 %v474_v5  ;;  %v476_v9 = vld [vmem:[%s957_s0 + $0x18] sm:$0xff]   ;;  %v478_v23 = vld [vmem:[%s957_s0 + $0x28] sm:$0xff]  }
   0x3   :  { %v538_v3 = vld [vmem:[%s959_s2] ss:$0 sm:$0xff]  ;;  %v356_v12 = vunpack.c.l.bf16 %v475_v8  ;;  %v357_v13 = vunpack.c.h.bf16 %v475_v8  ;;  %v360_v16 = vunpack.c.l.bf16 %v476_v9  ;;  %v361_v17 = vunpack.c.h.bf16 %v476_v9  ;;  %v479_v28 = vld [vmem:[%s957_s0 + $0x30] sm:$0xff]   ;;  %v480_v33 = vld [vmem:[%s957_s0 + $0x38] sm:$0xff]  }
   0x4   :  { %v146_v10 = vmul.f32 %v533_v1, %v348_v2  ;;  %v147_v11 = vmul.f32 %v533_v1, %v349_v4  ;;  %v148_v14 = vmul.f32 %v533_v1, %v352_v6  ;;  %v149_v15 = vmul.f32 %v533_v1, %v353_v7  ;;  %v477_v18 = vld [vmem:[%s957_s0 + $0x20] sm:$0xff]   ;;  %v482_v49 = vld [vmem:[%s957_s0 + $0x48] sm:$0xff]   ;;  %v483_v52 = vld [vmem:[%s957_s0 + $0x50] sm:$0xff]  }
   0x5   :  { %v150_v21 = vmul.f32 %v533_v1, %v356_v12  ;;  %v151_v22 = vmul.f32 %v533_v1, %v357_v13  ;;  %v152_v26 = vmul.f32 %v533_v1, %v360_v16  ;;  %v153_v27 = vmul.f32 %v533_v1, %v361_v17  ;;  %v481_v46 = vld [vmem:[%s957_s0 + $0x40] sm:$0xff]   ;;  %v484_v61 = vld [vmem:[%s957_s0 + $0x58] sm:$0xff]   ;;  %v486_v13 = vld [vmem:[%s957_s0 + $0x68] sm:$0xff]  }
   0x6   :  { %v214_v19 = vadd.f32 %v538_v3, %v146_v10  ;;  %v215_v20 = vadd.f32 %v538_v3, %v147_v11  ;;  %v216_v24 = vadd.f32 %v538_v3, %v148_v14  ;;  %v217_v25 = vadd.f32 %v538_v3, %v149_v15  ;;  %v485_v6 = vld [vmem:[%s957_s0 + $0x60] sm:$0xff]  }
   0x7   :  { %v218_v29 = vadd.f32 %v538_v3, %v150_v21  ;;  %v219_v30 = vadd.f32 %v538_v3, %v151_v22  ;;  %v364_v31 = vunpack.c.l.bf16 %v477_v18  ;;  %v365_v32 = vunpack.c.h.bf16 %v477_v18 }
   0x8   :  { %278 = vst [vmem:[%s960_s3] sm:$0xff] %v214_v19  ;;  %v220_v34 = vadd.f32 %v538_v3, %v152_v26  ;;  %v221_v35 = vadd.f32 %v538_v3, %v153_v27  ;;  %v368_v36 = vunpack.c.l.bf16 %v478_v23  ;;  %v369_v37 = vunpack.c.h.bf16 %v478_v23  ;;  %v488_v27 = vld [vmem:[%s957_s0 + $0x78] sm:$0xff]  }
   0x9   :  { %279 = vst [vmem:[%s960_s3 + $0x8] sm:$0xff] %v215_v20  ;;  %v154_v38 = vmul.f32 %v533_v1, %v364_v31  ;;  %v155_v39 = vmul.f32 %v533_v1, %v365_v32  ;;  %v372_v40 = vunpack.c.l.bf16 %v479_v28  ;;  %v373_v41 = vunpack.c.h.bf16 %v479_v28  ;;  %v487_v20 = vld [vmem:[%s957_s0 + $0x70] sm:$0xff]  }
   0xa   :  { %280 = vst [vmem:[%s960_s3 + $0x10] sm:$0xff] %v216_v24  ;;  %v156_v42 = vmul.f32 %v533_v1, %v368_v36  ;;  %v157_v43 = vmul.f32 %v533_v1, %v369_v37  ;;  %v376_v44 = vunpack.c.l.bf16 %v480_v33  ;;  %v377_v45 = vunpack.c.h.bf16 %v480_v33 }
   0xb   :  { %281 = vst [vmem:[%s960_s3 + $0x18] sm:$0xff] %v217_v25  ;;  %v222_v47 = vadd.f32 %v538_v3, %v154_v38  ;;  %v158_v48 = vmul.f32 %v533_v1, %v372_v40  ;;  %v223_v50 = vadd.f32 %v538_v3, %v155_v39  ;;  %v159_v51 = vmul.f32 %v533_v1, %v373_v41  ;;  %v490_v41 = vld [vmem:[%s957_s0 + $0x88] sm:$0xff]  }
   0xc   :  { %282 = vst [vmem:[%s960_s3 + $0x20] sm:$0xff] %v218_v29  ;;  %v224_v53 = vadd.f32 %v538_v3, %v156_v42  ;;  %v160_v54 = vmul.f32 %v533_v1, %v376_v44  ;;  %v380_v55 = vunpack.c.l.bf16 %v481_v46  ;;  %v381_v56 = vunpack.c.h.bf16 %v481_v46 }
   0xd   :  { %283 = vst [vmem:[%s960_s3 + $0x28] sm:$0xff] %v219_v30  ;;  %v225_v57 = vadd.f32 %v538_v3, %v157_v43  ;;  %v161_v58 = vmul.f32 %v533_v1, %v377_v45  ;;  %v384_v59 = vunpack.c.l.bf16 %v482_v49  ;;  %v385_v60 = vunpack.c.h.bf16 %v482_v49 }
   0xe   :  { %284 = vst [vmem:[%s960_s3 + $0x30] sm:$0xff] %v220_v34  ;;  %v226_v62 = vadd.f32 %v538_v3, %v158_v48  ;;  %v162_v63 = vmul.f32 %v533_v1, %v380_v55  ;;  %v388_v0 = vunpack.c.l.bf16 %v483_v52  ;;  %v227_v2 = vadd.f32 %v538_v3, %v159_v51  ;;  %v489_v34 = vld [vmem:[%s957_s0 + $0x80] sm:$0xff]   ;;  %v491_v48 = vld [vmem:[%s957_s0 + $0x90] sm:$0xff]   ;;  %v492_v55 = vld [vmem:[%s957_s0 + $0x98] sm:$0xff]  }
   0xf   :  { %285 = vst [vmem:[%s960_s3 + $0x38] sm:$0xff] %v221_v35  ;;  %v163_v4 = vmul.f32 %v533_v1, %v381_v56  ;;  %v389_v5 = vunpack.c.h.bf16 %v483_v52  ;;  %v228_v7 = vadd.f32 %v538_v3, %v160_v54  ;;  %v164_v8 = vmul.f32 %v533_v1, %v384_v59 }
  0x10   :  { %286 = vst [vmem:[%s960_s3 + $0x40] sm:$0xff] %v222_v47  ;;  %v392_v9 = vunpack.c.l.bf16 %v484_v61  ;;  %v229_v10 = vadd.f32 %v538_v3, %v161_v58  ;;  %v165_v11 = vmul.f32 %v533_v1, %v385_v60  ;;  %v393_v12 = vunpack.c.h.bf16 %v484_v61 }
  0x11   :  { %287 = vst [vmem:[%s960_s3 + $0x48] sm:$0xff] %v223_v50  ;;  %v230_v14 = vadd.f32 %v538_v3, %v162_v63  ;;  %v166_v15 = vmul.f32 %v533_v1, %v388_v0  ;;  %v396_v16 = vunpack.c.l.bf16 %v485_v6  ;;  %v231_v17 = vadd.f32 %v538_v3, %v163_v4 }
  0x12   :  { %288 = vst [vmem:[%s960_s3 + $0x50] sm:$0xff] %v224_v53  ;;  %v167_v18 = vmul.f32 %v533_v1, %v389_v5  ;;  %v397_v19 = vunpack.c.h.bf16 %v485_v6  ;;  %v232_v21 = vadd.f32 %v538_v3, %v164_v8  ;;  %v168_v22 = vmul.f32 %v533_v1, %v392_v9 }
  0x13   :  { %289 = vst [vmem:[%s960_s3 + $0x58] sm:$0xff] %v225_v57  ;;  %v400_v23 = vunpack.c.l.bf16 %v486_v13  ;;  %v233_v24 = vadd.f32 %v538_v3, %v165_v11  ;;  %v169_v25 = vmul.f32 %v533_v1, %v393_v12  ;;  %v401_v26 = vunpack.c.h.bf16 %v486_v13 }
  0x14   :  { %290 = vst [vmem:[%s960_s3 + $0x60] sm:$0xff] %v226_v62  ;;  %v234_v28 = vadd.f32 %v538_v3, %v166_v15  ;;  %v170_v29 = vmul.f32 %v533_v1, %v396_v16  ;;  %v404_v30 = vunpack.c.l.bf16 %v487_v20  ;;  %v235_v31 = vadd.f32 %v538_v3, %v167_v18  ;;  %v493_v62 = vld [vmem:[%s957_s0 + $0xa0] sm:$0xff]  }
  0x15   :  { %291 = vst [vmem:[%s960_s3 + $0x68] sm:$0xff] %v227_v2  ;;  %v171_v32 = vmul.f32 %v533_v1, %v397_v19  ;;  %v405_v33 = vunpack.c.h.bf16 %v487_v20  ;;  %v236_v35 = vadd.f32 %v538_v3, %v168_v22  ;;  %v172_v36 = vmul.f32 %v533_v1, %v400_v23 }
  0x16   :  { %292 = vst [vmem:[%s960_s3 + $0x70] sm:$0xff] %v228_v7  ;;  %v408_v37 = vunpack.c.l.bf16 %v488_v27  ;;  %v237_v38 = vadd.f32 %v538_v3, %v169_v25  ;;  %v173_v39 = vmul.f32 %v533_v1, %v401_v26  ;;  %v409_v40 = vunpack.c.h.bf16 %v488_v27  ;;  %v494_v7 = vld [vmem:[%s957_s0 + $0xa8] sm:$0xff]  }
  0x17   :  { %293 = vst [vmem:[%s960_s3 + $0x78] sm:$0xff] %v229_v10  ;;  %v238_v42 = vadd.f32 %v538_v3, %v170_v29  ;;  %v174_v43 = vmul.f32 %v533_v1, %v404_v30  ;;  %v412_v44 = vunpack.c.l.bf16 %v489_v34  ;;  %v239_v45 = vadd.f32 %v538_v3, %v171_v32 }
  0x18   :  { %294 = vst [vmem:[%s960_s3 + $0x80] sm:$0xff] %v230_v14  ;;  %v175_v46 = vmul.f32 %v533_v1, %v405_v33  ;;  %v413_v47 = vunpack.c.h.bf16 %v489_v34  ;;  %v240_v49 = vadd.f32 %v538_v3, %v172_v36  ;;  %v176_v50 = vmul.f32 %v533_v1, %v408_v37  ;;  %v495_v14 = vld [vmem:[%s957_s0 + $0xb0] sm:$0xff]  }
  0x19   :  { %295 = vst [vmem:[%s960_s3 + $0x88] sm:$0xff] %v231_v17  ;;  %v416_v51 = vunpack.c.l.bf16 %v490_v41  ;;  %v241_v52 = vadd.f32 %v538_v3, %v173_v39  ;;  %v177_v53 = vmul.f32 %v533_v1, %v409_v40  ;;  %v417_v54 = vunpack.c.h.bf16 %v490_v41  ;;  %v815_v39 = vld [vmem:[%s957_s0 + $0xf8] sm:$0xff]  }
  0x1a   :  { %296 = vst [vmem:[%s960_s3 + $0x90] sm:$0xff] %v232_v21  ;;  %v242_v56 = vadd.f32 %v538_v3, %v174_v43  ;;  %v178_v57 = vmul.f32 %v533_v1, %v412_v44  ;;  %v420_v58 = vunpack.c.l.bf16 %v491_v48  ;;  %v243_v59 = vadd.f32 %v538_v3, %v175_v46  ;;  %v496_v21 = vld [vmem:[%s957_s0 + $0xb8] sm:$0xff]   ;;  %v499_v43 = vld [vmem:[%s957_s0 + $0xd0] sm:$0xff]  }
  0x1b   :  { %297 = vst [vmem:[%s960_s3 + $0x98] sm:$0xff] %v233_v24  ;;  %v179_v60 = vmul.f32 %v533_v1, %v413_v47  ;;  %v421_v61 = vunpack.c.h.bf16 %v491_v48  ;;  %v244_v63 = vadd.f32 %v538_v3, %v176_v50  ;;  %v180_v0 = vmul.f32 %v533_v1, %v416_v51  ;;  %v500_v50 = vld [vmem:[%s957_s0 + $0xd8] sm:$0xff]  }
  0x1c   :  { %298 = vst [vmem:[%s960_s3 + $0xa0] sm:$0xff] %v234_v28  ;;  %v424_v2 = vunpack.c.l.bf16 %v492_v55  ;;  %v245_v4 = vadd.f32 %v538_v3, %v177_v53  ;;  %v181_v5 = vmul.f32 %v533_v1, %v417_v54  ;;  %v425_v6 = vunpack.c.h.bf16 %v492_v55  ;;  %v497_v28 = vld [vmem:[%s957_s0 + $0xc0] sm:$0xff]  }
  0x1d   :  { %299 = vst [vmem:[%s960_s3 + $0xa8] sm:$0xff] %v235_v31  ;;  %v246_v8 = vadd.f32 %v538_v3, %v178_v57  ;;  %v182_v9 = vmul.f32 %v533_v1, %v420_v58  ;;  %v428_v10 = vunpack.c.l.bf16 %v493_v62  ;;  %v247_v11 = vadd.f32 %v538_v3, %v179_v60  ;;  %v501_v58 = vld [vmem:[%s957_s0 + $0xe0] sm:$0xff]  }
  0x1e   :  { %300 = vst [vmem:[%s960_s3 + $0xb0] sm:$0xff] %v236_v35  ;;  %v183_v12 = vmul.f32 %v533_v1, %v421_v61  ;;  %v429_v13 = vunpack.c.h.bf16 %v493_v62  ;;  %v248_v15 = vadd.f32 %v538_v3, %v180_v0  ;;  %v184_v16 = vmul.f32 %v533_v1, %v424_v2  ;;  %v498_v35 = vld [vmem:[%s957_s0 + $0xc8] sm:$0xff]  }
  0x1f   :  { %301 = vst [vmem:[%s960_s3 + $0xb8] sm:$0xff] %v237_v38  ;;  %v432_v17 = vunpack.c.l.bf16 %v494_v7  ;;  %v249_v18 = vadd.f32 %v538_v3, %v181_v5  ;;  %v185_v19 = vmul.f32 %v533_v1, %v425_v6  ;;  %v433_v20 = vunpack.c.h.bf16 %v494_v7 }
  0x20   :  { %302 = vst [vmem:[%s960_s3 + $0xc0] sm:$0xff] %v238_v42  ;;  %v250_v22 = vadd.f32 %v538_v3, %v182_v9  ;;  %v186_v23 = vmul.f32 %v533_v1, %v428_v10  ;;  %v436_v24 = vunpack.c.l.bf16 %v495_v14  ;;  %v251_v25 = vadd.f32 %v538_v3, %v183_v12  ;;  %v503_v12 = vld [vmem:[%s957_s0 + $0xf0] sm:$0xff]  }
  0x21   :  { %303 = vst [vmem:[%s960_s3 + $0xc8] sm:$0xff] %v239_v45  ;;  %v187_v26 = vmul.f32 %v533_v1, %v429_v13  ;;  %v437_v27 = vunpack.c.h.bf16 %v495_v14  ;;  %v252_v29 = vadd.f32 %v538_v3, %v184_v16  ;;  %v188_v30 = vmul.f32 %v533_v1, %v432_v17 }
  0x22   :  { %304 = vst [vmem:[%s960_s3 + $0xd0] sm:$0xff] %v240_v49  ;;  %v440_v31 = vunpack.c.l.bf16 %v496_v21  ;;  %v253_v32 = vadd.f32 %v538_v3, %v185_v19  ;;  %v189_v33 = vmul.f32 %v533_v1, %v433_v20  ;;  %v441_v34 = vunpack.c.h.bf16 %v496_v21 }
  0x23   :  { %305 = vst [vmem:[%s960_s3 + $0xd8] sm:$0xff] %v241_v52  ;;  %v254_v36 = vadd.f32 %v538_v3, %v186_v23  ;;  %v190_v37 = vmul.f32 %v533_v1, %v436_v24  ;;  %v444_v38 = vunpack.c.l.bf16 %v497_v28  ;;  %v255_v40 = vadd.f32 %v538_v3, %v187_v26 }
  0x24   :  { %306 = vst [vmem:[%s960_s3 + $0xe0] sm:$0xff] %v242_v56  ;;  %v191_v41 = vmul.f32 %v533_v1, %v437_v27  ;;  %v445_v42 = vunpack.c.h.bf16 %v497_v28  ;;  %v256_v44 = vadd.f32 %v538_v3, %v188_v30  ;;  %v192_v45 = vmul.f32 %v533_v1, %v440_v31 }
  0x25   :  { %307 = vst [vmem:[%s960_s3 + $0xe8] sm:$0xff] %v243_v59  ;;  %v448_v46 = vunpack.c.l.bf16 %v498_v35  ;;  %v257_v47 = vadd.f32 %v538_v3, %v189_v33  ;;  %v193_v48 = vmul.f32 %v533_v1, %v441_v34  ;;  %v449_v49 = vunpack.c.h.bf16 %v498_v35 }
  0x26   :  { %308 = vst [vmem:[%s960_s3 + $0xf0] sm:$0xff] %v244_v63  ;;  %v473_v51 = vunpack.c.h.bf16 %v815_v39  ;;  %v258_v52 = vadd.f32 %v538_v3, %v190_v37  ;;  %v194_v53 = vmul.f32 %v533_v1, %v444_v38  ;;  %v452_v54 = vunpack.c.l.bf16 %v499_v43 }
  0x27   :  { %309 = vst [vmem:[%s960_s3 + $0xf8] sm:$0xff] %v245_v4  ;;  %v259_v55 = vadd.f32 %v538_v3, %v191_v41  ;;  %v195_v56 = vmul.f32 %v533_v1, %v445_v42  ;;  %v453_v57 = vunpack.c.h.bf16 %v499_v43  ;;  %v260_v60 = vadd.f32 %v538_v3, %v192_v45  ;;  %v502_v4 = vld [vmem:[%s957_s0 + $0xe8] sm:$0xff]  }
  0x28   :  { %310 = vst [vmem:[%s960_s3 + $0x100] sm:$0xff] %v246_v8  ;;  %v209_v59 = vmul.f32 %v533_v1, %v473_v51  ;;  %v196_v61 = vmul.f32 %v533_v1, %v448_v46  ;;  %v456_v62 = vunpack.c.l.bf16 %v500_v50  ;;  %v261_v63 = vadd.f32 %v538_v3, %v193_v48 }
  0x29   :  { %311 = vst [vmem:[%s960_s3 + $0x108] sm:$0xff] %v247_v11  ;;  %v197_v0 = vmul.f32 %v533_v1, %v449_v49  ;;  %v457_v2 = vunpack.c.h.bf16 %v500_v50  ;;  %v262_v6 = vadd.f32 %v538_v3, %v194_v53  ;;  %v198_v7 = vmul.f32 %v533_v1, %v452_v54 }
  0x2a   :  { %312 = vst [vmem:[%s960_s3 + $0x110] sm:$0xff] %v248_v15  ;;  %v277_v5 = vadd.f32 %v538_v3, %v209_v59  ;;  %v460_v8 = vunpack.c.l.bf16 %v501_v58  ;;  %v263_v9 = vadd.f32 %v538_v3, %v195_v56  ;;  %v199_v10 = vmul.f32 %v533_v1, %v453_v57 }
  0x2b   :  { %313 = vst [vmem:[%s960_s3 + $0x118] sm:$0xff] %v249_v18  ;;  %v461_v11 = vunpack.c.h.bf16 %v501_v58  ;;  %v264_v13 = vadd.f32 %v538_v3, %v196_v61  ;;  %v200_v14 = vmul.f32 %v533_v1, %v456_v62  ;;  %v464_v15 = vunpack.c.l.bf16 %v502_v4 }
  0x2c   :  { %314 = vst [vmem:[%s960_s3 + $0x120] sm:$0xff] %v250_v22  ;;  %v265_v16 = vadd.f32 %v538_v3, %v197_v0  ;;  %v201_v17 = vmul.f32 %v533_v1, %v457_v2  ;;  %v465_v18 = vunpack.c.h.bf16 %v502_v4  ;;  %v266_v19 = vadd.f32 %v538_v3, %v198_v7 }
  0x2d   :  { %315 = vst [vmem:[%s960_s3 + $0x128] sm:$0xff] %v251_v25  ;;  %v202_v20 = vmul.f32 %v533_v1, %v460_v8  ;;  %v468_v21 = vunpack.c.l.bf16 %v503_v12  ;;  %v267_v22 = vadd.f32 %v538_v3, %v199_v10  ;;  %v203_v23 = vmul.f32 %v533_v1, %v461_v11 }
  0x2e   :  { %316 = vst [vmem:[%s960_s3 + $0x130] sm:$0xff] %v252_v29  ;;  %v469_v24 = vunpack.c.h.bf16 %v503_v12  ;;  %v268_v25 = vadd.f32 %v538_v3, %v200_v14  ;;  %v204_v26 = vmul.f32 %v533_v1, %v464_v15  ;;  %v472_v27 = vunpack.c.l.bf16 %v815_v39 }
  0x2f   :  { %317 = vst [vmem:[%s960_s3 + $0x138] sm:$0xff] %v253_v32  ;;  %v269_v28 = vadd.f32 %v538_v3, %v201_v17  ;;  %v205_v29 = vmul.f32 %v533_v1, %v465_v18  ;;  %v270_v30 = vadd.f32 %v538_v3, %v202_v20  ;;  %v206_v31 = vmul.f32 %v533_v1, %v468_v21 }
  0x30   :  { %318 = vst [vmem:[%s960_s3 + $0x140] sm:$0xff] %v254_v36  ;;  %v271_v32 = vadd.f32 %v538_v3, %v203_v23  ;;  %v207_v33 = vmul.f32 %v533_v1, %v469_v24  ;;  %v272_v34 = vadd.f32 %v538_v3, %v204_v26  ;;  %v208_v35 = vmul.f32 %v533_v1, %v472_v27 }
  0x31   :  { %319 = vst [vmem:[%s960_s3 + $0x148] sm:$0xff] %v255_v40  ;;  %v273_v36 = vadd.f32 %v538_v3, %v205_v29  ;;  %v274_v37 = vadd.f32 %v538_v3, %v206_v31 }
  0x32   :  { %320 = vst [vmem:[%s960_s3 + $0x150] sm:$0xff] %v256_v44  ;;  %v275_v38 = vadd.f32 %v538_v3, %v207_v33  ;;  %v276_v1 = vadd.f32 %v538_v3, %v208_v35 }
  0x33   :  { %321 = vst [vmem:[%s960_s3 + $0x158] sm:$0xff] %v257_v47 }
  0x34   :  { %322 = vst [vmem:[%s960_s3 + $0x160] sm:$0xff] %v258_v52 }
  0x35   :  { %323 = vst [vmem:[%s960_s3 + $0x168] sm:$0xff] %v259_v55 }
  0x36   :  { %324 = vst [vmem:[%s960_s3 + $0x170] sm:$0xff] %v260_v60 }
  0x37   :  { %325 = vst [vmem:[%s960_s3 + $0x178] sm:$0xff] %v261_v63 }
  0x38   :  { %326 = vst [vmem:[%s960_s3 + $0x180] sm:$0xff] %v262_v6 }
  0x39   :  { %327 = vst [vmem:[%s960_s3 + $0x188] sm:$0xff] %v263_v9 }
  0x3a   :  { %328 = vst [vmem:[%s960_s3 + $0x190] sm:$0xff] %v264_v13 }
  0x3b   :  { %329 = vst [vmem:[%s960_s3 + $0x198] sm:$0xff] %v265_v16 }
  0x3c   :  { %330 = vst [vmem:[%s960_s3 + $0x1a0] sm:$0xff] %v266_v19 }
  0x3d   :  { %331 = vst [vmem:[%s960_s3 + $0x1a8] sm:$0xff] %v267_v22 }
  0x3e   :  { %332 = vst [vmem:[%s960_s3 + $0x1b0] sm:$0xff] %v268_v25 }
  0x3f   :  { %333 = vst [vmem:[%s960_s3 + $0x1b8] sm:$0xff] %v269_v28 }
  0x40   :  { %334 = vst [vmem:[%s960_s3 + $0x1c0] sm:$0xff] %v270_v30 }
  0x41   :  { %335 = vst [vmem:[%s960_s3 + $0x1c8] sm:$0xff] %v271_v32 }
  0x42   :  { %336 = vst [vmem:[%s960_s3 + $0x1d0] sm:$0xff] %v272_v34 }
  0x43   :  { %337 = vst [vmem:[%s960_s3 + $0x1d8] sm:$0xff] %v273_v36 }
  0x44   :  { %338 = vst [vmem:[%s960_s3 + $0x1e0] sm:$0xff] %v274_v37 }
  0x45   :  { %339 = vst [vmem:[%s960_s3 + $0x1e8] sm:$0xff] %v275_v38 }
  0x46   :  { %340 = vst [vmem:[%s960_s3 + $0x1f0] sm:$0xff] %v276_v1 }
  0x47   :  { %341 = vst [vmem:[%s960_s3 + $0x1f8] sm:$0xff] %v277_v5 }

// kernel: conv2d_batchnorm_forward.2
= control target key start
LH: loop header
LB: loop body
LE: loop exit
PB: predicated region body
PF: predicated region fallthrough
CT: control target
= control target key end

     0   :  { %s4572_s18 = smov 0   ;;  %s6140_s0 = inlined_call_operand.vmem [shape: bf16[2,18,18,4], index: 0, kind: input, shape index: {}]   ;;  %s6141_s1 = inlined_call_operand.vmem [shape: bf16[36,128], index: 1, kind: input, shape index: {}]   ;;  %s6142_s2 = inlined_call_operand.vmem [shape: f32[1,128], index: 2, kind: input, shape index: {}]   ;;  %s6143_s3 = inlined_call_operand.vmem [shape: bf16[2,256,128], index: 3, kind: output, shape index: {0}]   ;;  %s6144_s4 = inlined_call_operand.vmem [shape: f32[2,1,128], index: 4, kind: output, shape index: {1}]   ;;  %s6145_s5 = inlined_call_operand.vmem [shape: f32[2,1,128], index: 5, kind: output, shape index: {2}]  }
   0x1 LB: > { %s3983_s19 = sadd.s32 4294967295, %s4532_s18   ;;  %p3987_p0 = scmp.ge.s32.totalorder %s4532_s18, 1  ;;  %s4532_s18 = sphi %s4572_s18, %s16_s18  }
   0x2   : > { %p192_p1 = scmp.lt.s32.totalorder %s4532_s18, 3 }
   0x4   : > { %p193_p2 = pnand %p3987_p0, %p192_p1 }
   0x5   : > { %p226_p3 = scmp.lt.s32.totalorder (!%p193_p2), %s3983_s19, 1  ;;  %s4534_s24 = smov (!%p193_p2), 4  }
   0x6   : > { %196 = sbr.rel (%p193_p2) target bundleno = 992 (0x3e0), region = 32  ;;  %s4535_s25 = smov (!%p193_p2), 8  }
   0x7   : > { %s4536_s26 = smov (!%p193_p2), 12   ;;  %s4537_s27 = smov (!%p193_p2), 16  }
   0x8   : > { %s4538_s28 = smov (!%p193_p2), 20   ;;  %s4539_s29 = smov (!%p193_p2), 28  }
   0x9   : > { %s4540_s30 = smov (!%p193_p2), 24   ;;  %s4541_s6 = smov (!%p193_p2), 32  }
   0xb   : > { %s6151_s19 = smov (!%p226_p3, %s3983_s19), 1  ;;  %vm356_vm0 = vsmask.f32 3328  ;;  %vm357_vm1 = vsmask.f32 7440  ;;  %vm968_vm3 = vcmask 1042432  }
   0xc   : > { %s4508_s20 = smul.u32 216, %s6151_s19  ;;  %vm4597_vm2 = vmor %vm356_vm0, %vm357_vm1  ;;  %vm969_vm4 = vcmask 1046532   ;;  %vm275_vm5 = vcmask 27648   ;;  %vm839_vm7 = vcmask 60448   ;;  %vm1179_vm8 = vcmask 93248   ;;  %s4385_s15 = sshll.u32 %s6151_s19, 7 }
   0xd   : > { %vm4772_vm6 = vmor %vm968_vm3, %vm969_vm4  ;;  %vm1373_vm9 = vcmask 126048   ;;  %vm1934_vm10 = vcmask 158848   ;;  %vm2271_vm11 = vcmask 191648   ;;  %vm3581_vm12 = vcmask 1041408  }
   0xe   : > { %s4586_s23 = scalar_lea.vmem %s6140_s0, %s4508_s20  ;;  %vm2465_vm13 = vcmask 224448   ;;  %vm3026_vm14 = vcmask 257248   ;;  %vm3363_vm15 = vcmask 290048   ;;  %vm3532_vm0 = vcmask 293888   ;;  %s5974_s20 = scalar_lea.vmem %s6143_s3, %s4385_s15 }
   0xf   : > { %v311_v0 = vld [vmem:[%s4586_s23 + $0xc] sm:$0xf]  ;;  %v312_v1 = vld [vmem:[%s4586_s23 + $0x10] sm:$0xf]  ;;  %v308_v2 = vld [vmem:[%s4586_s23] sm:$0xf] }
  0x10   : > { %v384_v3 = vshrl.u32 %v311_v0, 16  ;;  %v387_v4 = vshll.u32 %v311_v0, 16  ;;  %v393_v5 = vshll.u32 %v312_v1, 16  ;;  %v397_v6 = vshrl.u32 %v312_v1, 16  ;;  %v309_v7 = vld [vmem:[%s4586_s23 + $0x4] sm:$0xf] }
  0x11   : > { %v360_v8 = vshrl.u32 %v308_v2, 16  ;;  %v363_v9 = vshll.u32 %v308_v2, 16  ;;  %v369_v10 = vshll.u32 %v309_v7, 16  ;;  %v373_v11 = vshrl.u32 %v309_v7, 16  ;;  %v313_v12 = vld [vmem:[%s4586_s23 + $0x14] sm:$0x1] }
  0x12   : > { %v386_v13 = vrot.slane %v384_v3, 4  ;;  %v389_v14 = vrot.slane %v387_v4, 5  ;;  %v395_v15 = vrot.slane %v393_v5, 5  ;;  %v399_v16 = vrot.slane %v397_v6, 4  ;;  %v310_v17 = vld [vmem:[%s4586_s23 + $0x8] sm:$0x1] }
  0x13   : > { %v362_v18 = vrot.slane %v360_v8, 4  ;;  %v365_v19 = vrot.slane %v363_v9, 5  ;;  %v375_v20 = vrot.slane %v373_v11, 4  ;;  %v318_v21 = vld [vmem:[%s4586_s23 + $0x28] sm:$0xf]  ;;  %v403_v24 = vshll.u32 %v313_v12, 16 }
  0x14   : > { %v390_v22 = vor.u32 %v389_v14, %v386_v13  ;;  %v400_v23 = vor.u32 %v399_v16, %v395_v15  ;;  %v371_v27 = vrot.slane %v369_v10, 5  ;;  %v441_v28 = vshll.u32 %v318_v21, 16  ;;  %v317_v30 = vld [vmem:[%s4586_s23 + $0x24] sm:$0xf]  ;;  %v314_v35 = vld [vmem:[%s4586_s23 + $0x18] sm:$0xf] }
  0x15   : > { %v366_v26 = vor.u32 %v365_v19, %v362_v18  ;;  %v445_v29 = vshrl.u32 %v318_v21, 16  ;;  %v379_v32 = vshll.u32 %v310_v17, 16  ;;  %v405_v38 = vrot.slane %v403_v24, 5  ;;  %v315_v40 = vld [vmem:[%s4586_s23 + $0x1c] sm:$0xf] }
  0x16   : > { %v391_v31 = vrot.slane %v390_v22, 4  ;;  %v376_v34 = vor.u32 %v375_v20, %v371_v27  ;;  %v401_v37 = vrot.slane %v400_v23, 4  ;;  %v432_v39 = vshrl.u32 %v317_v30, 16  ;;  %v319_v42 = vld [vmem:[%s4586_s23 + $0x2c] sm:$0x1] }
  0x17   : > { %v367_v33 = vrot.slane %v366_v26, 4  ;;  %v4610_v43 = vrot.slane %v441_v28, 5  ;;  %v447_v44 = vrot.slane %v445_v29, 4  ;;  %v435_v45 = vshll.u32 %v317_v30, 16  ;;  %v323_v50 = vld [vmem:[%s4586_s23 + $0x3c] sm:$0xf] }
  0x18   : > { %v396_v36 = vsel %vm4597_vm2, %v391_v31, %v395_v15  ;;  %v381_v46 = vrot.slane %v379_v32, 5  ;;  %v434_v47 = vrot.slane %v432_v39, 4  ;;  %v408_v48 = vshrl.u32 %v314_v35, 16  ;;  %v321_v58 = vld [vmem:[%s4586_s23 + $0x34] sm:$0xf] }
  0x19   : > { %747 = vrot.lane.b32.xlu1 %v396_v36, %s4534_s24  ;;  %v372_v41 = vsel %vm4597_vm2, %v367_v33, %v371_v27  ;;  %v411_v49 = vshll.u32 %v314_v35, 16  ;;  %v377_v51 = vrot.slane %v376_v34, 4  ;;  %v437_v52 = vrot.slane %v435_v45, 5  ;;  %v316_v6 = vld [vmem:[%s4586_s23 + $0x20] sm:$0x1] }
  0x1a   : > { %743 = vrot.lane.b32.xlu0 %v372_v41, %s4534_s24  ;;  %v417_v53 = vshll.u32 %v315_v40, 16  ;;  %v421_v54 = vshrl.u32 %v315_v40, 16  ;;  %v451_v55 = vshll.u32 %v319_v42, 16  ;;  %v410_v56 = vrot.slane %v408_v48, 4  ;;  %v324_v15 = vld [vmem:[%s4586_s23 + $0x40] sm:$0xf] }
  0x1b   : > { %v413_v57 = vrot.slane %v411_v49, 5  ;;  %v448_v59 = vor.u32 %v447_v44, %v4610_v43  ;;  %v480_v61 = vshrl.u32 %v323_v50, 16  ;;  %v483_v62 = vshll.u32 %v323_v50, 16  ;;  %v322_v16 = vld [vmem:[%s4586_s23 + $0x38] sm:$0x1] }
  0x1c   : > { %v423_v60 = vrot.slane %v421_v54, 4  ;;  %v406_v63 = vsel %vm4597_vm2, %v401_v37, %v405_v38  ;;  %v438_v0 = vor.u32 %v437_v52, %v434_v47  ;;  %v419_v2 = vrot.slane %v417_v53, 5  ;;  %v327_v20 = vld [vmem:[%s4586_s23 + $0x4c] sm:$0xf]  ;;  %v320_v21 = vld [vmem:[%s4586_s23 + $0x30] sm:$0xf] }
  0x1d   : > { %v414_v1 = vor.u32 %v413_v57, %v410_v56  ;;  %v382_v3 = vsel %vm4597_vm2, %v377_v51, %v381_v46  ;;  %v465_v4 = vshll.u32 %v321_v58, 16  ;;  %v469_v5 = vshrl.u32 %v321_v58, 16  ;;  %v326_v24 = vld [vmem:[%s4586_s23 + $0x48] sm:$0xf]  ;;  %v332_v47 = vld [vmem:[%s4586_s23 + $0x60] sm:$0xf] }
  0x1e   : > { %v453_v7 = vrot.slane %v451_v55, 5  ;;  %v449_v9 = vrot.slane %v448_v59, 4  ;;  %v482_v10 = vrot.slane %v480_v61, 4  ;;  %v485_v11 = vrot.slane %v483_v62, 5  ;;  %v328_v49 = vld [vmem:[%s4586_s23 + $0x50] sm:$0x1] }
  0x1f   : > { %v415_v8 = vrot.slane %v414_v1, 4  ;;  %v424_v12 = vor.u32 %v423_v60, %v419_v2  ;;  %v439_v13 = vrot.slane %v438_v0, 4  ;;  %v427_v17 = vshll.u32 %v316_v6, 16  ;;  %v330_v53 = vld [vmem:[%s4586_s23 + $0x58] sm:$0xf] }
  0x20   : > { %v4628_v18 = vrot.slane %v465_v4, 5  ;;  %v471_v19 = vrot.slane %v469_v5, 4  ;;  %v454_v26 = vsel %vm4597_vm2, %v449_v9, %v453_v7  ;;  %v486_v27 = vor.u32 %v485_v11, %v482_v10  ;;  %v325_v58 = vld [vmem:[%s4586_s23 + $0x44] sm:$0x1]  ;;  %v336_v11 = vld [vmem:[%s4586_s23 + $0x70] sm:$0xf] }
  0x21   : > { %749 = vrot.lane.b32.xlu1 %v406_v63, %s4534_s24  ;;  %v420_v14 = vsel %vm4597_vm2, %v415_v8, %v419_v2  ;;  %v425_v22 = vrot.slane %v424_v12, 4  ;;  %v429_v23 = vrot.slane %v427_v17, 5  ;;  %v489_v28 = vshll.u32 %v324_v15, 16  ;;  %v329_v2 = vld [vmem:[%s4586_s23 + $0x54] sm:$0xf] }
  0x22   : > { %745 = vrot.lane.b32.xlu0 %v382_v3, %s4534_s24  ;;  %751 = vrot.lane.b32.xlu2 %v420_v14, %s4534_s24  ;;  %v475_v29 = vshll.u32 %v322_v16, 16  ;;  %v444_v30 = vsel %vm4597_vm2, %v439_v13, %v4610_v43  ;;  %v513_v31 = vshll.u32 %v327_v20, 16  ;;  %v517_v32 = vshrl.u32 %v327_v20, 16  ;;  %v333_v6 = vld [vmem:[%s4586_s23 + $0x64] sm:$0xf] }
  0x23   : > { %v456_v33 = vshrl.u32 %v320_v21, 16  ;;  %v472_v34 = vor.u32 %v471_v19, %v4628_v18  ;;  %v504_v35 = vshrl.u32 %v326_v24, 16  ;;  %v507_v36 = vshll.u32 %v326_v24, 16  ;;  %v335_v20 = vld [vmem:[%s4586_s23 + $0x6c] sm:$0xf] }
  0x24   : > { %v459_v37 = vshll.u32 %v320_v21, 16  ;;  %v493_v38 = vshrl.u32 %v324_v15, 16  ;;  %v430_v39 = vsel %vm4597_vm2, %v425_v22, %v429_v23  ;;  %v491_v41 = vrot.slane %v489_v28, 5  ;;  %v331_v15 = vld [vmem:[%s4586_s23 + $0x5c] sm:$0x1] }
  0x25   : > { %v458_v40 = vrot.slane %v456_v33, 4  ;;  %v487_v43 = vrot.slane %v486_v27, 4  ;;  %v477_v44 = vrot.slane %v475_v29, 5  ;;  %v4643_v45 = vrot.slane %v513_v31, 5 }
  0x26   : > { %v461_v42 = vrot.slane %v459_v37, 5  ;;  %v519_v46 = vrot.slane %v517_v32, 4  ;;  %v473_v48 = vrot.slane %v472_v34, 4  ;;  %v506_v50 = vrot.slane %v504_v35, 4 }
  0x27   : > { %v509_v51 = vrot.slane %v507_v36, 5  ;;  %v495_v54 = vrot.slane %v493_v38, 4  ;;  %v552_v56 = vshrl.u32 %v332_v47, 16  ;;  %v555_v57 = vshll.u32 %v332_v47, 16  ;;  %v339_v47 = vld [vmem:[%s4586_s23 + $0x7c] sm:$0xf] }
  0x28   : > { %v462_v52 = vor.u32 %v461_v42, %v458_v40  ;;  %v492_v59 = vsel %vm4597_vm2, %v487_v43, %v491_v41  ;;  %v520_v60 = vor.u32 %v519_v46, %v4643_v45  ;;  %v523_v61 = vshll.u32 %v328_v49, 16  ;;  %v341_v42 = vld [vmem:[%s4586_s23 + $0x84] sm:$0xf]  ;;  %v334_v49 = vld [vmem:[%s4586_s23 + $0x68] sm:$0x1] }
  0x29   : > { %757 = vrot.lane.b32.xlu1 %v454_v26, %s4534_s24  ;;  %v478_v62 = vsel %vm4597_vm2, %v473_v48, %v477_v44  ;;  %v510_v63 = vor.u32 %v509_v51, %v506_v50  ;;  %v537_v0 = vshll.u32 %v330_v53, 16  ;;  %v541_v1 = vshrl.u32 %v330_v53, 16 }
  0x2a   : > { %755 = vrot.lane.b32.xlu0 %v444_v30, %s4534_s24  ;;  %753 = vrot.lane.b32.xlu2 %v430_v39, %s4534_s24  ;;  %v463_v55 = vrot.slane %v462_v52, 4  ;;  %v496_v4 = vor.u32 %v495_v54, %v491_v41  ;;  %v499_v5 = vshll.u32 %v325_v58, 16  ;;  %v554_v7 = vrot.slane %v552_v56, 4  ;;  %v337_v41 = vld [vmem:[%s4586_s23 + $0x74] sm:$0x1] }
  0x2b   : > { %v557_v8 = vrot.slane %v555_v57, 5  ;;  %v521_v9 = vrot.slane %v520_v60, 4  ;;  %v525_v10 = vrot.slane %v523_v61, 5  ;;  %v528_v12 = vshrl.u32 %v329_v2, 16  ;;  %v338_v54 = vld [vmem:[%s4586_s23 + $0x78] sm:$0xf] }
  0x2c   : > { %v468_v3 = vsel %vm4597_vm2, %v463_v55, %v4628_v18  ;;  %v531_v13 = vshll.u32 %v329_v2, 16  ;;  %v511_v14 = vrot.slane %v510_v63, 4  ;;  %v4665_v16 = vrot.slane %v537_v0, 5 }
  0x2d   : > { %v543_v17 = vrot.slane %v541_v1, 4  ;;  %v497_v18 = vrot.slane %v496_v4, 4  ;;  %v501_v19 = vrot.slane %v499_v5, 5  ;;  %v530_v21 = vrot.slane %v528_v12, 4  ;;  %v342_v4 = vld [vmem:[%s4586_s23 + $0x88] sm:$0xf] }
  0x2e   : > { %v533_v22 = vrot.slane %v531_v13, 5  ;;  %v558_v23 = vor.u32 %v557_v8, %v554_v7  ;;  %v561_v24 = vshll.u32 %v333_v6, 16  ;;  %v585_v26 = vshll.u32 %v336_v11, 16 }
  0x2f   : > { %v589_v27 = vshrl.u32 %v336_v11, 16  ;;  %v526_v28 = vsel %vm4597_vm2, %v521_v9, %v525_v10  ;;  %v547_v29 = vshll.u32 %v331_v15, 16  ;;  %v516_v30 = vsel %vm4597_vm2, %v511_v14, %v4643_v45  ;;  %v345_v9 = vld [vmem:[%s4586_s23 + $0x94] sm:$0xf]  ;;  %v340_v11 = vld [vmem:[%s4586_s23 + $0x80] sm:$0x1] }
  0x30   : > { %v544_v31 = vor.u32 %v543_v17, %v4665_v16  ;;  %v576_v32 = vshrl.u32 %v335_v20, 16  ;;  %v579_v33 = vshll.u32 %v335_v20, 16  ;;  %v565_v34 = vshrl.u32 %v333_v6, 16  ;;  %v344_v14 = vld [vmem:[%s4586_s23 + $0x90] sm:$0xf] }
  0x31   : > { %763 = vrot.lane.b32.xlu1 %v492_v59, %s4534_s24  ;;  %v502_v35 = vsel %vm4597_vm2, %v497_v18, %v501_v19  ;;  %v534_v36 = vor.u32 %v533_v22, %v530_v21  ;;  %v559_v37 = vrot.slane %v558_v23, 4  ;;  %v563_v38 = vrot.slane %v561_v24, 5 }
  0x32   : > { %761 = vrot.lane.b32.xlu0 %v478_v62, %s4534_s24  ;;  %759 = vrot.lane.b32.xlu2 %v468_v3, %s4534_s24  ;;  %v4677_v39 = vrot.slane %v585_v26, 5  ;;  %v591_v40 = vrot.slane %v589_v27, 4  ;;  %v545_v43 = vrot.slane %v544_v31, 4  ;;  %v549_v44 = vrot.slane %v547_v29, 5 }
  0x33   : > { %v578_v45 = vrot.slane %v576_v32, 4  ;;  %v581_v46 = vrot.slane %v579_v33, 5  ;;  %v535_v48 = vrot.slane %v534_v36, 4  ;;  %v567_v50 = vrot.slane %v565_v34, 4 }
  0x34   : > { %v564_v51 = vsel %vm4597_vm2, %v559_v37, %v563_v38  ;;  %v592_v52 = vor.u32 %v591_v40, %v4677_v39  ;;  %v595_v53 = vshll.u32 %v337_v41, 16  ;;  %v624_v55 = vshrl.u32 %v341_v42, 16  ;;  %v346_v37 = vld [vmem:[%s4586_s23 + $0x98] sm:$0x1]  ;;  %v350_v40 = vld [vmem:[%s4586_s23 + $0xa8] sm:$0xf] }
  0x35   : > { %v627_v56 = vshll.u32 %v341_v42, 16  ;;  %v609_v57 = vshll.u32 %v339_v47, 16  ;;  %v613_v58 = vshrl.u32 %v339_v47, 16  ;;  %v550_v59 = vsel %vm4597_vm2, %v545_v43, %v549_v44  ;;  %v348_v42 = vld [vmem:[%s4586_s23 + $0xa0] sm:$0xf] }
  0x36   : > { %v582_v60 = vor.u32 %v581_v46, %v578_v45  ;;  %v571_v61 = vshll.u32 %v334_v49, 16  ;;  %v540_v62 = vsel %vm4597_vm2, %v535_v48, %v4665_v16  ;;  %v568_v63 = vor.u32 %v567_v50, %v563_v38  ;;  %v343_v43 = vld [vmem:[%s4586_s23 + $0x8c] sm:$0x1]  ;;  %v347_v47 = vld [vmem:[%s4586_s23 + $0x9c] sm:$0xf] }
  0x37   : > { %v600_v0 = vshrl.u32 %v338_v54, 16  ;;  %v603_v1 = vshll.u32 %v338_v54, 16  ;;  %v593_v2 = vrot.slane %v592_v52, 4  ;;  %v597_v3 = vrot.slane %v595_v53, 5 }
  0x38   : > { %v626_v5 = vrot.slane %v624_v55, 4  ;;  %v629_v6 = vrot.slane %v627_v56, 5  ;;  %v4697_v7 = vrot.slane %v609_v57, 5  ;;  %v615_v8 = vrot.slane %v613_v58, 4 }
  0x39   : > { %769 = vrot.lane.b32.xlu1 %v526_v28, %s4534_s24  ;;  %v583_v10 = vrot.slane %v582_v60, 4  ;;  %v569_v12 = vrot.slane %v568_v63, 4  ;;  %v573_v13 = vrot.slane %v571_v61, 5  ;;  %v602_v15 = vrot.slane %v600_v0, 4 }
  0x3a   : > { %767 = vrot.lane.b32.xlu0 %v516_v30, %s4534_s24  ;;  %765 = vrot.lane.b32.xlu2 %v502_v35, %s4534_s24  ;;  %v605_v16 = vrot.slane %v603_v1, 5  ;;  %v633_v17 = vshll.u32 %v342_v4, 16  ;;  %v657_v18 = vshll.u32 %v345_v9, 16  ;;  %v661_v19 = vshrl.u32 %v345_v9, 16  ;;  %v349_v1 = vld [vmem:[%s4586_s23 + $0xa4] sm:$0x1] }
  0x3b   : > { %v598_v20 = vsel %vm4597_vm2, %v593_v2, %v597_v3  ;;  %v630_v21 = vor.u32 %v629_v6, %v626_v5  ;;  %v616_v22 = vor.u32 %v615_v8, %v4697_v7  ;;  %v619_v23 = vshll.u32 %v340_v11, 16  ;;  %v354_v5 = vld [vmem:[%s4586_s23 + $0xb8] sm:$0xf]  ;;  %v353_v8 = vld [vmem:[%s4586_s23 + $0xb4] sm:$0xf] }
  0x3c   : > { %v588_v24 = vsel %vm4597_vm2, %v583_v10, %v4677_v39  ;;  %v648_v26 = vshrl.u32 %v344_v14, 16  ;;  %v651_v27 = vshll.u32 %v344_v14, 16  ;;  %v637_v28 = vshrl.u32 %v342_v4, 16 }
  0x3d   : > { %v574_v29 = vsel %vm4597_vm2, %v569_v12, %v573_v13  ;;  %v606_v30 = vor.u32 %v605_v16, %v602_v15  ;;  %v4712_v31 = vrot.slane %v657_v18, 5  ;;  %v663_v32 = vrot.slane %v661_v19, 4 }
  0x3e   : > { %v631_v33 = vrot.slane %v630_v21, 4  ;;  %v635_v34 = vrot.slane %v633_v17, 5  ;;  %v617_v35 = vrot.slane %v616_v22, 4  ;;  %v621_v36 = vrot.slane %v619_v23, 5 }
  0x3f   : > { %v650_v38 = vrot.slane %v648_v26, 4  ;;  %v653_v39 = vrot.slane %v651_v27, 5  ;;  %v607_v41 = vrot.slane %v606_v30, 4  ;;  %v639_v44 = vrot.slane %v637_v28, 4 }
  0x40   : > { %v664_v45 = vor.u32 %v663_v32, %v4712_v31  ;;  %v667_v46 = vshll.u32 %v346_v37, 16  ;;  %v636_v48 = vsel %vm4597_vm2, %v631_v33, %v635_v34  ;;  %v622_v49 = vsel %vm4597_vm2, %v617_v35, %v621_v36  ;;  %v352_v36 = vld [vmem:[%s4586_s23 + $0xb0] sm:$0x1] }
  0x41   : > { %775 = vrot.lane.b32.xlu1 %v564_v51, %s4534_s24  ;;  %v696_v50 = vshrl.u32 %v350_v40, 16  ;;  %v699_v51 = vshll.u32 %v350_v40, 16  ;;  %v654_v52 = vor.u32 %v653_v39, %v650_v38  ;;  %v681_v53 = vshll.u32 %v348_v42, 16 }
  0x42   : > { %773 = vrot.lane.b32.xlu0 %v550_v59, %s4534_s24  ;;  %771 = vrot.lane.b32.xlu2 %v540_v62, %s4534_s24  ;;  %v685_v54 = vshrl.u32 %v348_v42, 16  ;;  %v643_v55 = vshll.u32 %v343_v43, 16  ;;  %v612_v56 = vsel %vm4597_vm2, %v607_v41, %v4697_v7  ;;  %v640_v57 = vor.u32 %v639_v44, %v635_v34  ;;  %v351_v62 = vld [vmem:[%s4586_s23 + $0xac] sm:$0xf] }
  0x43   : > { %v672_v58 = vshrl.u32 %v347_v47, 16  ;;  %v675_v59 = vshll.u32 %v347_v47, 16  ;;  %v665_v60 = vrot.slane %v664_v45, 4  ;;  %v669_v61 = vrot.slane %v667_v46, 5 }
  0x44   : > { %v698_v63 = vrot.slane %v696_v50, 4  ;;  %v701_v0 = vrot.slane %v699_v51, 5  ;;  %v655_v2 = vrot.slane %v654_v52, 4  ;;  %v683_v3 = vrot.slane %v681_v53, 5  ;;  %v875_v51 = vld [vmem:[%s4586_s23 + $0xc] sm:$0xe] }
  0x45   : > { %v687_v4 = vrot.slane %v685_v54, 4  ;;  %v641_v6 = vrot.slane %v640_v57, 4  ;;  %v645_v7 = vrot.slane %v643_v55, 5  ;;  %v674_v9 = vrot.slane %v672_v58, 4  ;;  %v876_v53 = vld [vmem:[%s4586_s23 + $0x10] sm:$0xf] }
  0x46   : > { %v677_v10 = vrot.slane %v675_v59, 5  ;;  %v670_v11 = vsel %vm4597_vm2, %v665_v60, %v669_v61  ;;  %v705_v12 = vshll.u32 %v351_v62, 16  ;;  %v702_v13 = vor.u32 %v701_v0, %v698_v63  ;;  %v874_v54 = vld [vmem:[%s4586_s23 + $0x8] sm:$0x1]  ;;  %v872_v61 = vld [vmem:[%s4586_s23] sm:$0xe] }
  0x47   : > { %v691_v14 = vshll.u32 %v349_v1, 16  ;;  %v729_v15 = vshll.u32 %v354_v5, 16  ;;  %v733_v16 = vshrl.u32 %v354_v5, 16  ;;  %v660_v17 = vsel %vm4597_vm2, %v655_v2, %v4712_v31  ;;  %v355_v31 = vld [vmem:[%s4586_s23 + $0xbc] sm:$0x1] }
  0x48   : > { %v688_v18 = vor.u32 %v687_v4, %v683_v3  ;;  %v720_v19 = vshrl.u32 %v353_v8, 16  ;;  %v709_v21 = vshrl.u32 %v351_v62, 16  ;;  %v646_v22 = vsel %vm4597_vm2, %v641_v6, %v645_v7  ;;  %v879_v63 = vld [vmem:[%s4586_s23 + $0x1c] sm:$0xf]  ;;  %v247_v0 = vld [vmem:[%s4586_s23 + $0x18] sm:$0xf] }
  0x49   : > { %781 = vrot.lane.b32.xlu1 %v598_v20, %s4534_s24  ;;  %v723_v20 = vshll.u32 %v353_v8, 16  ;;  %v678_v23 = vor.u32 %v677_v10, %v674_v9  ;;  %v707_v26 = vrot.slane %v705_v12, 5  ;;  %v731_v27 = vrot.slane %v729_v15, 5  ;;  %280 = vst.msk [vmem:[#allocation2 + $0x10] sm:$0xf] %vm275_vm5, %v247_v0 }
  0x4a   : > { %779 = vrot.lane.b32.xlu0 %v588_v24, %s4534_s24  ;;  %777 = vrot.lane.b32.xlu2 %v574_v29, %s4534_s24  ;;  %v703_v24 = vrot.slane %v702_v13, 4  ;;  %v735_v28 = vrot.slane %v733_v16, 4  ;;  %v689_v29 = vrot.slane %v688_v18, 4  ;;  %v693_v30 = vrot.slane %v691_v14, 5  ;;  %v245_v2 = vld [vmem:[%s4586_s23 + $0xc] sm:$0xf] }
  0x4b   : > { %v722_v32 = vrot.slane %v720_v19, 4  ;;  %v725_v33 = vrot.slane %v723_v20, 5  ;;  %v679_v34 = vrot.slane %v678_v23, 4  ;;  %v711_v35 = vrot.slane %v709_v21, 4  ;;  %278 = vst.msk [vmem:[#allocation2 + $0x8] sm:$0xf] %vm275_vm5, %v245_v2 }
  0x4c   : > { %v708_v37 = vsel %vm4597_vm2, %v703_v24, %v707_v26  ;;  %v736_v38 = vor.u32 %v735_v28, %v731_v27  ;;  %v739_v39 = vshll.u32 %v355_v31, 16  ;;  %v694_v40 = vsel %vm4597_vm2, %v689_v29, %v693_v30  ;;  %v880_v6 = vld [vmem:[%s4586_s23 + $0x20] sm:$0x1]  ;;  %v878_v9 = vld [vmem:[%s4586_s23 + $0x18] sm:$0xe] }
  0x4d   : > { %v726_v41 = vor.u32 %v725_v33, %v722_v32  ;;  %v684_v42 = vsel %vm4597_vm2, %v679_v34, %v683_v3  ;;  %v712_v43 = vor.u32 %v711_v35, %v707_v26  ;;  %v715_v44 = vshll.u32 %v352_v36, 16  ;;  %v243_v3 = vld [vmem:[%s4586_s23] sm:$0xf]  ;;  %v877_v12 = vld [vmem:[%s4586_s23 + $0x14] sm:$0x1] }
  0x4e   : > { %v737_v45 = vrot.slane %v736_v38, 4  ;;  %v741_v46 = vrot.slane %v739_v39, 5  ;;  %v3992_v58 = vrot.slane %v875_v51, 9  ;;  %v980_v59 = vrot.slane %v876_v53, 5  ;;  %276 = vst.msk [vmem:[#allocation2] sm:$0xf] %vm275_vm5, %v243_v3 }
  0x4f   : > { %v727_v47 = vrot.slane %v726_v41, 4  ;;  %v717_v50 = vrot.slane %v715_v44, 5  ;;  %v976_v60 = vrot.slane %v874_v54, 5  ;;  %v3991_v4 = vrot.slane %v872_v61, 9  ;;  %v882_v15 = vld [vmem:[%s4586_s23 + $0x28] sm:$0xf] }
  0x50   : > { %v742_v52 = vsel %vm4597_vm2, %v737_v45, %v741_v46  ;;  %v981_v5 = vsel %vm4772_vm6, %v3992_v58, %v980_v59  ;;  %v987_v7 = vrot.slane %v879_v63, 5  ;;  %v3993_v14 = vrot.slane %v878_v9, 9  ;;  %v248_v16 = vld [vmem:[%s4586_s23 + $0x1c] sm:$0xf]  ;;  %v244_v18 = vld [vmem:[%s4586_s23 + $0x4] sm:$0xf] }
  0x51   : > { %787 = vrot.lane.b32.xlu1 %v636_v48, %s4534_s24  ;;  %v873_v48 = vld [vmem:[%s4586_s23 + $0x4] sm:$0xf]  ;;  %281 = vst.msk [vmem:[#allocation2 + $0x14] sm:$0xf] %vm275_vm5, %v248_v16  ;;  %v982_v19 = vrot.slane %v980_v59, 4  ;;  %v983_v20 = vrot.slane %v877_v12, 5 }
  0x52   : > { %785 = vrot.lane.b32.xlu0 %v622_v49, %s4534_s24  ;;  %783 = vrot.lane.b32.xlu2 %v612_v56, %s4534_s24  ;;  %v713_v49 = vrot.slane %v712_v43, 4  ;;  %v973_v55 = vrot.slane %v873_v48, 5  ;;  %v732_v56 = vsel %vm4597_vm2, %v727_v47, %v731_v27  ;;  %v989_v13 = vrot.slane %v987_v7, 4  ;;  %277 = vst.msk [vmem:[#allocation2 + $0x4] sm:$0xf] %vm275_vm5, %v244_v18 }
  0x53   : > { %v885_v23 = vld [vmem:[%s4586_s23 + $0x34] sm:$0xf]  ;;  %v994_v24 = vrot.slane %v882_v15, 5  ;;  %v988_v26 = vsel %vm4772_vm6, %v3993_v14, %v987_v7  ;;  %v883_v27 = vld [vmem:[%s4586_s23 + $0x2c] sm:$0x1]  ;;  %v984_v28 = vsel %vm4772_vm6, %v982_v19, %v983_v20 }
  0x54   : > { %v718_v57 = vsel %vm4597_vm2, %v713_v49, %v717_v50  ;;  %v975_v62 = vrot.slane %v973_v55, 4  ;;  %v974_v10 = vsel %vm4772_vm6, %v3991_v4, %v973_v55  ;;  %v1001_v30 = vrot.slane %v885_v23, 5  ;;  %v881_v31 = vld [vmem:[%s4586_s23 + $0x24] sm:$0xe]  ;;  %v888_v34 = vld [vmem:[%s4586_s23 + $0x40] sm:$0xf] }
  0x55   : > { %v996_v32 = vrot.slane %v994_v24, 4  ;;  %v997_v33 = vrot.slane %v883_v27, 5  ;;  %v251_v35 = vld [vmem:[%s4586_s23 + $0x30] sm:$0xf]  ;;  %v250_v36 = vld [vmem:[%s4586_s23 + $0x28] sm:$0xf] }
  0x56   : > { %v977_v8 = vsel %vm4772_vm6, %v975_v62, %v976_v60  ;;  %284 = vst.msk [vmem:[#allocation2 + $0x20] sm:$0xf] %vm275_vm5, %v251_v35  ;;  %v3994_v38 = vrot.slane %v881_v31, 9  ;;  %v1008_v41 = vrot.slane %v888_v34, 5  ;;  %v889_v43 = vld [vmem:[%s4586_s23 + $0x44] sm:$0x1] }
  0x57   : > { %283 = vst.msk [vmem:[#allocation2 + $0x1c] sm:$0xf] %vm275_vm5, %v250_v36  ;;  %v887_v44 = vld [vmem:[%s4586_s23 + $0x3c] sm:$0xe]  ;;  %v886_v46 = vld [vmem:[%s4586_s23 + $0x38] sm:$0x1] }
  0x58   : > { %v995_v45 = vsel %vm4772_vm6, %v3994_v38, %v994_v24  ;;  %v1010_v47 = vrot.slane %v1008_v41, 4  ;;  %v1011_v48 = vrot.slane %v889_v43, 5  ;;  %v3996_v49 = vrot.slane %v887_v44, 9  ;;  %v254_v50 = vld [vmem:[%s4586_s23 + $0x40] sm:$0xf] }
  0x59   : > { %793 = vrot.lane.b32.xlu1 %v670_v11, %s4534_s24  ;;  %v990_v11 = vrot.slane %v880_v6, 5  ;;  %287 = vst.msk [vmem:[#allocation2 + $0x2c] sm:$0xf] %vm275_vm5, %v254_v50  ;;  %v253_v51 = vld [vmem:[%s4586_s23 + $0x3c] sm:$0xf]  ;;  %v1003_v54 = vrot.slane %v1001_v30, 4 }
  0x5a   : > { %791 = vrot.lane.b32.xlu0 %v660_v17, %s4534_s24  ;;  %789 = vrot.lane.b32.xlu2 %v646_v22, %s4534_s24  ;;  %v246_v17 = vld [vmem:[%s4586_s23 + $0x10] sm:$0xf]  ;;  %v891_v53 = vld [vmem:[%s4586_s23 + $0x4c] sm:$0xf]  ;;  %v1004_v55 = vrot.slane %v886_v46, 5  ;;  %v1009_v58 = vsel %vm4772_vm6, %v3996_v49, %v1008_v41 }
  0x5b   : > { %279 = vst.msk [vmem:[#allocation2 + $0xc] sm:$0xf] %vm275_vm5, %v246_v17  ;;  %v991_v21 = vsel %vm4772_vm6, %v989_v13, %v990_v11  ;;  %v884_v22 = vld [vmem:[%s4586_s23 + $0x30] sm:$0xe]  ;;  %v893_v59 = vld [vmem:[%s4586_s23 + $0x54] sm:$0xe] }
  0x5c   : > { %v3995_v29 = vrot.slane %v884_v22, 9  ;;  %286 = vst.msk [vmem:[#allocation2 + $0x28] sm:$0xf] %vm275_vm5, %v253_v51  ;;  %v894_v60 = vld [vmem:[%s4586_s23 + $0x58] sm:$0xf]  ;;  %v1015_v61 = vrot.slane %v891_v53, 5  ;;  %v1005_v63 = vsel %vm4772_vm6, %v1003_v54, %v1004_v55 }
  0x5d   : > { %v892_v62 = vld [vmem:[%s4586_s23 + $0x50] sm:$0x1]  ;;  %v890_v0 = vld [vmem:[%s4586_s23 + $0x48] sm:$0xe]  ;;  %v3998_v2 = vrot.slane %v893_v59, 9  ;;  %v1022_v3 = vrot.slane %v894_v60, 5 }
  0x5e   : > { %v257_v4 = vld [vmem:[%s4586_s23 + $0x54] sm:$0xf]  ;;  %v1017_v6 = vrot.slane %v1015_v61, 4  ;;  %v1018_v7 = vrot.slane %v892_v62, 5  ;;  %v256_v11 = vld [vmem:[%s4586_s23 + $0x4c] sm:$0xf] }
  0x5f   : > { %290 = vst.msk [vmem:[#allocation2 + $0x38] sm:$0xf] %vm275_vm5, %v257_v4  ;;  %v255_v13 = vld [vmem:[%s4586_s23 + $0x48] sm:$0xf]  ;;  %v1023_v14 = vsel %vm4772_vm6, %v3998_v2, %v1022_v3  ;;  %v896_v18 = vld [vmem:[%s4586_s23 + $0x60] sm:$0xe] }
  0x60   : > { %v1019_v16 = vsel %vm4772_vm6, %v1017_v6, %v1018_v7  ;;  %v898_v17 = vld [vmem:[%s4586_s23 + $0x68] sm:$0x1]  ;;  %289 = vst.msk [vmem:[#allocation2 + $0x34] sm:$0xf] %vm275_vm5, %v256_v11  ;;  %v895_v20 = vld [vmem:[%s4586_s23 + $0x5c] sm:$0x1] }
  0x61   : > { %799 = vrot.lane.b32.xlu1 %v708_v37, %s4534_s24  ;;  %v249_v37 = vld [vmem:[%s4586_s23 + $0x24] sm:$0xf]  ;;  %288 = vst.msk [vmem:[#allocation2 + $0x30] sm:$0xf] %vm275_vm5, %v255_v13  ;;  %v1032_v22 = vrot.slane %v898_v17, 5 }
  0x62   : > { %797 = vrot.lane.b32.xlu0 %v694_v40, %s4534_s24  ;;  %795 = vrot.lane.b32.xlu2 %v684_v42, %s4534_s24  ;;  %282 = vst.msk [vmem:[#allocation2 + $0x18] sm:$0xf] %vm275_vm5, %v249_v37  ;;  %v1002_v40 = vsel %vm4772_vm6, %v3995_v29, %v1001_v30  ;;  %v998_v42 = vsel %vm4772_vm6, %v996_v32, %v997_v33  ;;  %v260_v23 = vld [vmem:[%s4586_s23 + $0x64] sm:$0xf]  ;;  %v900_v27 = vld [vmem:[%s4586_s23 + $0x70] sm:$0xf] }
  0x63   : > { %293 = vst.msk [vmem:[#allocation2 + $0x44] sm:$0xf] %vm275_vm5, %v260_v23  ;;  %v1024_v29 = vrot.slane %v1022_v3, 4  ;;  %v1025_v30 = vrot.slane %v895_v20, 5  ;;  %v259_v31 = vld [vmem:[%s4586_s23 + $0x60] sm:$0xf] }
  0x64   : > { %v258_v33 = vld [vmem:[%s4586_s23 + $0x58] sm:$0xf]  ;;  %v903_v37 = vld [vmem:[%s4586_s23 + $0x7c] sm:$0xf]  ;;  %v1036_v38 = vrot.slane %v900_v27, 5 }
  0x65   : > { %v902_v35 = vld [vmem:[%s4586_s23 + $0x78] sm:$0xe]  ;;  %292 = vst.msk [vmem:[#allocation2 + $0x40] sm:$0xf] %vm275_vm5, %v259_v31  ;;  %v899_v41 = vld [vmem:[%s4586_s23 + $0x6c] sm:$0xe] }
  0x66   : > { %291 = vst.msk [vmem:[#allocation2 + $0x3c] sm:$0xf] %vm275_vm5, %v258_v33  ;;  %v1043_v43 = vrot.slane %v903_v37, 5  ;;  %v263_v44 = vld [vmem:[%s4586_s23 + $0x78] sm:$0xf]  ;;  %v1038_v46 = vrot.slane %v1036_v38, 4 }
  0x67   : > { %296 = vst.msk [vmem:[#allocation2 + $0x50] sm:$0xf] %vm275_vm5, %v263_v44  ;;  %v4000_v50 = vrot.slane %v899_v41, 9  ;;  %v262_v51 = vld [vmem:[%s4586_s23 + $0x70] sm:$0xf] }
  0x68   : > { %v261_v53 = vld [vmem:[%s4586_s23 + $0x6c] sm:$0xf]  ;;  %295 = vst.msk [vmem:[#allocation2 + $0x4c] sm:$0xf] %vm275_vm5, %v262_v51  ;;  %v904_v60 = vld [vmem:[%s4586_s23 + $0x80] sm:$0x1] }
  0x69   : > { %805 = vrot.lane.b32.xlu1 %v742_v52, %s4534_s24  ;;  %v252_v52 = vld [vmem:[%s4586_s23 + $0x34] sm:$0xf]  ;;  %v1037_v59 = vsel %vm4772_vm6, %v4000_v50, %v1036_v38  ;;  %294 = vst.msk [vmem:[#allocation2 + $0x48] sm:$0xf] %vm275_vm5, %v261_v53  ;;  %v1046_v6 = vrot.slane %v904_v60, 5 }
  0x6a   : > { %803 = vrot.lane.b32.xlu0 %v732_v56, %s4534_s24  ;;  %801 = vrot.lane.b32.xlu2 %v718_v57, %s4534_s24  ;;  %285 = vst.msk [vmem:[#allocation2 + $0x24] sm:$0xf] %vm275_vm5, %v252_v52  ;;  %v1012_v57 = vsel %vm4772_vm6, %v1010_v47, %v1011_v48  ;;  %v906_v48 = vld [vmem:[%s4586_s23 + $0x88] sm:$0xf]  ;;  %v909_v3 = vld [vmem:[%s4586_s23 + $0x94] sm:$0xf] }
  0x6b   : > { %v1050_v55 = vrot.slane %v906_v48, 5  ;;  %v265_v7 = vld [vmem:[%s4586_s23 + $0x84] sm:$0xf]  ;;  %v911_v11 = vld [vmem:[%s4586_s23 + $0x9c] sm:$0xe] }
  0x6c   : > { %v912_v13 = vld [vmem:[%s4586_s23 + $0xa0] sm:$0xf]  ;;  %298 = vst.msk [vmem:[#allocation2 + $0x58] sm:$0xf] %vm275_vm5, %v265_v7  ;;  %v908_v17 = vld [vmem:[%s4586_s23 + $0x90] sm:$0xe] }
  0x6d   : > { %v269_v20 = vld [vmem:[%s4586_s23 + $0x9c] sm:$0xf]  ;;  %v4003_v27 = vrot.slane %v908_v17, 9  ;;  %v913_v37 = vld [vmem:[%s4586_s23 + $0xa4] sm:$0x1] }
  0x6e   : > { %302 = vst.msk [vmem:[#allocation2 + $0x68] sm:$0xf] %vm275_vm5, %v269_v20  ;;  %v919_v53 = vld [vmem:[%s4586_s23 + $0xbc] sm:$0x1] }
  0x6f   : > { %v4010_v7 = vld [vmem:[%s4586_s23 + $0x1c] sm:$0xf] }
  0x70   : > { %v4015_v20 = vld [vmem:[%s4586_s23 + $0x3c] sm:$0xf] }
  0x71   : > { %1087 = vrot.lane.b32.xlu1 %v981_v5, %s4535_s25 }
  0x72   : > { %1085 = vrot.lane.b32.xlu0 %v977_v8, %s4535_s25  ;;  %1083 = vrot.lane.b32.xlu2 %v974_v10, %s4535_s25  ;;  %v897_v8 = vld [vmem:[%s4586_s23 + $0x64] sm:$0xf]  ;;  %v3997_v10 = vrot.slane %v890_v0, 9 }
  0x73   : > { %v1029_v15 = vrot.slane %v897_v8, 5 }
  0x74   : > { %v1016_v19 = vsel %vm4772_vm6, %v3997_v10, %v1015_v61  ;;  %v1052_v61 = vrot.slane %v1050_v55, 4 }
  0x79   : > { %1093 = vrot.lane.b32.xlu1 %v991_v21, %s4535_s25  ;;  %v1031_v21 = vrot.slane %v1029_v15, 4 }
  0x7a   : > { %1091 = vrot.lane.b32.xlu0 %v988_v26, %s4535_s25  ;;  %1089 = vrot.lane.b32.xlu2 %v984_v28, %s4535_s25  ;;  %v3999_v26 = vrot.slane %v896_v18, 9  ;;  %v4004_v18 = vrot.slane %v911_v11, 9 }
  0x7b   : > { %v1033_v34 = vsel %vm4772_vm6, %v1031_v21, %v1032_v22 }
  0x7c   : > { %v752_v39 = vpop.permute.xlu2 %751  ;;  %v1030_v36 = vsel %vm4772_vm6, %v3999_v26, %v1029_v15  ;;  %v910_v15 = vld [vmem:[%s4586_s23 + $0x98] sm:$0x1] }
  0x7d   : > { %844 = vst.msk [vmem:[#allocation2 + $0x10] sm:$0xf] %vm839_vm7, %v752_v39  ;;  %v901_v39 = vld [vmem:[%s4586_s23 + $0x74] sm:$0x1]  ;;  %v1060_v23 = vrot.slane %v910_v15, 5 }
  0x7e   : > { %v1039_v47 = vrot.slane %v901_v39, 5  ;;  %v4011_v15 = vld [vmem:[%s4586_s23 + $0x24] sm:$0xf] }
  0x81   : > { %1099 = vrot.lane.b32.xlu1 %v1002_v40, %s4535_s25  ;;  %v1026_v40 = vsel %vm4772_vm6, %v1024_v29, %v1025_v30  ;;  %v267_v30 = vld [vmem:[%s4586_s23 + $0x90] sm:$0xf] }
  0x82   : > { %1097 = vrot.lane.b32.xlu0 %v998_v42, %s4535_s25  ;;  %1095 = vrot.lane.b32.xlu2 %v995_v45, %s4535_s25  ;;  %v4001_v42 = vrot.slane %v902_v35, 9  ;;  %v914_v35 = vld [vmem:[%s4586_s23 + $0xa8] sm:$0xe]  ;;  %300 = vst.msk [vmem:[#allocation2 + $0x60] sm:$0xf] %vm275_vm5, %v267_v30 }
  0x84   : > { %v754_v56 = vpop.permute.xlu2 %753  ;;  %v1044_v54 = vsel %vm4772_vm6, %v4001_v42, %v1043_v43  ;;  %v4005_v42 = vrot.slane %v914_v35, 9 }
  0x85   : > { %845 = vst.msk [vmem:[#allocation2 + $0x14] sm:$0xf] %vm839_vm7, %v754_v56  ;;  %v1040_v56 = vsel %vm4772_vm6, %v1038_v46, %v1039_v47  ;;  %v1067_v46 = vrot.slane %v913_v37, 5  ;;  %v271_v47 = vld [vmem:[%s4586_s23 + $0xa8] sm:$0xf] }
  0x86   : > { %304 = vst.msk [vmem:[#allocation2 + $0x70] sm:$0xf] %vm275_vm5, %v271_v47 }
  0x89   : > { %1105 = vrot.lane.b32.xlu1 %v1012_v57, %s4535_s25  ;;  %v907_v57 = vld [vmem:[%s4586_s23 + $0x8c] sm:$0x1] }
  0x8a   : > { %1103 = vrot.lane.b32.xlu0 %v1009_v58, %s4535_s25  ;;  %1101 = vrot.lane.b32.xlu2 %v1005_v63, %s4535_s25  ;;  %v905_v58 = vld [vmem:[%s4586_s23 + $0x84] sm:$0xe]  ;;  %v1053_v62 = vrot.slane %v907_v57, 5  ;;  %v266_v63 = vld [vmem:[%s4586_s23 + $0x88] sm:$0xf] }
  0x8b   : > { %v748_v5 = vpop.permute.xlu1 %747  ;;  %v4002_v2 = vrot.slane %v905_v58, 9  ;;  %299 = vst.msk [vmem:[#allocation2 + $0x5c] sm:$0xf] %vm275_vm5, %v266_v63  ;;  %v1081_v58 = vrot.slane %v919_v53, 5  ;;  %v273_v63 = vld [vmem:[%s4586_s23 + $0xb4] sm:$0xf] }
  0x8c   : > { %842 = vst.msk [vmem:[#allocation2 + $0x8] sm:$0xf] %vm839_vm7, %v748_v5  ;;  %v744_v9 = vpop.permute.xlu0 %743  ;;  %v760_v12 = vpop.permute.xlu2 %759  ;;  %v1045_v5 = vrot.slane %v1043_v43, 4  ;;  %v1054_v10 = vsel %vm4772_vm6, %v1052_v61, %v1053_v62  ;;  %v918_v43 = vld [vmem:[%s4586_s23 + $0xb8] sm:$0xf] }
  0x8d   : > { %840 = vst.msk [vmem:[#allocation2] sm:$0xf] %vm839_vm7, %v744_v9  ;;  %v264_v9 = vld [vmem:[%s4586_s23 + $0x7c] sm:$0xf]  ;;  %v274_v61 = vld [vmem:[%s4586_s23 + $0xb8] sm:$0xf] }
  0x8e   : > { %848 = vst.msk [vmem:[#allocation2 + $0x20] sm:$0xf] %vm839_vm7, %v760_v12  ;;  %v1051_v12 = vsel %vm4772_vm6, %v4002_v2, %v1050_v55  ;;  %v917_v55 = vld [vmem:[%s4586_s23 + $0xb4] sm:$0xe]  ;;  %v4040_v53 = vld [vmem:[%s4586_s23 + $0x10] sm:$0xf] }
  0x8f   : > { %297 = vst.msk [vmem:[#allocation2 + $0x54] sm:$0xf] %vm275_vm5, %v264_v9  ;;  %v4006_v60 = vrot.slane %v917_v55, 9  ;;  %v4008_v9 = vld [vmem:[%s4586_s23 + $0x10] sm:$0xf] }
  0x90   : > { %307 = vst.msk [vmem:[#allocation2 + $0x7c] sm:$0xf] %vm275_vm5, %v274_v61  ;;  %v4033_v61 = vld [vmem:[%s4586_s23 + $0xa8] sm:$0xf] }
  0x91   : > { %1111 = vrot.lane.b32.xlu1 %v1023_v14, %s4535_s25  ;;  %v1057_v14 = vrot.slane %v909_v3, 5  ;;  %306 = vst.msk [vmem:[#allocation2 + $0x78] sm:$0xf] %vm275_vm5, %v273_v63 }
  0x92   : > { %1109 = vrot.lane.b32.xlu0 %v1019_v16, %s4535_s25  ;;  %1107 = vrot.lane.b32.xlu2 %v1016_v19, %s4535_s25  ;;  %v1047_v16 = vsel %vm4772_vm6, %v1045_v5, %v1046_v6  ;;  %v1064_v19 = vrot.slane %v912_v13, 5  ;;  %v4013_v13 = vld [vmem:[%s4586_s23 + $0x30] sm:$0xf] }
  0x93   : > { %v750_v24 = vpop.permute.xlu1 %749  ;;  %v1059_v22 = vrot.slane %v1057_v14, 4 }
  0x94   : > { %843 = vst.msk [vmem:[#allocation2 + $0xc] sm:$0xf] %vm839_vm7, %v750_v24  ;;  %v746_v28 = vpop.permute.xlu0 %745  ;;  %v766_v32 = vpop.permute.xlu2 %765  ;;  %v915_v24 = vld [vmem:[%s4586_s23 + $0xac] sm:$0xf]  ;;  %v1065_v31 = vsel %vm4772_vm6, %v4004_v18, %v1064_v19 }
  0x95   : > { %841 = vst.msk [vmem:[#allocation2 + $0x4] sm:$0xf] %vm839_vm7, %v746_v28  ;;  %v268_v28 = vld [vmem:[%s4586_s23 + $0x94] sm:$0xf]  ;;  %v1061_v33 = vsel %vm4772_vm6, %v1059_v22, %v1060_v23 }
  0x96   : > { %851 = vst.msk [vmem:[#allocation2 + $0x2c] sm:$0xf] %vm839_vm7, %v766_v32  ;;  %v1071_v32 = vrot.slane %v915_v24, 5 }
  0x97   : > { %301 = vst.msk [vmem:[#allocation2 + $0x64] sm:$0xf] %vm275_vm5, %v268_v28  ;;  %v4017_v28 = vld [vmem:[%s4586_s23 + $0x48] sm:$0xf] }
  0x98   : > { %v1073_v38 = vrot.slane %v1071_v32, 4  ;;  %v1072_v51 = vsel %vm4772_vm6, %v4005_v42, %v1071_v32  ;;  %v4022_v32 = vld [vmem:[%s4586_s23 + $0x64] sm:$0xf] }
  0x99   : > { %1117 = vrot.lane.b32.xlu1 %v1033_v34, %s4535_s25  ;;  %v916_v34 = vld [vmem:[%s4586_s23 + $0xb0] sm:$0x1] }
  0x9a   : > { %1115 = vrot.lane.b32.xlu0 %v1030_v36, %s4535_s25  ;;  %1113 = vrot.lane.b32.xlu2 %v1026_v40, %s4535_s25  ;;  %v1058_v36 = vsel %vm4772_vm6, %v4003_v27, %v1057_v14  ;;  %v1074_v39 = vrot.slane %v916_v34, 5  ;;  %v272_v40 = vld [vmem:[%s4586_s23 + $0xac] sm:$0xf]  ;;  %v4012_v14 = vld [vmem:[%s4586_s23 + $0x28] sm:$0xf] }
  0x9b   : > { %v758_v45 = vpop.permute.xlu1 %757  ;;  %305 = vst.msk [vmem:[#allocation2 + $0x74] sm:$0xf] %vm275_vm5, %v272_v40  ;;  %v4018_v27 = vld [vmem:[%s4586_s23 + $0x4c] sm:$0xf]  ;;  %v4020_v34 = vld [vmem:[%s4586_s23 + $0x58] sm:$0xf] }
  0x9c   : > { %847 = vst.msk [vmem:[#allocation2 + $0x1c] sm:$0xf] %vm839_vm7, %v758_v45  ;;  %v756_v49 = vpop.permute.xlu0 %755  ;;  %v772_v52 = vpop.permute.xlu2 %771  ;;  %v1066_v45 = vrot.slane %v1064_v19, 4  ;;  %v1075_v50 = vsel %vm4772_vm6, %v1073_v38, %v1074_v39  ;;  %v4016_v19 = vld [vmem:[%s4586_s23 + $0x40] sm:$0xf] }
  0x9d   : > { %846 = vst.msk [vmem:[#allocation2 + $0x18] sm:$0xf] %vm839_vm7, %v756_v49  ;;  %v270_v49 = vld [vmem:[%s4586_s23 + $0xa0] sm:$0xf]  ;;  %v4025_v38 = vld [vmem:[%s4586_s23 + $0x78] sm:$0xf] }
  0x9e   : > { %854 = vst.msk [vmem:[#allocation2 + $0x38] sm:$0xf] %vm839_vm7, %v772_v52  ;;  %v1078_v52 = vrot.slane %v918_v43, 5  ;;  %v4024_v39 = vld [vmem:[%s4586_s23 + $0x70] sm:$0xf] }
  0x9f   : > { %303 = vst.msk [vmem:[#allocation2 + $0x6c] sm:$0xf] %vm275_vm5, %v270_v49  ;;  %v4023_v40 = vld [vmem:[%s4586_s23 + $0x6c] sm:$0xf] }
  0xa0   : > { %v1080_v57 = vrot.slane %v1078_v52, 4  ;;  %v1079_v3 = vsel %vm4772_vm6, %v4006_v60, %v1078_v52  ;;  %v4029_v52 = vld [vmem:[%s4586_s23 + $0x90] sm:$0xf]  ;;  %v4034_v60 = vld [vmem:[%s4586_s23 + $0xac] sm:$0xf] }
  0xa1   : > { %1123 = vrot.lane.b32.xlu1 %v1044_v54, %s4535_s25  ;;  %v1068_v54 = vsel %vm4772_vm6, %v1066_v45, %v1067_v46  ;;  %v4027_v45 = vld [vmem:[%s4586_s23 + $0x84] sm:$0xf]  ;;  %v4026_v46 = vld [vmem:[%s4586_s23 + $0x7c] sm:$0xf] }
  0xa2   : > { %1121 = vrot.lane.b32.xlu0 %v1040_v56, %s4535_s25  ;;  %1119 = vrot.lane.b32.xlu2 %v1037_v59, %s4535_s25  ;;  %v1082_v2 = vsel %vm4772_vm6, %v1080_v57, %v1081_v58  ;;  %v1464_v58 = vshll.u32 %v4040_v53, 16 }
  0xa3   : > { %v764_v0 = vpop.permute.xlu1 %763 }
  0xa4   : > { %850 = vst.msk [vmem:[#allocation2 + $0x28] sm:$0xf] %vm839_vm7, %v764_v0  ;;  %v762_v4 = vpop.permute.xlu0 %761  ;;  %v778_v8 = vpop.permute.xlu2 %777  ;;  %v4007_v0 = vld [vmem:[%s4586_s23 + $0xc] sm:$0xf] }
  0xa5   : > { %849 = vst.msk [vmem:[#allocation2 + $0x24] sm:$0xf] %vm839_vm7, %v762_v4 }
  0xa6   : > { %857 = vst.msk [vmem:[#allocation2 + $0x44] sm:$0xf] %vm839_vm7, %v778_v8  ;;  %v4009_v8 = vld [vmem:[%s4586_s23 + $0x18] sm:$0xf] }
  0xa9   : > { %1129 = vrot.lane.b32.xlu1 %v1054_v10, %s4535_s25 }
  0xaa   : > { %1127 = vrot.lane.b32.xlu0 %v1051_v12, %s4535_s25  ;;  %1125 = vrot.lane.b32.xlu2 %v1047_v16, %s4535_s25 }
  0xab   : > { %v770_v21 = vpop.permute.xlu1 %769 }
  0xac   : > { %853 = vst.msk [vmem:[#allocation2 + $0x34] sm:$0xf] %vm839_vm7, %v770_v21  ;;  %v768_v26 = vpop.permute.xlu0 %767  ;;  %v784_v29 = vpop.permute.xlu2 %783  ;;  %v4014_v21 = vld [vmem:[%s4586_s23 + $0x34] sm:$0xf] }
  0xad   : > { %852 = vst.msk [vmem:[#allocation2 + $0x30] sm:$0xf] %vm839_vm7, %v768_v26  ;;  %v4019_v26 = vld [vmem:[%s4586_s23 + $0x54] sm:$0xf] }
  0xae   : > { %860 = vst.msk [vmem:[#allocation2 + $0x50] sm:$0xf] %vm839_vm7, %v784_v29 }
  0xb1   : > { %1135 = vrot.lane.b32.xlu1 %v1065_v31, %s4535_s25 }
  0xb2   : > { %1133 = vrot.lane.b32.xlu0 %v1061_v33, %s4535_s25  ;;  %1131 = vrot.lane.b32.xlu2 %v1058_v36, %s4535_s25  ;;  %v4021_v33 = vld [vmem:[%s4586_s23 + $0x60] sm:$0xf] }
  0xb3   : > { %v776_v41 = vpop.permute.xlu1 %775 }
  0xb4   : > { %856 = vst.msk [vmem:[#allocation2 + $0x40] sm:$0xf] %vm839_vm7, %v776_v41  ;;  %v774_v44 = vpop.permute.xlu0 %773  ;;  %v790_v48 = vpop.permute.xlu2 %789 }
  0xb5   : > { %855 = vst.msk [vmem:[#allocation2 + $0x3c] sm:$0xf] %vm839_vm7, %v774_v44  ;;  %v4028_v44 = vld [vmem:[%s4586_s23 + $0x88] sm:$0xf] }
  0xb6   : > { %863 = vst.msk [vmem:[#allocation2 + $0x5c] sm:$0xf] %vm839_vm7, %v790_v48 }
  0xb9   : > { %1141 = vrot.lane.b32.xlu1 %v1075_v50, %s4535_s25  ;;  %v4031_v50 = vld [vmem:[%s4586_s23 + $0x9c] sm:$0xf] }
  0xba   : > { %1139 = vrot.lane.b32.xlu0 %v1072_v51, %s4535_s25  ;;  %1137 = vrot.lane.b32.xlu2 %v1068_v54, %s4535_s25  ;;  %v4030_v51 = vld [vmem:[%s4586_s23 + $0x94] sm:$0xf] }
  0xbb   : > { %v782_v56 = vpop.permute.xlu1 %781 }
  0xbc   : > { %859 = vst.msk [vmem:[#allocation2 + $0x4c] sm:$0xf] %vm839_vm7, %v782_v56  ;;  %v780_v59 = vpop.permute.xlu0 %779  ;;  %v796_v62 = vpop.permute.xlu2 %795  ;;  %v4039_v56 = vld [vmem:[%s4586_s23 + $0xc] sm:$0xf] }
  0xbd   : > { %858 = vst.msk [vmem:[#allocation2 + $0x48] sm:$0xf] %vm839_vm7, %v780_v59  ;;  %v1468_v59 = vshrl.u32 %v4040_v53, 16  ;;  %v1458_v63 = vshll.u32 %v4039_v56, 16  ;;  %v4038_v53 = vld [vmem:[%s4586_s23 + $0xc4] sm:$0xf] }
  0xbe   : > { %866 = vst.msk [vmem:[#allocation2 + $0x68] sm:$0xf] %vm839_vm7, %v796_v62  ;;  %v1455_v62 = vshrl.u32 %v4039_v56, 16 }
  0xc1   : > { %1277 = vrot.lane.b32.xlu1 %v4007_v0, %s4536_s26  ;;  %v4032_v0 = vld [vmem:[%s4586_s23 + $0xa0] sm:$0xf] }
  0xc2   : > { %1145 = vrot.lane.b32.xlu0 %v1082_v2, %s4535_s25  ;;  %1143 = vrot.lane.b32.xlu2 %v1079_v3, %s4535_s25  ;;  %v5084_v2 = vrot.slane %v1464_v58, 5  ;;  %v1470_v3 = vrot.slane %v1468_v59, 4 }
  0xc3   : > { %v788_v4 = vpop.permute.xlu1 %787 }
  0xc4   : > { %862 = vst.msk [vmem:[#allocation2 + $0x58] sm:$0xf] %vm839_vm7, %v788_v4  ;;  %v786_v5 = vpop.permute.xlu0 %785  ;;  %v802_v6 = vpop.permute.xlu2 %801  ;;  %v4041_v4 = vld [vmem:[%s4586_s23 + $0x14] sm:$0x1] }
  0xc5   : > { %861 = vst.msk [vmem:[#allocation2 + $0x54] sm:$0xf] %vm839_vm7, %v786_v5 }
  0xc6   : > { %869 = vst.msk [vmem:[#allocation2 + $0x74] sm:$0xf] %vm839_vm7, %v802_v6  ;;  %v1457_v6 = vrot.slane %v1455_v62, 4  ;;  %v4054_v62 = vld [vmem:[%s4586_s23 + $0x48] sm:$0xf] }
  0xc9   : > { %1283 = vrot.lane.b32.xlu1 %v4010_v7, %s4536_s26  ;;  %v1460_v7 = vrot.slane %v1458_v63, 5 }
  0xca   : > { %1281 = vrot.lane.b32.xlu0 %v4009_v8, %s4536_s26  ;;  %1279 = vrot.lane.b32.xlu2 %v4008_v9, %s4536_s26  ;;  %v4045_v8 = vld [vmem:[%s4586_s23 + $0x24] sm:$0xf] }
  0xcb   : > { %v794_v10 = vpop.permute.xlu1 %793 }
  0xcc   : > { %865 = vst.msk [vmem:[#allocation2 + $0x64] sm:$0xf] %vm839_vm7, %v794_v10  ;;  %v792_v11 = vpop.permute.xlu0 %791  ;;  %v1084_v12 = vpop.permute.xlu2 %1083  ;;  %v4043_v10 = vld [vmem:[%s4586_s23 + $0x1c] sm:$0xf] }
  0xcd   : > { %864 = vst.msk [vmem:[#allocation2 + $0x60] sm:$0xf] %vm839_vm7, %v792_v11  ;;  %v1471_v11 = vor.u32 %v1470_v3, %v5084_v2  ;;  %v4052_v3 = vld [vmem:[%s4586_s23 + $0x40] sm:$0xf] }
  0xce   : > { %1180 = vst.msk [vmem:[#allocation2] sm:$0xf] %vm1179_vm8, %v1084_v12  ;;  %v1474_v12 = vshll.u32 %v4041_v4, 16 }
  0xd1   : > { %1289 = vrot.lane.b32.xlu1 %v4013_v13, %s4536_s26 }
  0xd2   : > { %1287 = vrot.lane.b32.xlu0 %v4012_v14, %s4536_s26  ;;  %1285 = vrot.lane.b32.xlu2 %v4011_v15, %s4536_s26  ;;  %v4042_v14 = vld [vmem:[%s4586_s23 + $0x18] sm:$0xf]  ;;  %v4037_v15 = vld [vmem:[%s4586_s23 + $0xc0] sm:$0xf] }
  0xd3   : > { %v800_v16 = vpop.permute.xlu1 %799 }
  0xd4   : > { %868 = vst.msk [vmem:[#allocation2 + $0x70] sm:$0xf] %vm839_vm7, %v800_v16  ;;  %v798_v17 = vpop.permute.xlu0 %797  ;;  %v1090_v18 = vpop.permute.xlu2 %1089  ;;  %v1503_v16 = vshrl.u32 %v4045_v8, 16 }
  0xd5   : > { %867 = vst.msk [vmem:[#allocation2 + $0x6c] sm:$0xf] %vm839_vm7, %v798_v17  ;;  %v1506_v17 = vshll.u32 %v4045_v8, 16 }
  0xd6   : > { %1183 = vst.msk [vmem:[#allocation2 + $0xc] sm:$0xf] %vm1179_vm8, %v1090_v18  ;;  %v4036_v18 = vld [vmem:[%s4586_s23 + $0xb8] sm:$0xf] }
  0xd9   : > { %1295 = vrot.lane.b32.xlu1 %v4016_v19, %s4536_s26  ;;  %v1461_v19 = vor.u32 %v1460_v7, %v1457_v6  ;;  %v4051_v7 = vld [vmem:[%s4586_s23 + $0x3c] sm:$0xf] }
  0xda   : > { %1293 = vrot.lane.b32.xlu0 %v4015_v20, %s4536_s26  ;;  %1291 = vrot.lane.b32.xlu2 %v4014_v21, %s4536_s26  ;;  %v1488_v20 = vshll.u32 %v4043_v10, 16  ;;  %v1492_v21 = vshrl.u32 %v4043_v10, 16 }
  0xdb   : > { %v806_v22 = vpop.permute.xlu1 %805 }
  0xdc   : > { %871 = vst.msk [vmem:[#allocation2 + $0x7c] sm:$0xf] %vm839_vm7, %v806_v22  ;;  %v804_v23 = vpop.permute.xlu0 %803  ;;  %v1096_v24 = vpop.permute.xlu2 %1095  ;;  %v4035_v22 = vld [vmem:[%s4586_s23 + $0xb4] sm:$0xf] }
  0xdd   : > { %870 = vst.msk [vmem:[#allocation2 + $0x78] sm:$0xf] %vm839_vm7, %v804_v23  ;;  %v1479_v23 = vshrl.u32 %v4042_v14, 16 }
  0xde   : > { %1186 = vst.msk [vmem:[#allocation2 + $0x18] sm:$0xf] %vm1179_vm8, %v1096_v24  ;;  %v1482_v24 = vshll.u32 %v4042_v14, 16 }
  0xe1   : > { %1301 = vrot.lane.b32.xlu1 %v4019_v26, %s4536_s26  ;;  %v1472_v26 = vrot.slane %v1471_v11, 4 }
  0xe2   : > { %1299 = vrot.lane.b32.xlu0 %v4018_v27, %s4536_s26  ;;  %1297 = vrot.lane.b32.xlu2 %v4017_v28, %s4536_s26  ;;  %v1476_v27 = vrot.slane %v1474_v12, 5  ;;  %v1505_v28 = vrot.slane %v1503_v16, 4  ;;  %v1575_v12 = vshrl.u32 %v4054_v62, 16  ;;  %v1560_v16 = vshll.u32 %v4052_v3, 16 }
  0xe3   : > { %v1088_v29 = vpop.permute.xlu1 %1087 }
  0xe4   : > { %1182 = vst.msk [vmem:[#allocation2 + $0x8] sm:$0xf] %vm1179_vm8, %v1088_v29  ;;  %v1086_v30 = vpop.permute.xlu0 %1085  ;;  %v1102_v31 = vpop.permute.xlu2 %1101  ;;  %v1508_v29 = vrot.slane %v1506_v17, 5  ;;  %v1564_v17 = vshrl.u32 %v4052_v3, 16 }
  0xe5   : > { %1181 = vst.msk [vmem:[#allocation2 + $0x4] sm:$0xf] %vm1179_vm8, %v1086_v30  ;;  %v4049_v30 = vld [vmem:[%s4586_s23 + $0x34] sm:$0xf] }
  0xe6   : > { %1189 = vst.msk [vmem:[#allocation2 + $0x24] sm:$0xf] %vm1179_vm8, %v1102_v31  ;;  %v4048_v31 = vld [vmem:[%s4586_s23 + $0x30] sm:$0xf] }
  0xe9   : > { %1307 = vrot.lane.b32.xlu1 %v4022_v32, %s4536_s26 }
  0xea   : > { %1305 = vrot.lane.b32.xlu0 %v4021_v33, %s4536_s26  ;;  %1303 = vrot.lane.b32.xlu2 %v4020_v34, %s4536_s26  ;;  %v1462_v33 = vrot.slane %v1461_v19, 4  ;;  %v4046_v34 = vld [vmem:[%s4586_s23 + $0x28] sm:$0xf]  ;;  %v4058_v19 = vld [vmem:[%s4586_s23 + $0x58] sm:$0xf] }
  0xeb   : > { %v1094_v35 = vpop.permute.xlu1 %1093 }
  0xec   : > { %1185 = vst.msk [vmem:[#allocation2 + $0x14] sm:$0xf] %vm1179_vm8, %v1094_v35  ;;  %v1092_v36 = vpop.permute.xlu0 %1091  ;;  %v1108_v37 = vpop.permute.xlu2 %1107  ;;  %v5105_v35 = vrot.slane %v1488_v20, 5  ;;  %v1551_v20 = vshrl.u32 %v4051_v7, 16 }
  0xed   : > { %1184 = vst.msk [vmem:[#allocation2 + $0x10] sm:$0xf] %vm1179_vm8, %v1092_v36  ;;  %v1494_v36 = vrot.slane %v1492_v21, 4  ;;  %v1554_v21 = vshll.u32 %v4051_v7, 16  ;;  %v4061_v7 = vld [vmem:[%s4586_s23 + $0x64] sm:$0xf] }
  0xee   : > { %1192 = vst.msk [vmem:[#allocation2 + $0x30] sm:$0xf] %vm1179_vm8, %v1108_v37 }
  0xf1   : > { %1313 = vrot.lane.b32.xlu1 %v4025_v38, %s4536_s26  ;;  %v4044_v38 = vld [vmem:[%s4586_s23 + $0x20] sm:$0x1] }
  0xf2   : > { %1311 = vrot.lane.b32.xlu0 %v4024_v39, %s4536_s26  ;;  %1309 = vrot.lane.b32.xlu2 %v4023_v40, %s4536_s26  ;;  %v1481_v39 = vrot.slane %v1479_v23, 4  ;;  %v1484_v40 = vrot.slane %v1482_v24, 5 }
  0xf3   : > { %v1100_v41 = vpop.permute.xlu1 %1099 }
  0xf4   : > { %1188 = vst.msk [vmem:[#allocation2 + $0x20] sm:$0xf] %vm1179_vm8, %v1100_v41  ;;  %v1098_v42 = vpop.permute.xlu0 %1097  ;;  %v1114_v43 = vpop.permute.xlu2 %1113 }
  0xf5   : > { %1187 = vst.msk [vmem:[#allocation2 + $0x1c] sm:$0xf] %vm1179_vm8, %v1098_v42  ;;  %v1536_v42 = vshll.u32 %v4049_v30, 16 }
  0xf6   : > { %1195 = vst.msk [vmem:[#allocation2 + $0x3c] sm:$0xf] %vm1179_vm8, %v1114_v43  ;;  %v1540_v43 = vshrl.u32 %v4049_v30, 16  ;;  %v1577_v30 = vrot.slane %v1575_v12, 4 }
  0xf8   : > { %v1542_v56 = vrot.slane %v1540_v43, 4 }
  0xf9   : > { %1319 = vrot.lane.b32.xlu1 %v4028_v44, %s4536_s26  ;;  %v1527_v44 = vshrl.u32 %v4048_v31, 16 }
  0xfa   : > { %1317 = vrot.lane.b32.xlu0 %v4027_v45, %s4536_s26  ;;  %1315 = vrot.lane.b32.xlu2 %v4026_v46, %s4536_s26  ;;  %v1530_v45 = vshll.u32 %v4048_v31, 16  ;;  %v1477_v46 = vsel %vm4597_vm2, %v1472_v26, %v1476_v27 }
  0xfb   : > { %v1106_v47 = vpop.permute.xlu1 %1105 }
  0xfc   : > { %1191 = vst.msk [vmem:[#allocation2 + $0x2c] sm:$0xf] %vm1179_vm8, %v1106_v47  ;;  %v1104_v48 = vpop.permute.xlu0 %1103  ;;  %v1120_v49 = vpop.permute.xlu2 %1119  ;;  %v1509_v47 = vor.u32 %v1508_v29, %v1505_v28  ;;  %v1532_v58 = vrot.slane %v1530_v45, 5  ;;  %v4055_v29 = vld [vmem:[%s4586_s23 + $0x4c] sm:$0xf] }
  0xfd   : > { %1190 = vst.msk [vmem:[#allocation2 + $0x28] sm:$0xf] %vm1179_vm8, %v1104_v48  ;;  %v1512_v48 = vshll.u32 %v4046_v34, 16 }
  0xfe   : > { %1198 = vst.msk [vmem:[#allocation2 + $0x48] sm:$0xf] %vm1179_vm8, %v1120_v49  ;;  %v1467_v49 = vsel %vm4597_vm2, %v1462_v33, %v5084_v2  ;;  %v1510_v59 = vrot.slane %v1509_v47, 4  ;;  %v5144_v33 = vrot.slane %v1560_v16, 5 }
 0x101   : > { %1325 = vrot.lane.b32.xlu1 %v4031_v50, %s4536_s26  ;;  %v1495_v50 = vor.u32 %v1494_v36, %v5105_v35  ;;  %v1608_v36 = vshll.u32 %v4058_v19, 16 }
 0x102   : > { %1323 = vrot.lane.b32.xlu0 %v4030_v51, %s4536_s26  ;;  %1321 = vrot.lane.b32.xlu2 %v4029_v52, %s4536_s26  ;;  %v1498_v51 = vshll.u32 %v4044_v38, 16  ;;  %v1516_v52 = vshrl.u32 %v4046_v34, 16  ;;  %v1566_v34 = vrot.slane %v1564_v17, 4  ;;  %v4057_v38 = vld [vmem:[%s4586_s23 + $0x54] sm:$0xf]  ;;  %v1632_v17 = vshll.u32 %v4061_v7, 16 }
 0x103   : > { %v1112_v54 = vpop.permute.xlu1 %1111 }
 0x104   : > { %1194 = vst.msk [vmem:[#allocation2 + $0x38] sm:$0xf] %vm1179_vm8, %v1112_v54  ;;  %v1110_v55 = vpop.permute.xlu0 %1109  ;;  %v1126_v57 = vpop.permute.xlu2 %1125  ;;  %v1485_v54 = vor.u32 %v1484_v40, %v1481_v39  ;;  %v1500_v2 = vrot.slane %v1498_v51, 5  ;;  %v1518_v6 = vrot.slane %v1516_v52, 4  ;;  %v1553_v39 = vrot.slane %v1551_v20, 4 }
 0x105   : > { %1193 = vst.msk [vmem:[#allocation2 + $0x34] sm:$0xf] %vm1179_vm8, %v1110_v55  ;;  %v5119_v55 = vrot.slane %v1536_v42, 5  ;;  %v1556_v40 = vrot.slane %v1554_v21, 5  ;;  %v1599_v51 = vshrl.u32 %v4057_v38, 16  ;;  %v5157_v52 = vrot.slane %v1608_v36, 5 }
 0x106   : > { %1201 = vst.msk [vmem:[#allocation2 + $0x54] sm:$0xf] %vm1179_vm8, %v1126_v57  ;;  %v1529_v57 = vrot.slane %v1527_v44, 4 }
 0x107   : > { %v1543_v8 = vor.u32 %v1542_v56, %v5119_v55  ;;  %v1557_v56 = vor.u32 %v1556_v40, %v1553_v39 }
 0x108   : > { %v1533_v10 = vor.u32 %v1532_v58, %v1529_v57  ;;  %v1588_v57 = vshrl.u32 %v4055_v29, 16 }
 0x109   : > { %1331 = vrot.lane.b32.xlu1 %v4034_v60, %s4536_s26  ;;  %v1514_v60 = vrot.slane %v1512_v48, 5  ;;  %v1544_v26 = vrot.slane %v1543_v8, 4 }
 0x10a   : > { %1329 = vrot.lane.b32.xlu0 %v4033_v61, %s4536_s26  ;;  %1327 = vrot.lane.b32.xlu2 %v4032_v0, %s4536_s26  ;;  %v4050_v61 = vld [vmem:[%s4586_s23 + $0x38] sm:$0x1]  ;;  %v1496_v0 = vrot.slane %v1495_v50, 4  ;;  %v1534_v28 = vrot.slane %v1533_v10, 4 }
 0x10b   : > { %v1118_v5 = vpop.permute.xlu1 %1117  ;;  %v1515_v14 = vsel %vm4597_vm2, %v1510_v59, %v1514_v60  ;;  %v1519_v23 = vor.u32 %v1518_v6, %v1514_v60  ;;  %v4063_v60 = vld [vmem:[%s4586_s23 + $0x6c] sm:$0xf]  ;;  %v1558_v6 = vrot.slane %v1557_v56, 4 }
 0x10c   : > { %1197 = vst.msk [vmem:[#allocation2 + $0x44] sm:$0xf] %vm1179_vm8, %v1118_v5  ;;  %v1116_v9 = vpop.permute.xlu0 %1115  ;;  %v1132_v13 = vpop.permute.xlu2 %1131  ;;  %v1486_v5 = vrot.slane %v1485_v54, 4  ;;  %v1539_v45 = vsel %vm4597_vm2, %v1534_v28, %v5119_v55  ;;  %v1602_v54 = vshll.u32 %v4057_v38, 16  ;;  %v4059_v55 = vld [vmem:[%s4586_s23 + $0x5c] sm:$0x1] }
 0x10d   : > { %1196 = vst.msk [vmem:[#allocation2 + $0x40] sm:$0xf] %vm1179_vm8, %v1116_v9  ;;  %v1546_v9 = vshll.u32 %v4050_v61, 16  ;;  %v1520_v42 = vrot.slane %v1519_v23, 4  ;;  %v1650_v10 = vshll.u32 %v4063_v60, 16 }
 0x10e   : > { %1204 = vst.msk [vmem:[#allocation2 + $0x60] sm:$0xf] %vm1179_vm8, %v1132_v13  ;;  %v4047_v13 = vld [vmem:[%s4586_s23 + $0x2c] sm:$0x1]  ;;  %v4062_v38 = vld [vmem:[%s4586_s23 + $0x68] sm:$0x1] }
 0x10f   : > { %v1522_v24 = vshll.u32 %v4047_v13, 16  ;;  %v1548_v27 = vrot.slane %v1546_v9, 5  ;;  %v1647_v9 = vshrl.u32 %v4063_v60, 16  ;;  %v4056_v13 = vld [vmem:[%s4586_s23 + $0x50] sm:$0x1] }
 0x111   : > { %1337 = vrot.lane.b32.xlu1 %v4037_v15, %s4536_s26  ;;  %v1578_v15 = vshll.u32 %v4054_v62, 16  ;;  %v1524_v43 = vrot.slane %v1522_v24, 5  ;;  %v1549_v44 = vsel %vm4597_vm2, %v1544_v26, %v1548_v27  ;;  %v1594_v24 = vshll.u32 %v4056_v13, 16 }
 0x112   : > { %1335 = vrot.lane.b32.xlu0 %v4036_v18, %s4536_s26  ;;  %1333 = vrot.lane.b32.xlu2 %v4035_v22, %s4536_s26  ;;  %v1501_v18 = vsel %vm4597_vm2, %v1496_v0, %v1500_v2  ;;  %v1491_v22 = vsel %vm4597_vm2, %v1486_v5, %v5105_v35  ;;  %v1612_v35 = vshrl.u32 %v4058_v19, 16  ;;  %v1601_v0 = vrot.slane %v1599_v51, 4 }
 0x113   : > { %v1124_v32 = vpop.permute.xlu1 %1123  ;;  %v1580_v31 = vrot.slane %v1578_v15, 5  ;;  %v1525_v58 = vsel %vm4597_vm2, %v1520_v42, %v1524_v43  ;;  %v1604_v5 = vrot.slane %v1602_v54, 5  ;;  %v1649_v28 = vrot.slane %v1647_v9, 4  ;;  %v4069_v9 = vld [vmem:[%s4586_s23 + $0x84] sm:$0xf] }
 0x114   : > { %1200 = vst.msk [vmem:[#allocation2 + $0x50] sm:$0xf] %vm1179_vm8, %v1124_v32  ;;  %v1122_v37 = vpop.permute.xlu0 %1121  ;;  %v1138_v41 = vpop.permute.xlu2 %1137  ;;  %v4053_v32 = vld [vmem:[%s4586_s23 + $0x44] sm:$0x1] }
 0x115   : > { %1199 = vst.msk [vmem:[#allocation2 + $0x4c] sm:$0xf] %vm1179_vm8, %v1122_v37  ;;  %v1581_v48 = vor.u32 %v1580_v31, %v1577_v30  ;;  %v1570_v50 = vshll.u32 %v4053_v32, 16  ;;  %v1605_v21 = vor.u32 %v1604_v5, %v1601_v0  ;;  %v5182_v30 = vrot.slane %v1632_v17, 5  ;;  %v4067_v32 = vld [vmem:[%s4586_s23 + $0x7c] sm:$0xf] }
 0x116   : > { %1207 = vst.msk [vmem:[#allocation2 + $0x6c] sm:$0xf] %vm1179_vm8, %v1138_v41  ;;  %v4070_v5 = vld [vmem:[%s4586_s23 + $0x88] sm:$0xf] }
 0x117   : > { %v1582_v61 = vrot.slane %v1581_v48, 4 }
 0x119   : > { %1840 = vrot.lane.b32.xlu1 %v1477_v46, %s4537_s27  ;;  %v1584_v46 = vshll.u32 %v4055_v29, 16  ;;  %v1652_v29 = vrot.slane %v1650_v10, 5 }
 0x11a   : > { %1838 = vrot.lane.b32.xlu0 %v1467_v49, %s4537_s27  ;;  %1339 = vrot.lane.b32.xlu2 %v4038_v53, %s4536_s26  ;;  %v1567_v49 = vor.u32 %v1566_v34, %v5144_v33  ;;  %v1614_v53 = vrot.slane %v1612_v35, 4  ;;  %v4066_v34 = vld [vmem:[%s4586_s23 + $0x78] sm:$0xf]  ;;  %v4064_v35 = vld [vmem:[%s4586_s23 + $0x70] sm:$0xf]  ;;  %s241_s26 = scalar_lea.vmem %s6145_s5, %s6151_s19 }
 0x11b   : > { %v1130_v63 = vpop.permute.xlu1 %1129  ;;  %v1586_v59 = vrot.slane %v1584_v46, 5  ;;  %v1684_v46 = vshrl.u32 %v4067_v32, 16  ;;  %v1674_v48 = vshll.u32 %v4066_v34, 16  ;;  %v1660_v56 = vshrl.u32 %v4064_v35, 16 }
 0x11c   : > { %1203 = vst.msk [vmem:[#allocation2 + $0x5c] sm:$0xf] %vm1179_vm8, %v1130_v63  ;;  %v1128_v4 = vpop.permute.xlu0 %1127  ;;  %v1144_v11 = vpop.permute.xlu2 %1143  ;;  %v1568_v62 = vrot.slane %v1567_v49, 4  ;;  %v1572_v63 = vrot.slane %v1570_v50, 5  ;;  %v1615_v3 = vor.u32 %v1614_v53, %v5157_v52  ;;  %v1653_v49 = vor.u32 %v1652_v29, %v1649_v28 }
 0x11d   : > { %1202 = vst.msk [vmem:[#allocation2 + $0x58] sm:$0xf] %vm1179_vm8, %v1128_v4  ;;  %v1618_v4 = vshll.u32 %v4059_v55, 16  ;;  %v1587_v15 = vsel %vm4597_vm2, %v1582_v61, %v1586_v59  ;;  %v1656_v50 = vshll.u32 %v4064_v35, 16  ;;  %v1642_v53 = vshll.u32 %v4062_v38, 16 }
 0x11e   : > { %1210 = vst.msk [vmem:[#allocation2 + $0x78] sm:$0xf] %vm1179_vm8, %v1144_v11  ;;  %v1590_v11 = vrot.slane %v1588_v57, 4  ;;  %v1573_v16 = vsel %vm4597_vm2, %v1568_v62, %v1572_v63  ;;  %v1616_v19 = vrot.slane %v1615_v3, 4  ;;  %v1676_v61 = vrot.slane %v1674_v48, 5 }
 0x11f   : > { %v1620_v20 = vrot.slane %v1618_v4, 5  ;;  %v1654_v62 = vrot.slane %v1653_v49, 4  ;;  %v1658_v63 = vrot.slane %v1656_v50, 5  ;;  %v1644_v0 = vrot.slane %v1642_v53, 5  ;;  %v4072_v4 = vld [vmem:[%s4586_s23 + $0x90] sm:$0xf] }
 0x120   : > { %v1591_v23 = vor.u32 %v1590_v11, %v1586_v59  ;;  %v1686_v59 = vrot.slane %v1684_v46, 4  ;;  %v1719_v17 = vshrl.u32 %v4072_v4, 16 }
 0x121   : > { %1846 = vrot.lane.b32.xlu1 %v1515_v14, %s4537_s27  ;;  %v4060_v14 = vld [vmem:[%s4586_s23 + $0x60] sm:$0xf] }
 0x122   : > { %1844 = vrot.lane.b32.xlu0 %v1501_v18, %s4537_s27  ;;  %1842 = vrot.lane.b32.xlu2 %v1491_v22, %s4537_s27  ;;  %v1636_v18 = vshrl.u32 %v4061_v7, 16  ;;  %v1563_v22 = vsel %vm4597_vm2, %v1558_v6, %v5144_v33  ;;  %v1623_v26 = vshrl.u32 %v4060_v14, 16  ;;  %v1626_v27 = vshll.u32 %v4060_v14, 16  ;;  %v4065_v14 = vld [vmem:[%s4586_s23 + $0x74] sm:$0x1] }
 0x123   : > { %v1136_v37 = vpop.permute.xlu1 %1135  ;;  %v1621_v33 = vsel %vm4597_vm2, %v1616_v19, %v1620_v20  ;;  %v1592_v40 = vrot.slane %v1591_v23, 4  ;;  %v1704_v19 = vshll.u32 %v4070_v5, 16  ;;  %v1708_v20 = vshrl.u32 %v4070_v5, 16 }
 0x124   : > { %1206 = vst.msk [vmem:[#allocation2 + $0x68] sm:$0xf] %vm1179_vm8, %v1136_v37  ;;  %v1134_v41 = vpop.permute.xlu0 %1133  ;;  %v1280_v47 = vpop.permute.xlu2 %1279  ;;  %v1638_v31 = vrot.slane %v1636_v18, 4  ;;  %v1606_v37 = vrot.slane %v1605_v21, 4  ;;  %v1625_v42 = vrot.slane %v1623_v26, 4  ;;  %v1628_v43 = vrot.slane %v1626_v27, 5 }
 0x125   : > { %1205 = vst.msk [vmem:[#allocation2 + $0x64] sm:$0xf] %vm1179_vm8, %v1134_v41  ;;  %v1596_v41 = vrot.slane %v1594_v24, 5  ;;  %v1722_v18 = vshll.u32 %v4072_v4, 16  ;;  %v1695_v21 = vshrl.u32 %v4069_v9, 16  ;;  %v1666_v26 = vshll.u32 %v4065_v14, 16 }
 0x126   : > { %1375 = vst.msk [vmem:[#allocation2 + $0x4] sm:$0xf] %vm1373_vm9, %v1280_v47  ;;  %v1671_v47 = vshrl.u32 %v4066_v34, 16  ;;  %v1639_v51 = vor.u32 %v1638_v31, %v5182_v30  ;;  %v1611_v54 = vsel %vm4597_vm2, %v1606_v37, %v5157_v52  ;;  %v1721_v31 = vrot.slane %v1719_v17, 4  ;;  %v4076_v34 = vld [vmem:[%s4586_s23 + $0xa0] sm:$0xf] }
 0x127   : > { %v1597_v57 = vsel %vm4597_vm2, %v1592_v40, %v1596_v41  ;;  %v4073_v37 = vld [vmem:[%s4586_s23 + $0x94] sm:$0xf]  ;;  %v5227_v35 = vrot.slane %v1704_v19, 5  ;;  %v1697_v38 = vrot.slane %v1695_v21, 4  ;;  %v4071_v41 = vld [vmem:[%s4586_s23 + $0x8c] sm:$0x1] }
 0x128   : > { %v1673_v60 = vrot.slane %v1671_v47, 4  ;;  %v1640_v52 = vrot.slane %v1639_v51, 4  ;;  %v1756_v46 = vshrl.u32 %v4076_v34, 16  ;;  %v1728_v51 = vshll.u32 %v4073_v37, 16  ;;  %v4074_v14 = vld [vmem:[%s4586_s23 + $0x98] sm:$0x1] }
 0x129   : > { %1852 = vrot.lane.b32.xlu1 %v1549_v44, %s4537_s27 }
 0x12a   : > { %1850 = vrot.lane.b32.xlu0 %v1539_v45, %s4537_s27  ;;  %1848 = vrot.lane.b32.xlu2 %v1525_v58, %s4537_s27  ;;  %v1680_v45 = vshll.u32 %v4067_v32, 16  ;;  %v1629_v58 = vor.u32 %v1628_v43, %v1625_v42  ;;  %v1724_v32 = vrot.slane %v1722_v18, 5  ;;  %v1668_v43 = vrot.slane %v1666_v26, 5 }
 0x12b   : > { %v1142_v2 = vpop.permute.xlu1 %1141 }
 0x12c   : > { %1209 = vst.msk [vmem:[#allocation2 + $0x74] sm:$0xf] %vm1179_vm8, %v1142_v2  ;;  %v1140_v8 = vpop.permute.xlu0 %1139  ;;  %v1286_v12 = vpop.permute.xlu2 %1285  ;;  %v5201_v55 = vrot.slane %v1680_v45, 5  ;;  %v4068_v2 = vld [vmem:[%s4586_s23 + $0x80] sm:$0x1]  ;;  %v1630_v7 = vrot.slane %v1629_v58, 4  ;;  %v1725_v50 = vor.u32 %v1724_v32, %v1721_v31 }
 0x12d   : > { %1208 = vst.msk [vmem:[#allocation2 + $0x70] sm:$0xf] %vm1179_vm8, %v1140_v8  ;;  %v1662_v8 = vrot.slane %v1660_v56, 4  ;;  %v1690_v11 = vshll.u32 %v4068_v2, 16  ;;  %v1752_v45 = vshll.u32 %v4076_v34, 16  ;;  %v1714_v56 = vshll.u32 %v4071_v41, 16 }
 0x12e   : > { %1378 = vst.msk [vmem:[#allocation2 + $0x10] sm:$0xf] %vm1373_vm9, %v1286_v12  ;;  %v1687_v10 = vor.u32 %v1686_v59, %v5201_v55  ;;  %v1677_v12 = vor.u32 %v1676_v61, %v1673_v60  ;;  %v1635_v23 = vsel %vm4597_vm2, %v1630_v7, %v5182_v30  ;;  %v1710_v30 = vrot.slane %v1708_v20, 4  ;;  %v4077_v60 = vld [vmem:[%s4586_s23 + $0xa4] sm:$0x1] }
 0x12f   : > { %v1663_v24 = vor.u32 %v1662_v8, %v1658_v63  ;;  %v1692_v28 = vrot.slane %v1690_v11, 5  ;;  %v1732_v58 = vshrl.u32 %v4073_v37, 16  ;;  %v5243_v61 = vrot.slane %v1752_v45, 5  ;;  %v4082_v32 = vld [vmem:[%s4586_s23 + $0xb8] sm:$0xf] }
 0x130   : > { %v1688_v27 = vrot.slane %v1687_v10, 4  ;;  %v1678_v29 = vrot.slane %v1677_v12, 4  ;;  %v1716_v4 = vrot.slane %v1714_v56, 5  ;;  %v1762_v8 = vshll.u32 %v4077_v60, 16 }
 0x131   : > { %1858 = vrot.lane.b32.xlu1 %v1587_v15, %s4537_s27  ;;  %v1659_v15 = vsel %vm4597_vm2, %v1654_v62, %v1658_v63  ;;  %v1664_v42 = vrot.slane %v1663_v24, 4  ;;  %v1758_v62 = vrot.slane %v1756_v46, 4  ;;  %v1734_v10 = vrot.slane %v1732_v58, 4 }
 0x132   : > { %1856 = vrot.lane.b32.xlu0 %v1573_v16, %s4537_s27  ;;  %1854 = vrot.lane.b32.xlu2 %v1563_v22, %s4537_s27  ;;  %v1645_v16 = vsel %vm4597_vm2, %v1640_v52, %v1644_v0  ;;  %v1698_v22 = vshll.u32 %v4069_v9, 16  ;;  %v1693_v49 = vsel %vm4597_vm2, %v1688_v27, %v1692_v28  ;;  %v1683_v53 = vsel %vm4597_vm2, %v1678_v29, %v5201_v55  ;;  %v4079_v9 = vld [vmem:[%s4586_s23 + $0xac] sm:$0xf] }
 0x133   : > { %v1278_v36 = vpop.permute.xlu1 %1277  ;;  %v1669_v59 = vsel %vm4597_vm2, %v1664_v42, %v1668_v43  ;;  %v1726_v55 = vrot.slane %v1725_v50, 4  ;;  %v1730_v0 = vrot.slane %v1728_v51, 5  ;;  %v1759_v11 = vor.u32 %v1758_v62, %v5243_v61 }
 0x134   : > { %1374 = vst.msk [vmem:[#allocation2] sm:$0xf] %vm1373_vm9, %v1278_v36  ;;  %v1146_v39 = vpop.permute.xlu0 %1145  ;;  %v1292_v44 = vpop.permute.xlu2 %1291  ;;  %v4075_v36 = vld [vmem:[%s4586_s23 + $0x9c] sm:$0xf]  ;;  %v1776_v21 = vshll.u32 %v4079_v9, 16  ;;  %v1738_v24 = vshll.u32 %v4074_v14, 16 }
 0x135   : > { %1211 = vst.msk [vmem:[#allocation2 + $0x7c] sm:$0xf] %vm1179_vm8, %v1146_v39  ;;  %v1700_v39 = vrot.slane %v1698_v22, 5  ;;  %v1743_v47 = vshrl.u32 %v4075_v36, 16  ;;  %v1746_v48 = vshll.u32 %v4075_v36, 16  ;;  %v1780_v22 = vshrl.u32 %v4079_v9, 16 }
 0x136   : > { %1381 = vst.msk [vmem:[#allocation2 + $0x1c] sm:$0xf] %vm1373_vm9, %v1292_v44  ;;  %v1760_v28 = vrot.slane %v1759_v11, 4  ;;  %v1764_v29 = vrot.slane %v1762_v8, 5  ;;  %v1740_v42 = vrot.slane %v1738_v24, 5  ;;  %v1804_v58 = vshrl.u32 %v4082_v32, 16 }
 0x137   : > { %v1745_v63 = vrot.slane %v1743_v47, 4  ;;  %v1748_v52 = vrot.slane %v1746_v48, 5  ;;  %v4088_v24 = vld [vmem:[%s4586_s23 + $0x10] sm:$0xf] }
 0x138   : > { %v1765_v45 = vsel %vm4597_vm2, %v1760_v28, %v1764_v29  ;;  %v1806_v8 = vrot.slane %v1804_v58, 4 }
 0x139   : > { %1864 = vrot.lane.b32.xlu1 %v1621_v33, %s4537_s27  ;;  %v1749_v12 = vor.u32 %v1748_v52, %v1745_v63 }
 0x13a   : > { %1862 = vrot.lane.b32.xlu0 %v1611_v54, %s4537_s27  ;;  %1860 = vrot.lane.b32.xlu2 %v1597_v57, %s4537_s27  ;;  %v1711_v54 = vor.u32 %v1710_v30, %v5227_v35  ;;  %v1701_v57 = vor.u32 %v1700_v39, %v1697_v38  ;;  %v1782_v30 = vrot.slane %v1780_v22, 4  ;;  %v4085_v38 = vld [vmem:[%s4586_s23 + $0xc4] sm:$0xf]  ;;  %v4084_v39 = vld [vmem:[%s4586_s23 + $0xc0] sm:$0xf] }
 0x13b   : > { %v1284_v3 = vpop.permute.xlu1 %1283  ;;  %v1750_v31 = vrot.slane %v1749_v12, 4  ;;  %v1824_v50 = vshll.u32 %v4085_v38, 16  ;;  %v1828_v51 = vshrl.u32 %v4085_v38, 16  ;;  %v1815_v56 = vshrl.u32 %v4084_v39, 16 }
 0x13c   : > { %1377 = vst.msk [vmem:[#allocation2 + $0xc] sm:$0xf] %vm1373_vm9, %v1284_v3  ;;  %v1282_v6 = vpop.permute.xlu0 %1281  ;;  %v1298_v13 = vpop.permute.xlu2 %1297  ;;  %v1712_v3 = vrot.slane %v1711_v54, 4  ;;  %v1702_v5 = vrot.slane %v1701_v57, 4  ;;  %v1818_v57 = vshll.u32 %v4084_v39, 16 }
 0x13d   : > { %1376 = vst.msk [vmem:[#allocation2 + $0x8] sm:$0xf] %vm1373_vm9, %v1282_v6  ;;  %v4081_v6 = vld [vmem:[%s4586_s23 + $0xb4] sm:$0xf]  ;;  %v1755_v46 = vsel %vm4597_vm2, %v1750_v31, %v5243_v61  ;;  %v1826_v63 = vrot.slane %v1824_v50, 5  ;;  %v1830_v52 = vrot.slane %v1828_v51, 4 }
 0x13e   : > { %1384 = vst.msk [vmem:[#allocation2 + $0x28] sm:$0xf] %vm1373_vm9, %v1298_v13  ;;  %v1791_v17 = vshrl.u32 %v4081_v6, 16  ;;  %v1794_v18 = vshll.u32 %v4081_v6, 16  ;;  %v1717_v19 = vsel %vm4597_vm2, %v1712_v3, %v1716_v4  ;;  %v1707_v20 = vsel %vm4597_vm2, %v1702_v5, %v5227_v35  ;;  %v4086_v3 = vld [vmem:[%s4586_s23 + $0xc8] sm:$0x1] }
 0x13f   : > { %v1778_v35 = vrot.slane %v1776_v21, 5  ;;  %v1817_v4 = vrot.slane %v1815_v56, 4  ;;  %v1820_v5 = vrot.slane %v1818_v57, 5  ;;  %v1831_v12 = vor.u32 %v1830_v52, %v1826_v63  ;;  %v4093_v50 = vld [vmem:[%s4586_s23 + $0x24] sm:$0xe] }
 0x140   : > { %v1793_v34 = vrot.slane %v1791_v17, 4  ;;  %v1796_v36 = vrot.slane %v1794_v18, 5  ;;  %v4137_v58 = vrot.slane %v4093_v50, 9 }
 0x141   : > { %1870 = vrot.lane.b32.xlu1 %v1659_v15, %s4537_s27  ;;  %v4078_v15 = vld [vmem:[%s4586_s23 + $0xa8] sm:$0xf] }
 0x142   : > { %1868 = vrot.lane.b32.xlu0 %v1645_v16, %s4537_s27  ;;  %1866 = vrot.lane.b32.xlu2 %v1635_v23, %s4537_s27  ;;  %v1731_v16 = vsel %vm4597_vm2, %v1726_v55, %v1730_v0  ;;  %v1735_v23 = vor.u32 %v1734_v10, %v1730_v0  ;;  %v1767_v26 = vshrl.u32 %v4078_v15, 16  ;;  %v1770_v27 = vshll.u32 %v4078_v15, 16  ;;  %v4083_v10 = vld [vmem:[%s4586_s23 + $0xbc] sm:$0x1] }
 0x143   : > { %v1290_v33 = vpop.permute.xlu1 %1289  ;;  %v1797_v48 = vor.u32 %v1796_v36, %v1793_v34  ;;  %v1821_v15 = vor.u32 %v1820_v5, %v1817_v4  ;;  %v1810_v18 = vshll.u32 %v4083_v10, 16  ;;  %v4091_v34 = vld [vmem:[%s4586_s23 + $0x1c] sm:$0xf]  ;;  %v2065_v36 = vrot.slane %v4088_v24, 5  ;;  %v4098_v4 = vld [vmem:[%s4586_s23 + $0x38] sm:$0x1] }
 0x144   : > { %1380 = vst.msk [vmem:[#allocation2 + $0x18] sm:$0xf] %vm1373_vm9, %v1290_v33  ;;  %v1288_v40 = vpop.permute.xlu0 %1287  ;;  %v1304_v44 = vpop.permute.xlu2 %1303  ;;  %v4080_v33 = vld [vmem:[%s4586_s23 + $0xb0] sm:$0x1]  ;;  %v1736_v41 = vrot.slane %v1735_v23, 4  ;;  %v1769_v43 = vrot.slane %v1767_v26, 4 }
 0x145   : > { %1379 = vst.msk [vmem:[#allocation2 + $0x14] sm:$0xf] %vm1373_vm9, %v1288_v40  ;;  %v1786_v54 = vshll.u32 %v4080_v33, 16  ;;  %v1798_v61 = vrot.slane %v1797_v48, 4  ;;  %v1822_v22 = vrot.slane %v1821_v15, 4  ;;  %v2072_v38 = vrot.slane %v4091_v34, 5 }
 0x146   : > { %1387 = vst.msk [vmem:[#allocation2 + $0x34] sm:$0xf] %vm1373_vm9, %v1304_v44  ;;  %v1772_v44 = vrot.slane %v1770_v27, 5  ;;  %v1812_v27 = vrot.slane %v1810_v18, 5  ;;  %v4089_v33 = vld [vmem:[%s4586_s23 + $0x14] sm:$0x1] }
 0x147   : > { %v1827_v31 = vsel %vm4597_vm2, %v1822_v22, %v1826_v63  ;;  %v4101_v22 = vld [vmem:[%s4586_s23 + $0x44] sm:$0x1] }
 0x148   : > { %v1773_v60 = vor.u32 %v1772_v44, %v1769_v43 }
 0x149   : > { %1876 = vrot.lane.b32.xlu1 %v1693_v49, %s4537_s27  ;;  %v1800_v49 = vshll.u32 %v4082_v32, 16  ;;  %v4090_v32 = vld [vmem:[%s4586_s23 + $0x18] sm:$0xe] }
 0x14a   : > { %1874 = vrot.lane.b32.xlu0 %v1683_v53, %s4537_s27  ;;  %1872 = vrot.lane.b32.xlu2 %v1669_v59, %s4537_s27  ;;  %v1783_v53 = vor.u32 %v1782_v30, %v1778_v35  ;;  %v1741_v59 = vsel %vm4597_vm2, %v1736_v41, %v1740_v42  ;;  %v4136_v30 = vrot.slane %v4090_v32, 9  ;;  %v2068_v41 = vrot.slane %v4089_v33, 5  ;;  %v4094_v42 = vld [vmem:[%s4586_s23 + $0x28] sm:$0xf] }
 0x14b   : > { %v1296_v2 = vpop.permute.xlu1 %1295  ;;  %v1802_v62 = vrot.slane %v1800_v49, 5  ;;  %v4095_v49 = vld [vmem:[%s4586_s23 + $0x2c] sm:$0x1]  ;;  %v2096_v32 = vrot.slane %v4101_v22, 5 }
 0x14c   : > { %1383 = vst.msk [vmem:[#allocation2 + $0x24] sm:$0xf] %vm1373_vm9, %v1296_v2  ;;  %v1294_v7 = vpop.permute.xlu0 %1293  ;;  %v1310_v13 = vpop.permute.xlu2 %1309  ;;  %v1784_v0 = vrot.slane %v1783_v53, 4  ;;  %v1788_v2 = vrot.slane %v1786_v54, 5  ;;  %v4092_v53 = vld [vmem:[%s4586_s23 + $0x20] sm:$0x1] }
 0x14d   : > { %1382 = vst.msk [vmem:[#allocation2 + $0x20] sm:$0xf] %vm1373_vm9, %v1294_v7  ;;  %v1774_v7 = vrot.slane %v1773_v60, 4  ;;  %v1803_v11 = vsel %vm4597_vm2, %v1798_v61, %v1802_v62  ;;  %v1807_v17 = vor.u32 %v1806_v8, %v1802_v62  ;;  %v2082_v56 = vrot.slane %v4095_v49, 5  ;;  %v4097_v60 = vld [vmem:[%s4586_s23 + $0x34] sm:$0xf] }
 0x14e   : > { %1390 = vst.msk [vmem:[#allocation2 + $0x40] sm:$0xf] %vm1373_vm9, %v1310_v13  ;;  %v1834_v13 = vshll.u32 %v4086_v3, 16  ;;  %v1789_v14 = vsel %vm4597_vm2, %v1784_v0, %v1788_v2  ;;  %v2074_v61 = vrot.slane %v2072_v38, 4  ;;  %v2075_v62 = vrot.slane %v4092_v53, 5 }
 0x14f   : > { %v1808_v26 = vrot.slane %v1807_v17, 4  ;;  %v4099_v0 = vld [vmem:[%s4586_s23 + $0x3c] sm:$0xe]  ;;  %v4100_v2 = vld [vmem:[%s4586_s23 + $0x40] sm:$0xf]  ;;  %v2086_v3 = vrot.slane %v4097_v60, 5 }
 0x150   : > { %v2076_v5 = vsel %vm4772_vm6, %v2074_v61, %v2075_v62  ;;  %v2093_v8 = vrot.slane %v4100_v2, 5 }
 0x151   : > { %1882 = vrot.lane.b32.xlu1 %v1731_v16, %s4537_s27  ;;  %v1779_v16 = vsel %vm4597_vm2, %v1774_v7, %v1778_v35  ;;  %v4087_v35 = vld [vmem:[%s4586_s23 + $0xc] sm:$0xe]  ;;  %v4139_v7 = vrot.slane %v4099_v0, 9  ;;  %v2088_v10 = vrot.slane %v2086_v3, 4 }
 0x152   : > { %1880 = vrot.lane.b32.xlu0 %v1717_v19, %s4537_s27  ;;  %1878 = vrot.lane.b32.xlu2 %v1707_v20, %s4537_s27  ;;  %v1832_v19 = vrot.slane %v1831_v12, 4  ;;  %v1836_v20 = vrot.slane %v1834_v13, 5  ;;  %v4135_v44 = vrot.slane %v4087_v35, 9  ;;  %v4103_v12 = vld [vmem:[%s4586_s23 + $0x4c] sm:$0xf] }
 0x153   : > { %v1302_v37 = vpop.permute.xlu1 %1301  ;;  %v2100_v17 = vrot.slane %v4103_v12, 5  ;;  %v4109_v35 = vld [vmem:[%s4586_s23 + $0x64] sm:$0xf] }
 0x154   : > { %1386 = vst.msk [vmem:[#allocation2 + $0x30] sm:$0xf] %vm1373_vm9, %v1302_v37  ;;  %v1300_v40 = vpop.permute.xlu0 %1299  ;;  %v1316_v47 = vpop.permute.xlu2 %1315  ;;  %v1837_v29 = vsel %vm4597_vm2, %v1832_v19, %v1836_v20  ;;  %v1813_v37 = vsel %vm4597_vm2, %v1808_v26, %v1812_v27  ;;  %v2066_v51 = vsel %vm4772_vm6, %v4135_v44, %v2065_v36  ;;  %v4104_v19 = vld [vmem:[%s4586_s23 + $0x50] sm:$0x1]  ;;  %v4102_v20 = vld [vmem:[%s4586_s23 + $0x48] sm:$0xe] }
 0x155   : > { %1385 = vst.msk [vmem:[#allocation2 + $0x2c] sm:$0xf] %vm1373_vm9, %v1300_v40  ;;  %v2067_v40 = vrot.slane %v2065_v36, 4  ;;  %v2103_v24 = vrot.slane %v4104_v19, 5  ;;  %v4140_v27 = vrot.slane %v4102_v20, 9 }
 0x156   : > { %1393 = vst.msk [vmem:[#allocation2 + $0x4c] sm:$0xf] %vm1373_vm9, %v1316_v47  ;;  %v2079_v47 = vrot.slane %v4094_v42, 5  ;;  %v2114_v42 = vrot.slane %v4109_v35, 5 }
 0x157   : > { %v2069_v48 = vsel %vm4772_vm6, %v2067_v40, %v2068_v41  ;;  %v2101_v33 = vsel %vm4772_vm6, %v4140_v27, %v2100_v17  ;;  %v4105_v40 = vld [vmem:[%s4586_s23 + $0x54] sm:$0xe]  ;;  %v4119_v27 = vld [vmem:[%s4586_s23 + $0x8c] sm:$0x1] }
 0x158   : > { %v2081_v54 = vrot.slane %v2079_v47, 4  ;;  %v2138_v35 = vrot.slane %v4119_v27, 5  ;;  %v4186_v27 = vld [vmem:[%s4586_s23 + $0x24] sm:$0xf] }
 0x159   : > { %1888 = vrot.lane.b32.xlu1 %v1765_v45, %s4537_s27 }
 0x15a   : > { %1886 = vrot.lane.b32.xlu0 %v1755_v46, %s4537_s27  ;;  %1884 = vrot.lane.b32.xlu2 %v1741_v59, %s4537_s27  ;;  %v2073_v46 = vsel %vm4772_vm6, %v4136_v30, %v2072_v38  ;;  %v2083_v52 = vsel %vm4772_vm6, %v2081_v54, %v2082_v56  ;;  %v4107_v38 = vld [vmem:[%s4586_s23 + $0x5c] sm:$0x1]  ;;  %v4113_v54 = vld [vmem:[%s4586_s23 + $0x74] sm:$0x1] }
 0x15b   : > { %v1308_v55 = vpop.permute.xlu1 %1307  ;;  %v4111_v56 = vld [vmem:[%s4586_s23 + $0x6c] sm:$0xe]  ;;  %v2124_v60 = vrot.slane %v4113_v54, 5 }
 0x15c   : > { %1389 = vst.msk [vmem:[#allocation2 + $0x3c] sm:$0xf] %vm1373_vm9, %v1308_v55  ;;  %v1306_v6 = vpop.permute.xlu0 %1305  ;;  %v1322_v9 = vpop.permute.xlu2 %1321  ;;  %v2080_v55 = vsel %vm4772_vm6, %v4137_v58, %v2079_v47  ;;  %v4110_v58 = vld [vmem:[%s4586_s23 + $0x68] sm:$0x1]  ;;  %v4143_v62 = vrot.slane %v4111_v56, 9 }
 0x15d   : > { %1388 = vst.msk [vmem:[#allocation2 + $0x38] sm:$0xf] %vm1373_vm9, %v1306_v6  ;;  %v4096_v6 = vld [vmem:[%s4586_s23 + $0x30] sm:$0xe]  ;;  %v2117_v0 = vrot.slane %v4110_v58, 5 }
 0x15e   : > { %1396 = vst.msk [vmem:[#allocation2 + $0x58] sm:$0xf] %vm1373_vm9, %v1322_v9 }
 0x161   : > { %1894 = vrot.lane.b32.xlu1 %v1803_v11, %s4537_s27  ;;  %v2089_v11 = vrot.slane %v4098_v4, 5 }
 0x162   : > { %1892 = vrot.lane.b32.xlu0 %v1789_v14, %s4537_s27  ;;  %1890 = vrot.lane.b32.xlu2 %v1779_v16, %s4537_s27  ;;  %v4138_v14 = vrot.slane %v4096_v6, 9  ;;  %v2094_v16 = vsel %vm4772_vm6, %v4139_v7, %v2093_v8  ;;  %v4118_v6 = vld [vmem:[%s4586_s23 + $0x88] sm:$0xf] }
 0x163   : > { %v1314_v21 = vpop.permute.xlu1 %1313  ;;  %v2090_v18 = vsel %vm4772_vm6, %v2088_v10, %v2089_v11  ;;  %v4114_v10 = vld [vmem:[%s4586_s23 + $0x78] sm:$0xe]  ;;  %v2135_v12 = vrot.slane %v4118_v6, 5 }
 0x164   : > { %1392 = vst.msk [vmem:[#allocation2 + $0x48] sm:$0xf] %vm1373_vm9, %v1314_v21  ;;  %v1312_v23 = vpop.permute.xlu0 %1311  ;;  %v1328_v28 = vpop.permute.xlu2 %1327  ;;  %v2087_v21 = vsel %vm4772_vm6, %v4138_v14, %v2086_v3 }
 0x165   : > { %1391 = vst.msk [vmem:[#allocation2 + $0x44] sm:$0xf] %vm1373_vm9, %v1312_v23  ;;  %v2102_v23 = vrot.slane %v2100_v17, 4 }
 0x166   : > { %1399 = vst.msk [vmem:[#allocation2 + $0x64] sm:$0xf] %vm1373_vm9, %v1328_v28 }
 0x167   : > { %v2104_v36 = vsel %vm4772_vm6, %v2102_v23, %v2103_v24  ;;  %v4122_v23 = vld [vmem:[%s4586_s23 + $0x98] sm:$0x1]  ;;  %v4120_v24 = vld [vmem:[%s4586_s23 + $0x90] sm:$0xe] }
 0x169   : > { %1900 = vrot.lane.b32.xlu1 %v1837_v29, %s4537_s27  ;;  %v4106_v29 = vld [vmem:[%s4586_s23 + $0x58] sm:$0xf] }
 0x16a   : > { %1898 = vrot.lane.b32.xlu0 %v1827_v31, %s4537_s27  ;;  %1896 = vrot.lane.b32.xlu2 %v1813_v37, %s4537_s27  ;;  %v2095_v31 = vrot.slane %v2093_v8, 4  ;;  %v4108_v37 = vld [vmem:[%s4586_s23 + $0x60] sm:$0xe]  ;;  %v2107_v30 = vrot.slane %v4106_v29, 5  ;;  %v4116_v8 = vld [vmem:[%s4586_s23 + $0x80] sm:$0x1] }
 0x16b   : > { %v1320_v39 = vpop.permute.xlu1 %1319  ;;  %v4142_v41 = vrot.slane %v4108_v37, 9  ;;  %v2145_v29 = vrot.slane %v4122_v23, 5  ;;  %v2137_v37 = vrot.slane %v2135_v12, 4 }
 0x16c   : > { %1395 = vst.msk [vmem:[#allocation2 + $0x54] sm:$0xf] %vm1373_vm9, %v1320_v39  ;;  %v1318_v43 = vpop.permute.xlu0 %1317  ;;  %v1334_v45 = vpop.permute.xlu2 %1333  ;;  %v2097_v39 = vsel %vm4772_vm6, %v2095_v31, %v2096_v32  ;;  %v2109_v44 = vrot.slane %v2107_v30, 4  ;;  %v4146_v32 = vrot.slane %v4120_v24, 9 }
 0x16d   : > { %1394 = vst.msk [vmem:[#allocation2 + $0x50] sm:$0xf] %vm1373_vm9, %v1318_v43  ;;  %v2115_v50 = vsel %vm4772_vm6, %v4142_v41, %v2114_v42 }
 0x16e   : > { %1402 = vst.msk [vmem:[#allocation2 + $0x70] sm:$0xf] %vm1373_vm9, %v1334_v45  ;;  %v2110_v45 = vrot.slane %v4107_v38, 5 }
 0x170   : > { %v2111_v53 = vsel %vm4772_vm6, %v2109_v44, %v2110_v45  ;;  %v4125_v45 = vld [vmem:[%s4586_s23 + $0xa4] sm:$0x1] }
 0x171   : > { %2179 = vrot.lane.b32.xlu1 %v2073_v46, %s4538_s28  ;;  %v4112_v46 = vld [vmem:[%s4586_s23 + $0x70] sm:$0xf]  ;;  %v2152_v56 = vrot.slane %v4125_v45, 5 }
 0x172   : > { %2177 = vrot.lane.b32.xlu0 %v2069_v48, %s4538_s28  ;;  %2175 = vrot.lane.b32.xlu2 %v2066_v51, %s4538_s28  ;;  %v4141_v48 = vrot.slane %v4105_v40, 9  ;;  %v2121_v51 = vrot.slane %v4112_v46, 5  ;;  %v2139_v46 = vsel %vm4772_vm6, %v2137_v37, %v2138_v35 }
 0x173   : > { %v1326_v57 = vpop.permute.xlu1 %1325 }
 0x174   : > { %1398 = vst.msk [vmem:[#allocation2 + $0x60] sm:$0xf] %vm1373_vm9, %v1326_v57  ;;  %v1324_v59 = vpop.permute.xlu0 %1323  ;;  %v1340_v63 = vpop.permute.xlu2 %1339  ;;  %v2108_v57 = vsel %vm4772_vm6, %v4141_v48, %v2107_v30  ;;  %v2122_v4 = vsel %vm4772_vm6, %v4143_v62, %v2121_v51 }
 0x175   : > { %1397 = vst.msk [vmem:[#allocation2 + $0x5c] sm:$0xf] %vm1373_vm9, %v1324_v59  ;;  %v2123_v59 = vrot.slane %v2121_v51, 4 }
 0x176   : > { %1405 = vst.msk [vmem:[#allocation2 + $0x7c] sm:$0xf] %vm1373_vm9, %v1340_v63 }
 0x177   : > { %v2125_v3 = vsel %vm4772_vm6, %v2123_v59, %v2124_v60 }
 0x179   : > { %2185 = vrot.lane.b32.xlu1 %v2083_v52, %s4538_s28  ;;  %v4115_v52 = vld [vmem:[%s4586_s23 + $0x7c] sm:$0xf] }
 0x17a   : > { %2183 = vrot.lane.b32.xlu0 %v2080_v55, %s4538_s28  ;;  %2181 = vrot.lane.b32.xlu2 %v2076_v5, %s4538_s28  ;;  %v2116_v55 = vrot.slane %v2114_v42, 4  ;;  %v4117_v5 = vld [vmem:[%s4586_s23 + $0x84] sm:$0xe]  ;;  %v2128_v7 = vrot.slane %v4115_v52, 5  ;;  %v4126_v42 = vld [vmem:[%s4586_s23 + $0xa8] sm:$0xe] }
 0x17b   : > { %v1332_v9 = vpop.permute.xlu1 %1331  ;;  %v4145_v11 = vrot.slane %v4117_v5, 9  ;;  %v4148_v48 = vrot.slane %v4126_v42, 9  ;;  %v4232_v5 = vld [vmem:[%s4586_s23 + $0x1c] sm:$0xf] }
 0x17c   : > { %1401 = vst.msk [vmem:[#allocation2 + $0x6c] sm:$0xf] %vm1373_vm9, %v1332_v9  ;;  %v1330_v13 = vpop.permute.xlu0 %1329  ;;  %v1843_v15 = vpop.permute.xlu2 %1842  ;;  %v2118_v9 = vsel %vm4772_vm6, %v2116_v55, %v2117_v0  ;;  %v2130_v14 = vrot.slane %v2128_v7, 4 }
 0x17d   : > { %1400 = vst.msk [vmem:[#allocation2 + $0x68] sm:$0xf] %vm1373_vm9, %v1330_v13  ;;  %v2136_v20 = vsel %vm4772_vm6, %v4145_v11, %v2135_v12  ;;  %v3157_v11 = vrot.slane %v4232_v5, 5  ;;  %v4152_v12 = vld [vmem:[%s4586_s23 + $0x1c] sm:$0xf] }
 0x17e   : > { %1937 = vst.msk [vmem:[#allocation2 + $0x8] sm:$0xf] %vm1934_vm10, %v1843_v15  ;;  %v2131_v15 = vrot.slane %v4116_v8, 5 }
 0x180   : > { %v2132_v22 = vsel %vm4772_vm6, %v2130_v14, %v2131_v15  ;;  %v4231_v14 = vld [vmem:[%s4586_s23 + $0x18] sm:$0xe] }
 0x181   : > { %2191 = vrot.lane.b32.xlu1 %v2094_v16, %s4538_s28  ;;  %v4121_v16 = vld [vmem:[%s4586_s23 + $0x94] sm:$0xf]  ;;  %v4151_v15 = vld [vmem:[%s4586_s23 + $0x18] sm:$0xf] }
 0x182   : > { %2189 = vrot.lane.b32.xlu0 %v2090_v18, %s4538_s28  ;;  %2187 = vrot.lane.b32.xlu2 %v2087_v21, %s4538_s28  ;;  %v4144_v18 = vrot.slane %v4114_v10, 9  ;;  %v2142_v21 = vrot.slane %v4121_v16, 5 }
 0x183   : > { %v1338_v26 = vpop.permute.xlu1 %1337 }
 0x184   : > { %1404 = vst.msk [vmem:[#allocation2 + $0x78] sm:$0xf] %vm1373_vm9, %v1338_v26  ;;  %v1336_v28 = vpop.permute.xlu0 %1335  ;;  %v1849_v34 = vpop.permute.xlu2 %1848  ;;  %v2129_v26 = vsel %vm4772_vm6, %v4144_v18, %v2128_v7  ;;  %v2143_v41 = vsel %vm4772_vm6, %v4146_v32, %v2142_v21  ;;  %v3159_v18 = vrot.slane %v3157_v11, 4 }
 0x185   : > { %1403 = vst.msk [vmem:[#allocation2 + $0x74] sm:$0xf] %vm1373_vm9, %v1336_v28  ;;  %v2144_v28 = vrot.slane %v2142_v21, 4  ;;  %v4279_v21 = vrot.slane %v4231_v14, 9 }
 0x186   : > { %1940 = vst.msk [vmem:[#allocation2 + $0x14] sm:$0xf] %vm1934_vm10, %v1849_v34  ;;  %v4183_v34 = vld [vmem:[%s4586_s23 + $0x18] sm:$0xf] }
 0x187   : > { %v2146_v38 = vsel %vm4772_vm6, %v2144_v28, %v2145_v29  ;;  %v2550_v40 = vshll.u32 %v4183_v34, 16 }
 0x189   : > { %2197 = vrot.lane.b32.xlu1 %v2104_v36, %s4538_s28  ;;  %v2552_v51 = vrot.slane %v2550_v40, 5 }
 0x18a   : > { %2195 = vrot.lane.b32.xlu0 %v2101_v33, %s4538_s28  ;;  %2193 = vrot.lane.b32.xlu2 %v2097_v39, %s4538_s28  ;;  %v4124_v33 = vld [vmem:[%s4586_s23 + $0xa0] sm:$0xf]  ;;  %v2547_v39 = vshrl.u32 %v4183_v34, 16  ;;  %v3158_v34 = vsel %vm4772_vm6, %v4279_v21, %v3157_v11 }
 0x18b   : > { %v1841_v43 = vpop.permute.xlu1 %1840  ;;  %v2149_v44 = vrot.slane %v4124_v33, 5  ;;  %v2574_v33 = vshll.u32 %v4186_v27, 16 }
 0x18c   : > { %1936 = vst.msk [vmem:[#allocation2 + $0x4] sm:$0xf] %vm1934_vm10, %v1841_v43  ;;  %v1839_v47 = vpop.permute.xlu0 %1838  ;;  %v1855_v49 = vpop.permute.xlu2 %1854  ;;  %v5439_v43 = vld [vmem:[%s4586_s23 + $0xac] sm:$0xf] }
 0x18d   : > { %1935 = vst.msk [vmem:[#allocation2] sm:$0xf] %vm1934_vm10, %v1839_v47  ;;  %v4123_v47 = vld [vmem:[%s4586_s23 + $0x9c] sm:$0xe]  ;;  %v2151_v54 = vrot.slane %v2149_v44, 4 }
 0x18e   : > { %1943 = vst.msk [vmem:[#allocation2 + $0x20] sm:$0xf] %vm1934_vm10, %v1855_v49  ;;  %v2156_v49 = vrot.slane %v5439_v43, 5  ;;  %v4147_v59 = vrot.slane %v4123_v47, 9  ;;  %v4159_v47 = vld [vmem:[%s4586_s23 + $0x48] sm:$0xf] }
 0x18f   : > { %v2153_v52 = vsel %vm4772_vm6, %v2151_v54, %v2152_v56 }
 0x190   : > { %v2150_v0 = vsel %vm4772_vm6, %v4147_v59, %v2149_v44  ;;  %v4196_v44 = vld [vmem:[%s4586_s23 + $0x4c] sm:$0xf] }
 0x191   : > { %2203 = vrot.lane.b32.xlu1 %v2115_v50, %s4538_s28  ;;  %v2549_v50 = vrot.slane %v2547_v39, 4  ;;  %v4188_v39 = vld [vmem:[%s4586_s23 + $0x2c] sm:$0x1]  ;;  %v2652_v54 = vshll.u32 %v4196_v44, 16  ;;  %v2656_v56 = vshrl.u32 %v4196_v44, 16 }
 0x192   : > { %2201 = vrot.lane.b32.xlu0 %v2111_v53, %s4538_s28  ;;  %2199 = vrot.lane.b32.xlu2 %v2108_v57, %s4538_s28  ;;  %v4184_v57 = vld [vmem:[%s4586_s23 + $0x1c] sm:$0xf] }
 0x193   : > { %v1847_v61 = vpop.permute.xlu1 %1846  ;;  %v2553_v62 = vor.u32 %v2552_v51, %v2549_v50  ;;  %v2560_v55 = vshrl.u32 %v4184_v57, 16  ;;  %v2590_v50 = vshll.u32 %v4188_v39, 16  ;;  %v4154_v51 = vld [vmem:[%s4586_s23 + $0x28] sm:$0xf] }
 0x194   : > { %1939 = vst.msk [vmem:[#allocation2 + $0x10] sm:$0xf] %vm1934_vm10, %v1847_v61  ;;  %v1845_v63 = vpop.permute.xlu0 %1844  ;;  %v1861_v2 = vpop.permute.xlu2 %1860  ;;  %v2157_v61 = vsel %vm4772_vm6, %v4148_v48, %v2156_v49 }
 0x195   : > { %1938 = vst.msk [vmem:[#allocation2 + $0xc] sm:$0xf] %vm1934_vm10, %v1845_v63  ;;  %v2556_v63 = vshll.u32 %v4184_v57, 16  ;;  %v2562_v7 = vrot.slane %v2560_v55, 4  ;;  %v4153_v57 = vld [vmem:[%s4586_s23 + $0x24] sm:$0xf] }
 0x196   : > { %1946 = vst.msk [vmem:[#allocation2 + $0x2c] sm:$0xf] %vm1934_vm10, %v1861_v2  ;;  %v2554_v2 = vrot.slane %v2553_v62, 4  ;;  %v2658_v55 = vrot.slane %v2656_v56, 4 }
 0x199   : > { %2209 = vrot.lane.b32.xlu1 %v2125_v3, %s4538_s28  ;;  %v2558_v3 = vrot.slane %v2556_v63, 5 }
 0x19a   : > { %2207 = vrot.lane.b32.xlu0 %v2122_v4, %s4538_s28  ;;  %2205 = vrot.lane.b32.xlu2 %v2118_v9, %s4538_s28  ;;  %v4185_v9 = vld [vmem:[%s4586_s23 + $0x20] sm:$0x1] }
 0x19b   : > { %v1853_v13 = vpop.permute.xlu1 %1852  ;;  %v2559_v10 = vsel %vm4597_vm2, %v2554_v2, %v2558_v3  ;;  %v2563_v16 = vor.u32 %v2562_v7, %v2558_v3  ;;  %v4197_v2 = vld [vmem:[%s4586_s23 + $0x50] sm:$0x1] }
 0x19c   : > { %1942 = vst.msk [vmem:[#allocation2 + $0x1c] sm:$0xf] %vm1934_vm10, %v1853_v13  ;;  %v1851_v17 = vpop.permute.xlu0 %1850  ;;  %v1867_v19 = vpop.permute.xlu2 %1866  ;;  %v4233_v13 = vld [vmem:[%s4586_s23 + $0x20] sm:$0x1]  ;;  %v2662_v11 = vshll.u32 %v4197_v2, 16 }
 0x19d   : > { %1941 = vst.msk [vmem:[#allocation2 + $0x18] sm:$0xf] %vm1934_vm10, %v1851_v17  ;;  %v2566_v17 = vshll.u32 %v4185_v9, 16  ;;  %v2564_v24 = vrot.slane %v2563_v16, 4  ;;  %v4235_v9 = vld [vmem:[%s4586_s23 + $0x28] sm:$0xf] }
 0x19e   : > { %1949 = vst.msk [vmem:[#allocation2 + $0x38] sm:$0xf] %vm1934_vm10, %v1867_v19  ;;  %v3160_v19 = vrot.slane %v4233_v13, 5  ;;  %v4255_v2 = vld [vmem:[%s4586_s23 + $0x78] sm:$0xe] }
 0x1a0   : > { %v3161_v29 = vsel %vm4772_vm6, %v3159_v18, %v3160_v19  ;;  %v2664_v18 = vrot.slane %v2662_v11, 5  ;;  %v4244_v19 = vld [vmem:[%s4586_s23 + $0x4c] sm:$0xf] }
 0x1a1   : > { %2215 = vrot.lane.b32.xlu1 %v2136_v20, %s4538_s28 }
 0x1a2   : > { %2213 = vrot.lane.b32.xlu0 %v2132_v22, %s4538_s28  ;;  %2211 = vrot.lane.b32.xlu2 %v2129_v26, %s4538_s28  ;;  %v4187_v22 = vld [vmem:[%s4586_s23 + $0x28] sm:$0xf]  ;;  %v2568_v26 = vrot.slane %v2566_v17, 5 }
 0x1a3   : > { %v1859_v31 = vpop.permute.xlu1 %1858  ;;  %v2584_v32 = vshrl.u32 %v4187_v22, 16 }
 0x1a4   : > { %1945 = vst.msk [vmem:[#allocation2 + $0x28] sm:$0xf] %vm1934_vm10, %v1859_v31  ;;  %v1857_v36 = vpop.permute.xlu0 %1856  ;;  %v1873_v30 = vpop.permute.xlu2 %1872  ;;  %v2580_v31 = vshll.u32 %v4187_v22, 16  ;;  %v2569_v37 = vsel %vm4597_vm2, %v2564_v24, %v2568_v26  ;;  %v3185_v26 = vrot.slane %v4244_v19, 5 }
 0x1a5   : > { %1944 = vst.msk [vmem:[#allocation2 + $0x24] sm:$0xf] %vm1934_vm10, %v1857_v36  ;;  %v2571_v36 = vshrl.u32 %v4186_v27, 16 }
 0x1a6   : > { %1952 = vst.msk [vmem:[#allocation2 + $0x44] sm:$0xf] %vm1934_vm10, %v1873_v30  ;;  %v2582_v35 = vrot.slane %v2580_v31, 5  ;;  %v2586_v30 = vrot.slane %v2584_v32, 4  ;;  %v4245_v31 = vld [vmem:[%s4586_s23 + $0x50] sm:$0x1] }
 0x1a7   : > { %v2573_v40 = vrot.slane %v2571_v36, 4  ;;  %v4243_v32 = vld [vmem:[%s4586_s23 + $0x48] sm:$0xe]  ;;  %v4236_v36 = vld [vmem:[%s4586_s23 + $0x2c] sm:$0x1] }
 0x1a8   : > { %v2587_v48 = vor.u32 %v2586_v30, %v2582_v35  ;;  %v4283_v39 = vrot.slane %v4243_v32, 9  ;;  %v3167_v44 = vrot.slane %v4236_v36, 5  ;;  %v4199_v32 = vld [vmem:[%s4586_s23 + $0x58] sm:$0xf]  ;;  %v4198_v36 = vld [vmem:[%s4586_s23 + $0x54] sm:$0xf] }
 0x1a9   : > { %2221 = vrot.lane.b32.xlu1 %v2146_v38, %s4538_s28 }
 0x1aa   : > { %2219 = vrot.lane.b32.xlu0 %v2143_v41, %s4538_s28  ;;  %2217 = vrot.lane.b32.xlu2 %v2139_v46, %s4538_s28  ;;  %v2576_v41 = vrot.slane %v2574_v33, 5  ;;  %v4195_v46 = vld [vmem:[%s4586_s23 + $0x48] sm:$0xf]  ;;  %v3187_v33 = vrot.slane %v3185_v26, 4 }
 0x1ab   : > { %v1865_v53 = vpop.permute.xlu1 %1864  ;;  %v2646_v59 = vshll.u32 %v4195_v46, 16 }
 0x1ac   : > { %1948 = vst.msk [vmem:[#allocation2 + $0x34] sm:$0xf] %vm1934_vm10, %v1865_v53  ;;  %v1863_v58 = vpop.permute.xlu0 %1862  ;;  %v1879_v60 = vpop.permute.xlu2 %1878  ;;  %v2577_v53 = vor.u32 %v2576_v41, %v2573_v40  ;;  %v4208_v40 = vld [vmem:[%s4586_s23 + $0x7c] sm:$0xf] }
 0x1ad   : > { %1947 = vst.msk [vmem:[#allocation2 + $0x30] sm:$0xf] %vm1934_vm10, %v1863_v58  ;;  %v2643_v58 = vshrl.u32 %v4195_v46, 16 }
 0x1ae   : > { %1955 = vst.msk [vmem:[#allocation2 + $0x50] sm:$0xf] %vm1934_vm10, %v1879_v60  ;;  %v2588_v60 = vrot.slane %v2587_v48, 4  ;;  %v2578_v63 = vrot.slane %v2577_v53, 4  ;;  %v2748_v48 = vshll.u32 %v4208_v40, 16 }
 0x1af   : > { %v2645_v3 = vrot.slane %v2643_v58, 4  ;;  %v4256_v58 = vld [vmem:[%s4586_s23 + $0x7c] sm:$0xf] }
 0x1b0   : > { %v2583_v7 = vsel %vm4597_vm2, %v2578_v63, %v2582_v35  ;;  %v2750_v56 = vrot.slane %v2748_v48, 5 }
 0x1b1   : > { %2227 = vrot.lane.b32.xlu1 %v2157_v61, %s4538_s28  ;;  %v2592_v61 = vrot.slane %v2590_v50, 5  ;;  %v3186_v50 = vsel %vm4772_vm6, %v4283_v39, %v3185_v26  ;;  %v2676_v39 = vshll.u32 %v4199_v32, 16 }
 0x1b2   : > { %2225 = vrot.lane.b32.xlu0 %v2153_v52, %s4538_s28  ;;  %2223 = vrot.lane.b32.xlu2 %v2150_v0, %s4538_s28  ;;  %v2654_v52 = vrot.slane %v2652_v54, 5 }
 0x1b3   : > { %v1871_v4 = vpop.permute.xlu1 %1870 }
 0x1b4   : > { %1951 = vst.msk [vmem:[#allocation2 + $0x40] sm:$0xf] %vm1934_vm10, %v1871_v4  ;;  %v1869_v6 = vpop.permute.xlu0 %1868  ;;  %v1885_v8 = vpop.permute.xlu2 %1884  ;;  %v2648_v4 = vrot.slane %v2646_v59, 5 }
 0x1b5   : > { %1950 = vst.msk [vmem:[#allocation2 + $0x3c] sm:$0xf] %vm1934_vm10, %v1869_v6  ;;  %v2593_v6 = vsel %vm4597_vm2, %v2588_v60, %v2592_v61 }
 0x1b6   : > { %1958 = vst.msk [vmem:[#allocation2 + $0x5c] sm:$0xf] %vm1934_vm10, %v1885_v8  ;;  %v4234_v8 = vld [vmem:[%s4586_s23 + $0x24] sm:$0xe]  ;;  %v2649_v13 = vor.u32 %v2648_v4, %v2645_v3  ;;  %v4167_v3 = vld [vmem:[%s4586_s23 + $0x78] sm:$0xf] }
 0x1b7   : > { %v4280_v14 = vrot.slane %v4234_v8, 9 }
 0x1b8   : > { %v2650_v22 = vrot.slane %v2649_v13, 4 }
 0x1b9   : > { %2930 = vrot.lane.b32.xlu1 %v2559_v10, %s4539_s29  ;;  %v2659_v10 = vor.u32 %v2658_v55, %v2654_v52  ;;  %v4168_v55 = vld [vmem:[%s4586_s23 + $0x7c] sm:$0xf] }
 0x1ba   : > { %2371 = vrot.lane.b32.xlu0 %v4152_v12, %s4540_s30  ;;  %2369 = vrot.lane.b32.xlu2 %v4151_v15, %s4540_s30  ;;  %v4160_v12 = vld [vmem:[%s4586_s23 + $0x4c] sm:$0xf]  ;;  %v3164_v15 = vrot.slane %v4235_v9, 5  ;;  %v4287_v9 = vrot.slane %v4255_v2, 9 }
 0x1bb   : > { %v1877_v20 = vpop.permute.xlu1 %1876  ;;  %v2660_v17 = vrot.slane %v2659_v10, 4  ;;  %v4190_v10 = vld [vmem:[%s4586_s23 + $0x34] sm:$0xf] }
 0x1bc   : > { %1954 = vst.msk [vmem:[#allocation2 + $0x4c] sm:$0xf] %vm1934_vm10, %v1877_v20  ;;  %v1875_v23 = vpop.permute.xlu0 %1874  ;;  %v1891_v28 = vpop.permute.xlu2 %1890  ;;  %v4207_v20 = vld [vmem:[%s4586_s23 + $0x78] sm:$0xf]  ;;  %v3165_v24 = vsel %vm4772_vm6, %v4280_v14, %v3164_v15  ;;  %v4189_v14 = vld [vmem:[%s4586_s23 + $0x30] sm:$0xf] }
 0x1bd   : > { %1953 = vst.msk [vmem:[#allocation2 + $0x48] sm:$0xf] %vm1934_vm10, %v1875_v23  ;;  %v2739_v27 = vshrl.u32 %v4207_v20, 16 }
 0x1be   : > { %1961 = vst.msk [vmem:[#allocation2 + $0x68] sm:$0xf] %vm1934_vm10, %v1891_v28  ;;  %v2742_v28 = vshll.u32 %v4207_v20, 16  ;;  %v2595_v20 = vshrl.u32 %v4189_v14, 16 }
 0x1bf   : > { %v2741_v35 = vrot.slane %v2739_v27, 4  ;;  %v4191_v27 = vld [vmem:[%s4586_s23 + $0x38] sm:$0x1] }
 0x1c0   : > { %v2744_v30 = vrot.slane %v2742_v28, 5  ;;  %v2597_v28 = vrot.slane %v2595_v20, 4 }
 0x1c1   : > { %3269 = vrot.lane.b32.xlu1 %v3161_v29, %s4541_s6  ;;  %v2665_v29 = vsel %vm4597_vm2, %v2660_v17, %v2664_v18  ;;  %v2604_v17 = vshll.u32 %v4190_v10, 16  ;;  %v2608_v18 = vshrl.u32 %v4190_v10, 16 }
 0x1c2   : > { %3267 = vrot.lane.b32.xlu0 %v3158_v34, %s4541_s6  ;;  %2932 = vrot.lane.b32.xlu2 %v2569_v37, %s4539_s29  ;;  %v2655_v34 = vsel %vm4597_vm2, %v2650_v22, %v2654_v52  ;;  %v3188_v37 = vrot.slane %v4245_v31, 5  ;;  %v3213_v52 = vrot.slane %v4256_v58, 5 }
 0x1c3   : > { %v1883_v38 = vpop.permute.xlu1 %1882 }
 0x1c4   : > { %1957 = vst.msk [vmem:[#allocation2 + $0x58] sm:$0xf] %vm1934_vm10, %v1883_v38  ;;  %v1881_v42 = vpop.permute.xlu0 %1880  ;;  %v1897_v45 = vpop.permute.xlu2 %1896  ;;  %v3189_v46 = vsel %vm4772_vm6, %v3187_v33, %v3188_v37  ;;  %v3214_v19 = vsel %vm4772_vm6, %v4287_v9, %v3213_v52  ;;  %v4161_v33 = vld [vmem:[%s4586_s23 + $0x54] sm:$0xf] }
 0x1c5   : > { %1956 = vst.msk [vmem:[#allocation2 + $0x54] sm:$0xf] %vm1934_vm10, %v1881_v42  ;;  %v3166_v42 = vrot.slane %v3164_v15, 4 }
 0x1c6   : > { %1964 = vst.msk [vmem:[#allocation2 + $0x74] sm:$0xf] %vm1934_vm10, %v1897_v45 }
 0x1c7   : > { %v3168_v53 = vsel %vm4772_vm6, %v3166_v42, %v3167_v44  ;;  %v2667_v42 = vshrl.u32 %v4198_v36, 16  ;;  %v2670_v44 = vshll.u32 %v4198_v36, 16 }
 0x1c9   : > { %2385 = vrot.lane.b32.xlu1 %v4159_v47, %s4540_s30  ;;  %v2745_v47 = vor.u32 %v2744_v30, %v2741_v35  ;;  %v2614_v35 = vshll.u32 %v4191_v27, 16  ;;  %v4156_v30 = vld [vmem:[%s4586_s23 + $0x34] sm:$0xf]  ;;  %v4210_v27 = vld [vmem:[%s4586_s23 + $0x84] sm:$0xf] }
 0x1ca   : > { %2375 = vrot.lane.b32.xlu0 %v4154_v51, %s4540_s30  ;;  %2373 = vrot.lane.b32.xlu2 %v4153_v57, %s4540_s30  ;;  %v2752_v51 = vshrl.u32 %v4208_v40, 16  ;;  %v2680_v40 = vshrl.u32 %v4199_v32, 16 }
 0x1cb   : > { %v1889_v62 = vpop.permute.xlu1 %1888  ;;  %v2746_v54 = vrot.slane %v2745_v47, 4 }
 0x1cc   : > { %1960 = vst.msk [vmem:[#allocation2 + $0x64] sm:$0xf] %vm1934_vm10, %v1889_v62  ;;  %v1887_v0 = vpop.permute.xlu0 %1886  ;;  %v2176_v5 = vpop.permute.xlu2 %2175  ;;  %v2754_v60 = vrot.slane %v2752_v51, 4  ;;  %v4209_v62 = vld [vmem:[%s4586_s23 + $0x80] sm:$0x1]  ;;  %v2682_v51 = vrot.slane %v2680_v40, 4 }
 0x1cd   : > { %1959 = vst.msk [vmem:[#allocation2 + $0x60] sm:$0xf] %vm1934_vm10, %v1887_v0  ;;  %v2751_v63 = vsel %vm4597_vm2, %v2746_v54, %v2750_v56  ;;  %v4257_v0 = vld [vmem:[%s4586_s23 + $0x80] sm:$0x1]  ;;  %v4200_v54 = vld [vmem:[%s4586_s23 + $0x5c] sm:$0x1] }
 0x1ce   : > { %2272 = vst.msk [vmem:[#allocation2] sm:$0xf] %vm2271_vm11, %v2176_v5  ;;  %v2755_v4 = vor.u32 %v2754_v60, %v2750_v56  ;;  %v2758_v5 = vshll.u32 %v4209_v62, 16  ;;  %v2669_v56 = vrot.slane %v2667_v42, 4  ;;  %v4238_v62 = vld [vmem:[%s4586_s23 + $0x34] sm:$0xf] }
 0x1d0   : > { %v2760_v13 = vrot.slane %v2758_v5, 5 }
 0x1d1   : > { %2936 = vrot.lane.b32.xlu1 %v2593_v6, %s4539_s29  ;;  %v3215_v6 = vrot.slane %v3213_v52, 4  ;;  %v2686_v52 = vshll.u32 %v4200_v54, 16  ;;  %v4175_v54 = vld [vmem:[%s4586_s23 + $0xa8] sm:$0xf] }
 0x1d2   : > { %2934 = vrot.lane.b32.xlu0 %v2583_v7, %s4539_s29  ;;  %2387 = vrot.lane.b32.xlu2 %v4160_v12, %s4540_s30  ;;  %v3216_v7 = vrot.slane %v4257_v0, 5  ;;  %v2756_v12 = vrot.slane %v2755_v4, 4 }
 0x1d3   : > { %v1895_v16 = vpop.permute.xlu1 %1894 }
 0x1d4   : > { %1963 = vst.msk [vmem:[#allocation2 + $0x70] sm:$0xf] %vm1934_vm10, %v1895_v16  ;;  %v1893_v21 = vpop.permute.xlu0 %1892  ;;  %v2182_v23 = vpop.permute.xlu2 %2181  ;;  %v3217_v16 = vsel %vm4772_vm6, %v3215_v6, %v3216_v7  ;;  %v2761_v22 = vsel %vm4597_vm2, %v2756_v12, %v2760_v13  ;;  %v2688_v6 = vrot.slane %v2686_v52, 5  ;;  %v4247_v7 = vld [vmem:[%s4586_s23 + $0x58] sm:$0xf] }
 0x1d5   : > { %1962 = vst.msk [vmem:[#allocation2 + $0x6c] sm:$0xf] %vm1934_vm10, %v1893_v21  ;;  %v2598_v21 = vshll.u32 %v4189_v14, 16  ;;  %v3192_v12 = vrot.slane %v4247_v7, 5  ;;  %v4248_v14 = vld [vmem:[%s4586_s23 + $0x5c] sm:$0x1] }
 0x1d6   : > { %2275 = vst.msk [vmem:[#allocation2 + $0xc] sm:$0xf] %vm2271_vm11, %v2182_v23  ;;  %v2606_v23 = vrot.slane %v2604_v17, 5  ;;  %v4239_v17 = vld [vmem:[%s4586_s23 + $0x38] sm:$0x1] }
 0x1d9   : > { %3271 = vrot.lane.b32.xlu1 %v3165_v24, %s4541_s6  ;;  %v2610_v24 = vrot.slane %v2608_v18, 4  ;;  %v3194_v18 = vrot.slane %v3192_v12, 4 }
 0x1da   : > { %2948 = vrot.lane.b32.xlu0 %v2665_v29, %s4539_s29  ;;  %2946 = vrot.lane.b32.xlu2 %v2655_v34, %s4539_s29  ;;  %v2600_v29 = vrot.slane %v2598_v21, 5 }
 0x1db   : > { %v1901_v38 = vpop.permute.xlu1 %1900  ;;  %v2611_v37 = vor.u32 %v2610_v24, %v2606_v23 }
 0x1dc   : > { %1966 = vst.msk [vmem:[#allocation2 + $0x7c] sm:$0xf] %vm1934_vm10, %v1901_v38  ;;  %v1899_v41 = vpop.permute.xlu0 %1898  ;;  %v2188_v45 = vpop.permute.xlu2 %2187  ;;  %v2601_v38 = vor.u32 %v2600_v29, %v2597_v28  ;;  %v3432_v29 = vld [vmem:[%s6141_s1 + $0x10] sm:$0x3] }
 0x1dd   : > { %1965 = vst.msk [vmem:[#allocation2 + $0x78] sm:$0xf] %vm1934_vm10, %v1899_v41  ;;  %v4155_v41 = vld [vmem:[%s4586_s23 + $0x30] sm:$0xf]  ;;  %v3526_v36 = vunpack.c.l.b16 %v3432_v29 }
 0x1de   : > { %2278 = vst.msk [vmem:[#allocation2 + $0x18] sm:$0xf] %vm2271_vm11, %v2188_v45  ;;  %v2612_v45 = vrot.slane %v2611_v37, 4  ;;  %v2602_v48 = vrot.slane %v2601_v38, 4  ;;  %v2763_v37 = vshrl.u32 %v4210_v27, 16 }
 0x1df   : > { %v3529_v38 = vpack.c.b16 %v3526_v36, %v3526_v36  ;;  %v4269_v36 = vld [vmem:[%s4586_s23 + $0xb0] sm:$0x1] }
 0x1e0   : > { %v2607_v60 = vsel %vm4597_vm2, %v2602_v48, %v2606_v23  ;;  %v4220_v48 = vld [vmem:[%s4586_s23 + $0xac] sm:$0xf] }
 0x1e1   : > { %3285 = vrot.lane.b32.xlu1 %v3189_v46, %s4541_s6  ;;  %v2616_v46 = vrot.slane %v2614_v35, 5  ;;  %v2766_v35 = vshll.u32 %v4210_v27, 16 }
 0x1e2   : > { %3283 = vrot.lane.b32.xlu0 %v3186_v50, %s4541_s6  ;;  %3273 = vrot.lane.b32.xlu2 %v3168_v53, %s4541_s6  ;;  %v2678_v50 = vrot.slane %v2676_v39, 5 }
 0x1e3   : > { %v2180_v57 = vpop.permute.xlu1 %2179 }
 0x1e4   : > { %2274 = vst.msk [vmem:[#allocation2 + $0x8] sm:$0xf] %vm2271_vm11, %v2180_v57  ;;  %v2178_v59 = vpop.permute.xlu0 %2177  ;;  %v2194_v61 = vpop.permute.xlu2 %2193  ;;  %v2672_v57 = vrot.slane %v2670_v44, 5  ;;  %v4212_v44 = vld [vmem:[%s4586_s23 + $0x8c] sm:$0x1] }
 0x1e5   : > { %2273 = vst.msk [vmem:[#allocation2 + $0x4] sm:$0xf] %vm2271_vm11, %v2178_v59  ;;  %v2617_v59 = vsel %vm4597_vm2, %v2612_v45, %v2616_v46  ;;  %v2765_v45 = vrot.slane %v2763_v37, 4  ;;  %v2768_v46 = vrot.slane %v2766_v35, 5  ;;  %v4260_v35 = vld [vmem:[%s4586_s23 + $0x8c] sm:$0x1] }
 0x1e6   : > { %2281 = vst.msk [vmem:[#allocation2 + $0x24] sm:$0xf] %vm2271_vm11, %v2194_v61  ;;  %v4237_v61 = vld [vmem:[%s4586_s23 + $0x30] sm:$0xe]  ;;  %v2673_v0 = vor.u32 %v2672_v57, %v2669_v56  ;;  %v2782_v57 = vshll.u32 %v4212_v44, 16 }
 0x1e7   : > { %v4281_v2 = vrot.slane %v4237_v61, 9  ;;  %v2848_v61 = vshrl.u32 %v4220_v48, 16 }
 0x1e8   : > { %v2674_v9 = vrot.slane %v2673_v0, 4 }
 0x1e9   : > { %2962 = vrot.lane.b32.xlu1 %v2751_v63, %s4539_s29  ;;  %v2683_v63 = vor.u32 %v2682_v51, %v2678_v50  ;;  %v4403_v51 = vld [vmem:[%s6141_s1 + $0x8] sm:$0xff] }
 0x1ea   : > { %2403 = vrot.lane.b32.xlu0 %v4168_v55, %s4540_s30  ;;  %2401 = vrot.lane.b32.xlu2 %v4167_v3, %s4540_s30  ;;  %v4162_v55 = vld [vmem:[%s4586_s23 + $0x58] sm:$0xf]  ;;  %v3171_v3 = vrot.slane %v4238_v62, 5  ;;  %v4169_v62 = vld [vmem:[%s4586_s23 + $0x84] sm:$0xf] }
 0x1eb   : > { %v2186_v8 = vpop.permute.xlu1 %2185  ;;  %v2684_v5 = vrot.slane %v2683_v63, 4 }
 0x1ec   : > { %2277 = vst.msk [vmem:[#allocation2 + $0x14] sm:$0xf] %vm2271_vm11, %v2186_v8  ;;  %v2184_v11 = vpop.permute.xlu0 %2183  ;;  %v2200_v15 = vpop.permute.xlu2 %2199  ;;  %v3173_v24 = vrot.slane %v3171_v3, 4 }
 0x1ed   : > { %2276 = vst.msk [vmem:[#allocation2 + $0x10] sm:$0xf] %vm2271_vm11, %v2184_v11  ;;  %v3172_v11 = vsel %vm4772_vm6, %v4281_v2, %v3171_v3  ;;  %v2689_v13 = vsel %vm4597_vm2, %v2684_v5, %v2688_v6  ;;  %v2784_v2 = vrot.slane %v2782_v57, 5  ;;  %v2850_v6 = vrot.slane %v2848_v61, 4  ;;  %v4194_v61 = vld [vmem:[%s4586_s23 + $0x44] sm:$0x1] }
 0x1ee   : > { %2284 = vst.msk [vmem:[#allocation2 + $0x30] sm:$0xf] %vm2271_vm11, %v2200_v15  ;;  %v4246_v15 = vld [vmem:[%s4586_s23 + $0x54] sm:$0xe] }
 0x1ef   : > { %v4284_v21 = vrot.slane %v4246_v15, 9  ;;  %v4259_v15 = vld [vmem:[%s4586_s23 + $0x88] sm:$0xf] }
 0x1f1   : > { %3301 = vrot.lane.b32.xlu1 %v3217_v16, %s4541_s6  ;;  %v2679_v16 = vsel %vm4597_vm2, %v2674_v9, %v2678_v50 }
 0x1f2   : > { %3299 = vrot.lane.b32.xlu0 %v3214_v19, %s4541_s6  ;;  %2964 = vrot.lane.b32.xlu2 %v2761_v22, %s4539_s29  ;;  %v3195_v19 = vrot.slane %v4248_v14, 5  ;;  %v4211_v22 = vld [vmem:[%s4586_s23 + $0x88] sm:$0xf]  ;;  %v4258_v14 = vld [vmem:[%s4586_s23 + $0x84] sm:$0xe] }
 0x1f3   : > { %v2192_v26 = vpop.permute.xlu1 %2191  ;;  %v2772_v32 = vshll.u32 %v4211_v22, 16 }
 0x1f4   : > { %2280 = vst.msk [vmem:[#allocation2 + $0x20] sm:$0xf] %vm2271_vm11, %v2192_v26  ;;  %v2190_v31 = vpop.permute.xlu0 %2189  ;;  %v2206_v34 = vpop.permute.xlu2 %2205  ;;  %v3174_v26 = vrot.slane %v4239_v17, 5 }
 0x1f5   : > { %2279 = vst.msk [vmem:[#allocation2 + $0x1c] sm:$0xf] %vm2271_vm11, %v2190_v31  ;;  %v3196_v31 = vsel %vm4772_vm6, %v3194_v18, %v3195_v19  ;;  %v5634_v39 = vrot.slane %v2772_v32, 5  ;;  %v4176_v18 = vld [vmem:[%s4586_s23 + $0xac] sm:$0xf] }
 0x1f6   : > { %2287 = vst.msk [vmem:[#allocation2 + $0x3c] sm:$0xf] %vm2271_vm11, %v2206_v34  ;;  %v2776_v34 = vshrl.u32 %v4211_v22, 16 }
 0x1f8   : > { %v2778_v40 = vrot.slane %v2776_v34, 4 }
 0x1f9   : > { %2389 = vrot.lane.b32.xlu1 %v4161_v33, %s4540_s30  ;;  %v3193_v33 = vsel %vm4772_vm6, %v4284_v21, %v3192_v12  ;;  %v3220_v21 = vrot.slane %v4259_v15, 5 }
 0x1fa   : > { %2379 = vrot.lane.b32.xlu0 %v4156_v30, %s4540_s30  ;;  %2377 = vrot.lane.b32.xlu2 %v4155_v41, %s4540_s30  ;;  %v3175_v30 = vsel %vm4772_vm6, %v3173_v24, %v3174_v26  ;;  %v3583_v41 = vsel %vm3581_vm12, %v3529_v38, 0  ;;  %v2779_v56 = vor.u32 %v2778_v40, %v5634_v39  ;;  %v4268_v26 = vld [vmem:[%s4586_s23 + $0xac] sm:$0xf]  ;;  %v3244_v38 = vrot.slane %v4269_v36, 5 }
 0x1fb   : > { %v2198_v47 = vpop.permute.xlu1 %2197  ;;  %3590 = vmatpush.bf16.msra.mxu0 %v3583_v41  ;;  %4499 = vmatpush.bf16.msra.mxu1 %v3583_v41  ;;  %v3241_v32 = vrot.slane %v4268_v26, 5  ;;  %v3222_v44 = vrot.slane %v3220_v21, 4 }
 0x1fc   : > { %2283 = vst.msk [vmem:[#allocation2 + $0x2c] sm:$0xf] %vm2271_vm11, %v2198_v47  ;;  %v2196_v53 = vpop.permute.xlu0 %2195  ;;  %v2212_v58 = vpop.permute.xlu2 %2211  ;;  %4500 = vmatpush.bf16.msra.mxu2 %v3583_v41  ;;  %4501 = vmatpush.bf16.msra.mxu3 %v3583_v41  ;;  %v2780_v0 = vrot.slane %v2779_v56, 4  ;;  %v4193_v41 = vld [vmem:[%s4586_s23 + $0x40] sm:$0xf] }
 0x1fd   : > { %2282 = vst.msk [vmem:[#allocation2 + $0x28] sm:$0xf] %vm2271_vm11, %v2196_v53  ;;  %v4219_v53 = vld [vmem:[%s4586_s23 + $0xa8] sm:$0xf] }
 0x1fe   : > { %2290 = vst.msk [vmem:[#allocation2 + $0x48] sm:$0xf] %vm2271_vm11, %v2212_v58  ;;  %v4170_v58 = vld [vmem:[%s4586_s23 + $0x88] sm:$0xf]  ;;  %v2835_v63 = vshrl.u32 %v4219_v53, 16  ;;  %v2838_v52 = vshll.u32 %v4219_v53, 16  ;;  %v2785_v12 = vsel %vm4597_vm2, %v2780_v0, %v2784_v2 }
 0x1ff   : > { %3591 = vmatpush.bf16.msra.mxu0 %v4403_v51  ;;  %4502 = vmatpush.bf16.msra.mxu1 %v4403_v51  ;;  %v4201_v2 = vld [vmem:[%s4586_s23 + $0x60] sm:$0xf] }
 0x200   : > { %4503 = vmatpush.bf16.msra.mxu2 %v4403_v51  ;;  %4504 = vmatpush.bf16.msra.mxu3 %v4403_v51  ;;  %v2837_v9 = vrot.slane %v2835_v63, 4  ;;  %v2632_v51 = vshrl.u32 %v4193_v41, 16 }
 0x201   : > { %2940 = vrot.lane.b32.xlu1 %v2617_v59, %s4539_s29  ;;  %v2769_v59 = vor.u32 %v2768_v46, %v2765_v45  ;;  %v3223_v45 = vrot.slane %v4260_v35, 5  ;;  %v4192_v46 = vld [vmem:[%s4586_s23 + $0x3c] sm:$0xf] }
 0x202   : > { %2938 = vrot.lane.b32.xlu0 %v2607_v60, %s4539_s29  ;;  %2391 = vrot.lane.b32.xlu2 %v4162_v55, %s4540_s30  ;;  %v2844_v60 = vshll.u32 %v4220_v48, 16  ;;  %v4402_v55 = vld [vmem:[%s6141_s1] sm:$0xff]  ;;  %v2622_v56 = vshll.u32 %v4192_v46, 16 }
 0x203   : > { %v2204_v4 = vpop.permute.xlu1 %2203  ;;  %3592 = vmatpush.bf16.msra.mxu0 %v4402_v55  ;;  %4505 = vmatpush.bf16.msra.mxu1 %v4402_v55  ;;  %v3224_v57 = vsel %vm4772_vm6, %v3222_v44, %v3223_v45 }
 0x204   : > { %2286 = vst.msk [vmem:[#allocation2 + $0x38] sm:$0xf] %vm2271_vm11, %v2204_v4  ;;  %v2202_v8 = vpop.permute.xlu0 %2201  ;;  %v2218_v10 = vpop.permute.xlu2 %2217  ;;  %v2770_v4 = vrot.slane %v2769_v59, 4  ;;  %v2846_v5 = vrot.slane %v2844_v60, 5  ;;  %4506 = vmatpush.bf16.msra.mxu2 %v4402_v55  ;;  %4507 = vmatpush.bf16.msra.mxu3 %v4402_v55  ;;  %v2634_v59 = vrot.slane %v2632_v51, 4  ;;  %v2624_v63 = vrot.slane %v2622_v56, 5 }
 0x205   : > { %2285 = vst.msk [vmem:[#allocation2 + $0x34] sm:$0xf] %vm2271_vm11, %v2202_v8  ;;  %v4221_v8 = vld [vmem:[%s4586_s23 + $0xb0] sm:$0x1]  ;;  %v4202_v55 = vld [vmem:[%s4586_s23 + $0x64] sm:$0xf] }
 0x206   : > { %2293 = vst.msk [vmem:[#allocation2 + $0x54] sm:$0xf] %vm2271_vm11, %v2218_v10  ;;  %v2840_v10 = vrot.slane %v2838_v52, 5  ;;  %v2854_v17 = vshll.u32 %v4221_v8, 16  ;;  %v2700_v8 = vshll.u32 %v4202_v55, 16 }
 0x207   : > { %v4242_v51 = vld [vmem:[%s4586_s23 + $0x44] sm:$0x1] }
 0x208   : > { %v2841_v19 = vor.u32 %v2840_v10, %v2837_v9  ;;  %v2856_v24 = vrot.slane %v2854_v17, 5  ;;  %v2704_v9 = vshrl.u32 %v4202_v55, 16  ;;  %v4157_v10 = vld [vmem:[%s4586_s23 + $0x3c] sm:$0xf]  ;;  %v4203_v17 = vld [vmem:[%s4586_s23 + $0x68] sm:$0x1] }
 0x209   : > { %3275 = vrot.lane.b32.xlu1 %v3172_v11, %s4541_s6 }
 0x20a   : > { %2952 = vrot.lane.b32.xlu0 %v2689_v13, %s4539_s29  ;;  %2950 = vrot.lane.b32.xlu2 %v2679_v16, %s4539_s29  ;;  %v2775_v13 = vsel %vm4597_vm2, %v2770_v4, %v5634_v39  ;;  %v2851_v16 = vor.u32 %v2850_v6, %v2846_v5  ;;  %v4158_v6 = vld [vmem:[%s4586_s23 + $0x40] sm:$0xf] }
 0x20b   : > { %v2210_v20 = vpop.permute.xlu1 %2209 }
 0x20c   : > { %2289 = vst.msk [vmem:[#allocation2 + $0x44] sm:$0xf] %vm2271_vm11, %v2210_v20  ;;  %v2208_v23 = vpop.permute.xlu0 %2207  ;;  %v2224_v28 = vpop.permute.xlu2 %2223  ;;  %v4288_v20 = vrot.slane %v4258_v14, 9 }
 0x20d   : > { %2288 = vst.msk [vmem:[#allocation2 + $0x40] sm:$0xf] %vm2271_vm11, %v2208_v23  ;;  %v2852_v23 = vrot.slane %v2851_v16, 4 }
 0x20e   : > { %2296 = vst.msk [vmem:[#allocation2 + $0x60] sm:$0xf] %vm2271_vm11, %v2224_v28  ;;  %v2842_v28 = vrot.slane %v2841_v19, 4  ;;  %v2706_v19 = vrot.slane %v2704_v9, 4  ;;  %v4223_v9 = vld [vmem:[%s4586_s23 + $0xb8] sm:$0xf] }
 0x20f   : > { %v2857_v34 = vsel %vm4597_vm2, %v2852_v23, %v2856_v24 }
 0x210   : > { %v2847_v37 = vsel %vm4597_vm2, %v2842_v28, %v2846_v5  ;;  %v2638_v5 = vshll.u32 %v4194_v61, 16  ;;  %v4240_v28 = vld [vmem:[%s4586_s23 + $0x3c] sm:$0xe]  ;;  %v3181_v61 = vrot.slane %v4242_v51, 5 }
 0x211   : > { %3289 = vrot.lane.b32.xlu1 %v3196_v31, %s4541_s6  ;;  %v3221_v31 = vsel %vm4772_vm6, %v4288_v20, %v3220_v21 }
 0x212   : > { %3287 = vrot.lane.b32.xlu0 %v3193_v33, %s4541_s6  ;;  %3277 = vrot.lane.b32.xlu2 %v3175_v30, %s4541_s6  ;;  %v4267_v33 = vld [vmem:[%s4586_s23 + $0xa8] sm:$0xe]  ;;  %v3243_v30 = vrot.slane %v3241_v32, 4  ;;  %v2640_v14 = vrot.slane %v2638_v5, 5 }
 0x213   : > { %v2216_v42 = vpop.permute.xlu1 %2215  ;;  %v4291_v40 = vrot.slane %v4267_v33, 9  ;;  %v4282_v33 = vrot.slane %v4240_v28, 9 }
 0x214   : > { %2292 = vst.msk [vmem:[#allocation2 + $0x50] sm:$0xf] %vm2271_vm11, %v2216_v42  ;;  %v2214_v47 = vpop.permute.xlu0 %2213  ;;  %v2370_v50 = vpop.permute.xlu2 %2369  ;;  %v3245_v48 = vsel %vm4772_vm6, %v3243_v30, %v3244_v38 }
 0x215   : > { %2291 = vst.msk [vmem:[#allocation2 + $0x4c] sm:$0xf] %vm2271_vm11, %v2214_v47  ;;  %v3242_v53 = vsel %vm4772_vm6, %v4291_v40, %v3241_v32  ;;  %v2710_v32 = vshll.u32 %v4203_v17, 16 }
 0x216   : > { %2466 = vst.msk [vmem:[#allocation2] sm:$0xf] %vm2465_vm13, %v2370_v50  ;;  %v2628_v50 = vshll.u32 %v4193_v41, 16 }
 0x217   : > { %v2712_v38 = vrot.slane %v2710_v32, 5 }
 0x219   : > { %2417 = vrot.lane.b32.xlu1 %v4175_v54, %s4540_s30  ;;  %v2619_v54 = vshrl.u32 %v4192_v46, 16 }
 0x21a   : > { %2407 = vrot.lane.b32.xlu0 %v4170_v58, %s4540_s30  ;;  %2405 = vrot.lane.b32.xlu2 %v4169_v62, %s4540_s30  ;;  %v2630_v58 = vrot.slane %v2628_v50, 5 }
 0x21b   : > { %v2222_v3 = vpop.permute.xlu1 %2221  ;;  %v2621_v62 = vrot.slane %v2619_v54, 4 }
 0x21c   : > { %2295 = vst.msk [vmem:[#allocation2 + $0x5c] sm:$0xf] %vm2271_vm11, %v2222_v3  ;;  %v2220_v7 = vpop.permute.xlu0 %2219  ;;  %v2933_v11 = vpop.permute.xlu2 %2932  ;;  %v4163_v3 = vld [vmem:[%s4586_s23 + $0x60] sm:$0xf]  ;;  %v2635_v4 = vor.u32 %v2634_v59, %v2630_v58 }
 0x21d   : > { %2294 = vst.msk [vmem:[#allocation2 + $0x58] sm:$0xf] %vm2271_vm11, %v2220_v7  ;;  %v2625_v7 = vor.u32 %v2624_v63, %v2621_v62 }
 0x21f   : > { %v2626_v16 = vrot.slane %v2625_v7, 4 }
 0x221   : > { %2968 = vrot.lane.b32.xlu1 %v2785_v12, %s4539_s29  ;;  %v2694_v12 = vshll.u32 %v4201_v2, 16 }
 0x222   : > { %2966 = vrot.lane.b32.xlu0 %v2775_v13, %s4539_s29  ;;  %2419 = vrot.lane.b32.xlu2 %v4176_v18, %s4540_s30  ;;  %v2636_v13 = vrot.slane %v2635_v4, 4  ;;  %v2702_v18 = vrot.slane %v2700_v8, 5  ;;  %v4214_v8 = vld [vmem:[%s4586_s23 + $0x94] sm:$0xf] }
 0x223   : > { %v2228_v22 = vpop.permute.xlu1 %2227  ;;  %v2696_v23 = vrot.slane %v2694_v12, 5  ;;  %v2796_v17 = vshll.u32 %v4214_v8, 16  ;;  %v2800_v43 = vshrl.u32 %v4214_v8, 16 }
 0x224   : > { %2298 = vst.msk [vmem:[#allocation2 + $0x68] sm:$0xf] %vm2271_vm11, %v2228_v22  ;;  %v2226_v27 = vpop.permute.xlu0 %2225  ;;  %v2374_v29 = vpop.permute.xlu2 %2373  ;;  %v2641_v26 = vsel %vm4597_vm2, %v2636_v13, %v2640_v14  ;;  %v4222_v13 = vld [vmem:[%s4586_s23 + $0xb4] sm:$0xf] }
 0x225   : > { %2297 = vst.msk [vmem:[#allocation2 + $0x64] sm:$0xf] %vm2271_vm11, %v2226_v27  ;;  %v2631_v27 = vsel %vm4597_vm2, %v2626_v16, %v2630_v58  ;;  %v4213_v58 = vld [vmem:[%s4586_s23 + $0x90] sm:$0xf]  ;;  %v4172_v14 = vld [vmem:[%s4586_s23 + $0x94] sm:$0xf] }
 0x226   : > { %2468 = vst.msk [vmem:[#allocation2 + $0x8] sm:$0xf] %vm2465_vm13, %v2374_v29  ;;  %v4241_v29 = vld [vmem:[%s4586_s23 + $0x40] sm:$0xf]  ;;  %v2790_v55 = vshll.u32 %v4213_v58, 16 }
 0x228   : > { %v2792_v5 = vrot.slane %v2790_v55, 5  ;;  %v4261_v55 = vld [vmem:[%s4586_s23 + $0x90] sm:$0xe] }
 0x229   : > { %3303 = vrot.lane.b32.xlu1 %v3221_v31, %s4541_s6  ;;  %v2707_v31 = vor.u32 %v2706_v19, %v2702_v18  ;;  %v2872_v19 = vshrl.u32 %v4223_v9, 16  ;;  %v4289_v8 = vrot.slane %v4261_v55, 9 }
 0x22a   : > { %2980 = vrot.lane.b32.xlu0 %v2857_v34, %s4539_s29  ;;  %2978 = vrot.lane.b32.xlu2 %v2847_v37, %s4539_s29  ;;  %v4164_v34 = vld [vmem:[%s4586_s23 + $0x64] sm:$0xf]  ;;  %v3178_v37 = vrot.slane %v4241_v29, 5  ;;  %v4224_v29 = vld [vmem:[%s4586_s23 + $0xbc] sm:$0x1] }
 0x22b   : > { %v2931_v39 = vpop.permute.xlu1 %2930  ;;  %v2708_v30 = vrot.slane %v2707_v31, 4 }
 0x22c   : > { %3027 = vst.msk [vmem:[#allocation2] sm:$0xf] %vm3026_vm14, %v2931_v39  ;;  %v2372_v42 = vpop.permute.xlu0 %2371  ;;  %v2388_v47 = vpop.permute.xlu2 %2387  ;;  %v4250_v39 = vld [vmem:[%s4586_s23 + $0x64] sm:$0xf]  ;;  %v3179_v44 = vsel %vm4772_vm6, %v4282_v33, %v3178_v37  ;;  %v2802_v33 = vrot.slane %v2800_v43, 4 }
 0x22d   : > { %2467 = vst.msk [vmem:[#allocation2 + $0x4] sm:$0xf] %vm2465_vm13, %v2372_v42  ;;  %v3199_v45 = vrot.slane %v4250_v39, 5  ;;  %v2713_v46 = vsel %vm4597_vm2, %v2708_v30, %v2712_v38  ;;  %v2878_v39 = vshll.u32 %v4224_v29, 16 }
 0x22e   : > { %3028 = vst.msk [vmem:[#allocation2 + $0x4] sm:$0xf] %vm3026_vm14, %v2933_v11  ;;  %v2691_v11 = vshrl.u32 %v4201_v2, 16 }
 0x22f   : > { %2475 = vst.msk [vmem:[#allocation2 + $0x24] sm:$0xf] %vm2465_vm13, %v2388_v47  ;;  %v4251_v47 = vld [vmem:[%s4586_s23 + $0x68] sm:$0x1] }
 0x230   : > { %v2693_v22 = vrot.slane %v2691_v11, 4  ;;  %v3202_v54 = vrot.slane %v4251_v47, 5  ;;  %v2158_v11 = vrot.slane %v2156_v49, 4  ;;  %v2880_v47 = vrot.slane %v2878_v39, 5 }
 0x231   : > { %3317 = vrot.lane.b32.xlu1 %v3245_v48, %s4541_s6  ;;  %v4249_v48 = vld [vmem:[%s4586_s23 + $0x60] sm:$0xe] }
 0x232   : > { %3315 = vrot.lane.b32.xlu0 %v3242_v53, %s4541_s6  ;;  %3305 = vrot.lane.b32.xlu2 %v3224_v57, %s4541_s6  ;;  %v2697_v36 = vor.u32 %v2696_v23, %v2693_v22  ;;  %v3201_v53 = vrot.slane %v3199_v45, 4  ;;  %v4285_v57 = vrot.slane %v4249_v48, 9  ;;  %v2862_v22 = vshll.u32 %v4222_v13, 16 }
 0x233   : > { %v3270_v60 = vpop.permute.xlu1 %3269 }
 0x234   : > { %3365 = vst.msk [vmem:[#allocation2 + $0x4] sm:$0xf] %vm3363_vm15, %v3270_v60  ;;  %v3268_v52 = vpop.permute.xlu0 %3267  ;;  %v2947_v0 = vpop.permute.xlu2 %2946  ;;  %v2698_v41 = vrot.slane %v2697_v36, 4  ;;  %v3180_v60 = vrot.slane %v3178_v37, 4  ;;  %v3203_v63 = vsel %vm4772_vm6, %v3201_v53, %v3202_v54  ;;  %v2864_v32 = vrot.slane %v2862_v22, 5 }
 0x235   : > { %3364 = vst.msk [vmem:[#allocation2] sm:$0xf] %vm3363_vm15, %v3268_v52  ;;  %v2787_v52 = vshrl.u32 %v4213_v58, 16  ;;  %v4262_v53 = vld [vmem:[%s4586_s23 + $0x94] sm:$0xf] }
 0x236   : > { %v2703_v50 = vsel %vm4597_vm2, %v2698_v41, %v2702_v18  ;;  %v3182_v2 = vsel %vm4772_vm6, %v3180_v60, %v3181_v61  ;;  %v2868_v18 = vshll.u32 %v4223_v9, 16  ;;  %v4270_v60 = vld [vmem:[%s4586_s23 + $0xb4] sm:$0xe]  ;;  %v4271_v61 = vld [vmem:[%s4586_s23 + $0xb8] sm:$0xf] }
 0x237   : > { %v2789_v4 = vrot.slane %v2787_v52, 4  ;;  %v4205_v9 = vld [vmem:[%s4586_s23 + $0x70] sm:$0xf] }
 0x239   : > { %2393 = vrot.lane.b32.xlu1 %v4163_v3, %s4540_s30  ;;  %v4128_v3 = vld [vmem:[%s4586_s23 + $0xb0] sm:$0x1]  ;;  %v2793_v16 = vor.u32 %v2792_v5, %v2789_v4 }
 0x23a   : > { %2383 = vrot.lane.b32.xlu0 %v4158_v6, %s4540_s30  ;;  %2381 = vrot.lane.b32.xlu2 %v4157_v10, %s4540_s30  ;;  %v2159_v12 = vrot.slane %v4128_v3, 5 }
 0x23b   : > { %v2386_v15 = vpop.permute.xlu1 %2385  ;;  %v2794_v23 = vrot.slane %v2793_v16, 4 }
 0x23c   : > { %2474 = vst.msk [vmem:[#allocation2 + $0x20] sm:$0xf] %vm2465_vm13, %v2386_v15  ;;  %v2376_v20 = vpop.permute.xlu0 %2375  ;;  %v4386_v21 = vld [vmem:[#allocation2] sm:$0xff]  ;;  %v3274_v24 = vpop.permute.xlu2 %3273  ;;  %v2160_v49 = vsel %vm4772_vm6, %v2158_v11, %v2159_v12  ;;  %v4204_v11 = vld [vmem:[%s4586_s23 + $0x6c] sm:$0xf] }
 0x23d   : > { %2469 = vst.msk [vmem:[#allocation2 + $0xc] sm:$0xf] %vm2465_vm13, %v2376_v20  ;;  %4367 = vmatmul.msk.bf16.vlgmr.msra.gmra.mxu0 %vm3532_vm0, %v4386_v21  ;;  %v4171_v20 = vld [vmem:[%s4586_s23 + $0x90] sm:$0xf]  ;;  %v2859_v21 = vshrl.u32 %v4222_v13, 16 }
 0x23e   : > { %3035 = vst.msk [vmem:[#allocation2 + $0x20] sm:$0xf] %vm3026_vm14, %v2947_v0  ;;  %v3200_v0 = vsel %vm4772_vm6, %v4285_v57, %v3199_v45 }
 0x23f   : > { %v2861_v31 = vrot.slane %v2859_v21, 4  ;;  %v4206_v21 = vld [vmem:[%s4586_s23 + $0x74] sm:$0x1] }
 0x241   : > { %2944 = vrot.lane.b32.xlu1 %v2641_v26, %s4539_s29  ;;  %v2870_v26 = vrot.slane %v2868_v18, 5  ;;  %v2865_v41 = vor.u32 %v2864_v32, %v2861_v31  ;;  %v2718_v18 = vshll.u32 %v4204_v11, 16  ;;  %v4165_v31 = vld [vmem:[%s4586_s23 + $0x6c] sm:$0xf] }
 0x242   : > { %2942 = vrot.lane.b32.xlu0 %v2631_v27, %s4539_s29  ;;  %2395 = vrot.lane.b32.xlu2 %v4164_v34, %s4540_s30  ;;  %v2874_v27 = vrot.slane %v2872_v19, 4  ;;  %v4272_v19 = vld [vmem:[%s4586_s23 + $0xbc] sm:$0x1]  ;;  %v4252_v32 = vld [vmem:[%s4586_s23 + $0x6c] sm:$0xe] }
 0x243   : > { %v2937_v35 = vpop.permute.xlu1 %2936 }
 0x244   : > { %3030 = vst.msk [vmem:[#allocation2 + $0xc] sm:$0xf] %vm3026_vm14, %v2937_v35  ;;  %v2935_v40 = vpop.permute.xlu0 %2934  ;;  %v2402_v42 = vpop.permute.xlu2 %2401  ;;  %v4215_v35 = vld [vmem:[%s4586_s23 + $0x98] sm:$0x1]  ;;  %v2875_v38 = vor.u32 %v2874_v27, %v2870_v26  ;;  %v2720_v27 = vrot.slane %v2718_v18, 5 }
 0x245   : > { %3029 = vst.msk [vmem:[#allocation2 + $0x8] sm:$0xf] %vm3026_vm14, %v2935_v40  ;;  %v4178_v40 = vld [vmem:[%s4586_s23 + $0xb8] sm:$0xf]  ;;  %v2806_v45 = vshll.u32 %v4215_v35, 16 }
 0x246   : > { %3367 = vst.msk [vmem:[#allocation2 + $0xc] sm:$0xf] %vm3363_vm15, %v3274_v24  ;;  %v2798_v24 = vrot.slane %v2796_v17, 5  ;;  %v2715_v17 = vshrl.u32 %v4204_v11, 16  ;;  %v4226_v18 = vld [vmem:[%s4586_s23 + $0xc4] sm:$0xf] }
 0x247   : > { %2482 = vst.msk [vmem:[#allocation2 + $0x40] sm:$0xf] %vm2465_vm13, %v2402_v42  ;;  %v4177_v42 = vld [vmem:[%s4586_s23 + $0xb4] sm:$0xf] }
 0x248   : > { %v2799_v30 = vsel %vm4597_vm2, %v2794_v23, %v2798_v24 }
 0x249   : > { %3279 = vrot.lane.b32.xlu1 %v3179_v44, %s4541_s6  ;;  %v2803_v44 = vor.u32 %v2802_v33, %v2798_v24  ;;  %v3251_v24 = vrot.slane %v4272_v19, 5  ;;  %v2734_v33 = vshll.u32 %v4206_v21, 16  ;;  %v4179_v21 = vld [vmem:[%s4586_s23 + $0xc0] sm:$0xf] }
 0x24a   : > { %2956 = vrot.lane.b32.xlu0 %v2713_v46, %s4539_s29  ;;  %2954 = vrot.lane.b32.xlu2 %v2703_v50, %s4539_s29  ;;  %v2876_v46 = vrot.slane %v2875_v38, 4  ;;  %v2866_v50 = vrot.slane %v2865_v41, 4 }
 0x24b   : > { %v3272_v56 = vpop.permute.xlu1 %3271  ;;  %v2804_v54 = vrot.slane %v2803_v44, 4  ;;  %v2736_v41 = vrot.slane %v2734_v33, 5 }
 0x24c   : > { %3366 = vst.msk [vmem:[#allocation2 + $0x8] sm:$0xf] %vm3363_vm15, %v3272_v56  ;;  %v2949_v59 = vpop.permute.xlu0 %2948  ;;  %v2965_v62 = vpop.permute.xlu2 %2964  ;;  %v2808_v56 = vrot.slane %v2806_v45, 5  ;;  %v2881_v58 = vsel %vm4597_vm2, %v2876_v46, %v2880_v47 }
 0x24d   : > { %3036 = vst.msk [vmem:[#allocation2 + $0x24] sm:$0xf] %vm3026_vm14, %v2949_v59  ;;  %v2871_v59 = vsel %vm4597_vm2, %v2866_v50, %v2870_v26  ;;  %v2717_v26 = vrot.slane %v2715_v17, 4 }
 0x24e   : > { %v2809_v52 = vsel %vm4597_vm2, %v2804_v54, %v2808_v56  ;;  %v4254_v56 = vld [vmem:[%s4586_s23 + $0x74] sm:$0x1] }
 0x24f   : > { %v2721_v35 = vor.u32 %v2720_v27, %v2717_v26  ;;  %v3209_v55 = vrot.slane %v4254_v56, 5  ;;  %v2896_v26 = vshrl.u32 %v4226_v18, 16  ;;  %v4173_v27 = vld [vmem:[%s4586_s23 + $0x9c] sm:$0xf] }
 0x251   : > { %3293 = vrot.lane.b32.xlu1 %v3203_v63, %s4541_s6  ;;  %v4263_v63 = vld [vmem:[%s4586_s23 + $0x98] sm:$0x1]  ;;  %v2722_v45 = vrot.slane %v2721_v35, 4 }
 0x252   : > { %3291 = vrot.lane.b32.xlu0 %v3200_v0, %s4541_s6  ;;  %3281 = vrot.lane.b32.xlu2 %v3182_v2, %s4541_s6  ;;  %v4292_v0 = vrot.slane %v4270_v60, 9  ;;  %v3248_v2 = vrot.slane %v4271_v61, 5  ;;  %v3230_v5 = vrot.slane %v4263_v63, 5 }
 0x253   : > { %v3286_v6 = vpop.permute.xlu1 %3285  ;;  %v4387_v7 = vld [vmem:[#allocation2 + $0x8] sm:$0xff] }
 0x254   : > { %3373 = vst.msk [vmem:[#allocation2 + $0x24] sm:$0xf] %vm3363_vm15, %v3286_v6  ;;  %v3284_v10 = vpop.permute.xlu0 %3283  ;;  %4368 = vmatmul.msk.bf16.gmra.mxu0 %vm3532_vm0, %v4387_v7  ;;  %v2378_v15 = vpop.permute.xlu2 %2377  ;;  %v3249_v12 = vsel %vm4772_vm6, %v4292_v0, %v3248_v2  ;;  %v3250_v23 = vrot.slane %v3248_v2, 4  ;;  %v4216_v0 = vld [vmem:[%s4586_s23 + $0x9c] sm:$0xf] }
 0x255   : > { %3372 = vst.msk [vmem:[#allocation2 + $0x20] sm:$0xf] %vm3363_vm15, %v3284_v10 }
 0x256   : > { %2470 = vst.msk [vmem:[#allocation2 + $0x10] sm:$0xf] %vm2465_vm13, %v2378_v15  ;;  %v2728_v15 = vshrl.u32 %v4205_v9, 16 }
 0x258   : > { %v2730_v43 = vrot.slane %v2728_v15, 4 }
 0x259   : > { %2411 = vrot.lane.b32.xlu1 %v4172_v14, %s4540_s30  ;;  %v2724_v14 = vshll.u32 %v4205_v9, 16 }
 0x25a   : > { %2409 = vrot.lane.b32.xlu0 %v4171_v20, %s4540_s30  ;;  %2229 = vrot.lane.b32.xlu2 %v2160_v49, %s4538_s28 }
 0x25b   : > { %v2963_v28 = vpop.permute.xlu1 %2962  ;;  %v2726_v22 = vrot.slane %v2724_v14, 5 }
 0x25c   : > { %3043 = vst.msk [vmem:[#allocation2 + $0x40] sm:$0xf] %vm3026_vm14, %v2963_v28  ;;  %v2404_v34 = vpop.permute.xlu0 %2403  ;;  %v4390_v36 = vld [vmem:[#allocation2 + $0x20] sm:$0xff]  ;;  %v2392_v37 = vpop.permute.xlu2 %2391  ;;  %v4166_v28 = vld [vmem:[%s4586_s23 + $0x70] sm:$0xf] }
 0x25d   : > { %2483 = vst.msk [vmem:[#allocation2 + $0x44] sm:$0xf] %vm2465_vm13, %v2404_v34  ;;  %4371 = vmatmul.msk.bf16.vlgmr.msra.gmra.mxu1 %vm3532_vm0, %v4390_v36  ;;  %v4253_v34 = vld [vmem:[%s4586_s23 + $0x70] sm:$0xf]  ;;  %v2731_v36 = vor.u32 %v2730_v43, %v2726_v22  ;;  %v2727_v54 = vsel %vm4597_vm2, %v2722_v45, %v2726_v22  ;;  %v4265_v45 = vld [vmem:[%s4586_s23 + $0xa0] sm:$0xf] }
 0x25e   : > { %3044 = vst.msk [vmem:[#allocation2 + $0x44] sm:$0xf] %vm3026_vm14, %v2965_v62  ;;  %v3227_v62 = vrot.slane %v4262_v53, 5  ;;  %v3206_v38 = vrot.slane %v4253_v34, 5  ;;  %v4129_v53 = vld [vmem:[%s4586_s23 + $0xb4] sm:$0xe] }
 0x25f   : > { %2477 = vst.msk [vmem:[#allocation2 + $0x2c] sm:$0xf] %vm2465_vm13, %v2392_v37  ;;  %v3252_v37 = vsel %vm4772_vm6, %v3250_v23, %v3251_v24  ;;  %v4149_v61 = vrot.slane %v4129_v53, 9  ;;  %v2892_v24 = vshll.u32 %v4226_v18, 16  ;;  %v3234_v53 = vrot.slane %v4265_v45, 5 }
 0x260   : > { %v3229_v4 = vrot.slane %v3227_v62, 4  ;;  %v3228_v16 = vsel %vm4772_vm6, %v4289_v8, %v3227_v62  ;;  %v4217_v62 = vld [vmem:[%s4586_s23 + $0xa0] sm:$0xf]  ;;  %v2814_v8 = vshll.u32 %v4216_v0, 16 }
 0x261   : > { %2970 = vrot.lane.b32.xlu1 %v2799_v30, %s4539_s29  ;;  %v4286_v30 = vrot.slane %v4252_v32, 9  ;;  %v2894_v33 = vrot.slane %v2892_v24, 5 }
 0x262   : > { %2423 = vrot.lane.b32.xlu0 %v4178_v40, %s4540_s30  ;;  %2421 = vrot.lane.b32.xlu2 %v4177_v42, %s4540_s30  ;;  %v3231_v13 = vsel %vm4772_vm6, %v3229_v4, %v3230_v5  ;;  %v2732_v40 = vrot.slane %v2731_v36, 4  ;;  %v4130_v42 = vld [vmem:[%s4586_s23 + $0xb8] sm:$0xf]  ;;  %v2820_v4 = vshll.u32 %v4217_v62, 16  ;;  %v2824_v5 = vshrl.u32 %v4217_v62, 16 }
 0x263   : > { %v3302_v48 = vpop.permute.xlu1 %3301  ;;  %v3207_v47 = vsel %vm4772_vm6, %v4286_v30, %v3206_v38  ;;  %v2816_v15 = vrot.slane %v2814_v8, 5  ;;  %v4227_v30 = vld [vmem:[%s4586_s23 + $0xc8] sm:$0x1] }
 0x264   : > { %3381 = vst.msk [vmem:[#allocation2 + $0x44] sm:$0xf] %vm3363_vm15, %v3302_v48  ;;  %v3300_v51 = vpop.permute.xlu0 %3299  ;;  %v2951_v57 = vpop.permute.xlu2 %2950  ;;  %v2163_v48 = vrot.slane %v4130_v42, 5  ;;  %v2737_v50 = vsel %vm4597_vm2, %v2732_v40, %v2736_v41  ;;  %v2826_v11 = vrot.slane %v2824_v5, 4  ;;  %v4264_v42 = vld [vmem:[%s4586_s23 + $0x9c] sm:$0xe] }
 0x265   : > { %3380 = vst.msk [vmem:[#allocation2 + $0x40] sm:$0xf] %vm3363_vm15, %v3300_v51  ;;  %v4131_v51 = vld [vmem:[%s4586_s23 + $0xbc] sm:$0x1] }
 0x269   : > { %2984 = vrot.lane.b32.xlu1 %v2881_v58, %s4539_s29  ;;  %v2166_v58 = vrot.slane %v4131_v51, 5  ;;  %v4290_v51 = vrot.slane %v4264_v42, 9 }
 0x26a   : > { %2982 = vrot.lane.b32.xlu0 %v2871_v59, %s4539_s29  ;;  %2972 = vrot.lane.b32.xlu2 %v2809_v52, %s4539_s29  ;;  %v3208_v52 = vrot.slane %v3206_v38, 4 }
 0x26b   : > { %v2390_v3 = vpop.permute.xlu1 %2389  ;;  %v3235_v62 = vsel %vm4772_vm6, %v4290_v51, %v3234_v53 }
 0x26c   : > { %2476 = vst.msk [vmem:[#allocation2 + $0x28] sm:$0xf] %vm2465_vm13, %v2390_v3  ;;  %v2380_v6 = vpop.permute.xlu0 %2379  ;;  %v4394_v7 = vld [vmem:[#allocation2 + $0x40] sm:$0xff]  ;;  %v3278_v10 = vpop.permute.xlu2 %3277  ;;  %v3210_v9 = vsel %vm4772_vm6, %v3208_v52, %v3209_v55  ;;  %v4275_v55 = vld [vmem:[%s4586_s23 + $0xc8] sm:$0x1] }
 0x26d   : > { %2471 = vst.msk [vmem:[#allocation2 + $0x14] sm:$0xf] %vm2465_vm13, %v2380_v6  ;;  %4375 = vmatmul.msk.bf16.vlgmr.msra.gmra.mxu2 %vm3532_vm0, %v4394_v7  ;;  %v2164_v6 = vsel %vm4772_vm6, %v4149_v61, %v2163_v48  ;;  %v2811_v7 = vshrl.u32 %v4216_v0, 16  ;;  %v4273_v0 = vld [vmem:[%s4586_s23 + $0xc0] sm:$0xe]  ;;  %v3258_v5 = vrot.slane %v4275_v55, 5 }
 0x26e   : > { %3037 = vst.msk [vmem:[#allocation2 + $0x28] sm:$0xf] %vm3026_vm14, %v2951_v57  ;;  %v2165_v57 = vrot.slane %v2163_v48, 4  ;;  %v4180_v48 = vld [vmem:[%s4586_s23 + $0xc4] sm:$0xf]  ;;  %v4293_v8 = vrot.slane %v4273_v0, 9 }
 0x26f   : > { %v2813_v14 = vrot.slane %v2811_v7, 4 }
 0x270   : > { %v2167_v3 = vsel %vm4772_vm6, %v2165_v57, %v2166_v58  ;;  %v4274_v58 = vld [vmem:[%s4586_s23 + $0xc4] sm:$0xf] }
 0x271   : > { %3319 = vrot.lane.b32.xlu1 %v3249_v12, %s4541_s6  ;;  %v2817_v23 = vor.u32 %v2816_v15, %v2813_v14  ;;  %v4229_v15 = vld [vmem:[%s4586_s23 + $0xd0] sm:$0xf] }
 0x272   : > { %3309 = vrot.lane.b32.xlu0 %v3231_v13, %s4541_s6  ;;  %3307 = vrot.lane.b32.xlu2 %v3228_v16, %s4541_s6  ;;  %v4218_v13 = vld [vmem:[%s4586_s23 + $0xa4] sm:$0x1] }
 0x273   : > { %v2941_v20 = vpop.permute.xlu1 %2940  ;;  %v2830_v43 = vshll.u32 %v4218_v13, 16  ;;  %v2818_v36 = vrot.slane %v2817_v23, 4  ;;  %v4228_v13 = vld [vmem:[%s4586_s23 + $0xcc] sm:$0xf]  ;;  %v4132_v23 = vld [vmem:[%s4586_s23 + $0xc0] sm:$0xe] }
 0x274   : > { %3032 = vst.msk [vmem:[#allocation2 + $0x14] sm:$0xf] %vm3026_vm14, %v2941_v20  ;;  %v2939_v49 = vpop.permute.xlu0 %2938  ;;  %v2406_v29 = vpop.permute.xlu2 %2405  ;;  %v4225_v20 = vld [vmem:[%s4586_s23 + $0xc0] sm:$0xf] }
 0x275   : > { %3031 = vst.msk [vmem:[#allocation2 + $0x10] sm:$0xf] %vm3026_vm14, %v2939_v49  ;;  %v4174_v49 = vld [vmem:[%s4586_s23 + $0xa0] sm:$0xf]  ;;  %v2832_v32 = vrot.slane %v2830_v43, 5 }
 0x276   : > { %3369 = vst.msk [vmem:[#allocation2 + $0x14] sm:$0xf] %vm3363_vm15, %v3278_v10  ;;  %v2822_v10 = vrot.slane %v2820_v4, 5 }
 0x277   : > { %2484 = vst.msk [vmem:[#allocation2 + $0x48] sm:$0xf] %vm2465_vm13, %v2406_v29  ;;  %v2886_v29 = vshll.u32 %v4225_v20, 16 }
 0x278   : > { %v2827_v22 = vor.u32 %v2826_v11, %v2822_v10  ;;  %v3236_v11 = vrot.slane %v3234_v53, 4 }
 0x279   : > { %2399 = vrot.lane.b32.xlu1 %v4166_v28, %s4540_s30  ;;  %v2883_v28 = vshrl.u32 %v4225_v20, 16  ;;  %v2907_v20 = vshrl.u32 %v4228_v13, 16 }
 0x27a   : > { %2397 = vrot.lane.b32.xlu0 %v4165_v31, %s4540_s30  ;;  %3321 = vrot.lane.b32.xlu2 %v3252_v37, %s4541_s6  ;;  %v2828_v31 = vrot.slane %v2827_v22, 4  ;;  %v2898_v37 = vrot.slane %v2896_v26, 4  ;;  %v4134_v22 = vld [vmem:[%s4586_s23 + $0xc8] sm:$0x1] }
 0x27b   : > { %v3276_v39 = vpop.permute.xlu1 %3275  ;;  %v2885_v38 = vrot.slane %v2883_v28, 4  ;;  %v2173_v28 = vrot.slane %v4134_v22, 5 }
 0x27c   : > { %3368 = vst.msk [vmem:[#allocation2 + $0x10] sm:$0xf] %vm3363_vm15, %v3276_v39  ;;  %v2953_v44 = vpop.permute.xlu0 %2952  ;;  %v2420_v46 = vpop.permute.xlu2 %2419  ;;  %v2888_v39 = vrot.slane %v2886_v29, 5  ;;  %v2833_v41 = vsel %vm4597_vm2, %v2828_v31, %v2832_v32  ;;  %v2909_v29 = vrot.slane %v2907_v20, 4  ;;  %v4230_v32 = vld [vmem:[%s4586_s23 + $0xd4] sm:$0x1] }
 0x27d   : > { %3038 = vst.msk [vmem:[#allocation2 + $0x2c] sm:$0xf] %vm3026_vm14, %v2953_v44  ;;  %v2823_v44 = vsel %vm4597_vm2, %v2818_v36, %v2822_v10 }
 0x27e   : > { %2491 = vst.msk [vmem:[#allocation2 + $0x64] sm:$0xf] %vm2465_vm13, %v2420_v46  ;;  %v2899_v46 = vor.u32 %v2898_v37, %v2894_v33  ;;  %v4150_v37 = vrot.slane %v4132_v23, 9 }
 0x280   : > { %v2900_v56 = vrot.slane %v2899_v46, 4 }
 0x281   : > { %3295 = vrot.lane.b32.xlu1 %v3207_v47, %s4541_s6  ;;  %v2902_v47 = vshll.u32 %v4227_v30, 16  ;;  %v4181_v30 = vld [vmem:[%s4586_s23 + $0xcc] sm:$0xf] }
 0x282   : > { %2960 = vrot.lane.b32.xlu0 %v2737_v50, %s4539_s29  ;;  %2958 = vrot.lane.b32.xlu2 %v2727_v54, %s4539_s29  ;;  %v2889_v50 = vor.u32 %v2888_v39, %v2885_v38  ;;  %v2926_v39 = vshll.u32 %v4230_v32, 16 }
 0x283   : > { %v3290_v59 = vpop.permute.xlu1 %3289  ;;  %v4388_v60 = vld [vmem:[#allocation2 + $0x10] sm:$0xff]  ;;  %v2904_v57 = vrot.slane %v2902_v47, 5 }
 0x284   : > { %3375 = vst.msk [vmem:[#allocation2 + $0x2c] sm:$0xf] %vm3363_vm15, %v3290_v59  ;;  %v3288_v63 = vpop.permute.xlu0 %3287  ;;  %4369 = vmatmul.msk.bf16.gmra.mxu0 %vm3532_vm0, %v4388_v60  ;;  %v2979_v2 = vpop.permute.xlu2 %2978  ;;  %v2890_v60 = vrot.slane %v2889_v50, 4  ;;  %v2928_v45 = vrot.slane %v2926_v39, 5  ;;  %v4277_v50 = vld [vmem:[%s4586_s23 + $0xd0] sm:$0xf] }
 0x285   : > { %3374 = vst.msk [vmem:[#allocation2 + $0x28] sm:$0xf] %vm3363_vm15, %v3288_v63  ;;  %v3255_v63 = vrot.slane %v4274_v58, 5  ;;  %v2905_v52 = vsel %vm4597_vm2, %v2900_v56, %v2904_v57  ;;  %v3262_v56 = vrot.slane %v4277_v50, 5  ;;  %v4278_v57 = vld [vmem:[%s4586_s23 + $0xd4] sm:$0x1] }
 0x286   : > { %v4182_v58 = vld [vmem:[%s4586_s23 + $0xd0] sm:$0xf] }
 0x287   : > { %v3257_v4 = vrot.slane %v3255_v63, 4  ;;  %v3256_v18 = vsel %vm4772_vm6, %v4293_v8, %v3255_v63  ;;  %v3264_v25 = vrot.slane %v3262_v56, 4  ;;  %v3265_v63 = vrot.slane %v4278_v57, 5 }
 0x289   : > { %2233 = vrot.lane.b32.xlu1 %v2167_v3, %s4538_s28  ;;  %v4266_v3 = vld [vmem:[%s4586_s23 + $0xa4] sm:$0x1] }
 0x28a   : > { %2231 = vrot.lane.b32.xlu0 %v2164_v6, %s4538_s28  ;;  %3297 = vrot.lane.b32.xlu2 %v3210_v9, %s4541_s6  ;;  %v4133_v9 = vld [vmem:[%s4586_s23 + $0xc4] sm:$0xf] }
 0x28b   : > { %v2418_v12 = vpop.permute.xlu1 %2417 }
 0x28c   : > { %2490 = vst.msk [vmem:[#allocation2 + $0x60] sm:$0xf] %vm2465_vm13, %v2418_v12  ;;  %v2408_v16 = vpop.permute.xlu0 %2407  ;;  %v4391_v17 = vld [vmem:[#allocation2 + $0x28] sm:$0xff]  ;;  %v3306_v19 = vpop.permute.xlu2 %3305  ;;  %v3237_v12 = vrot.slane %v4266_v3, 5  ;;  %v3266_v3 = vsel %vm4772_vm6, %v3264_v25, %v3265_v63 }
 0x28d   : > { %2485 = vst.msk [vmem:[#allocation2 + $0x4c] sm:$0xf] %vm2465_vm13, %v2408_v16  ;;  %4372 = vmatmul.msk.bf16.gmra.mxu1 %vm3532_vm0, %v4391_v17  ;;  %v3259_v16 = vsel %vm4772_vm6, %v3257_v4, %v3258_v5  ;;  %v2920_v17 = vshrl.u32 %v4229_v15, 16 }
 0x28e   : > { %3051 = vst.msk [vmem:[#allocation2 + $0x60] sm:$0xf] %vm3026_vm14, %v2979_v2  ;;  %v2895_v2 = vsel %vm4597_vm2, %v2890_v60, %v2894_v33  ;;  %v3238_v43 = vsel %vm4772_vm6, %v3236_v11, %v3237_v12  ;;  %v5954_v60 = vld [vmem:[%s6142_s2] ss:$0 sm:$0xff] }
 0x28f   : > { %v2922_v24 = vrot.slane %v2920_v17, 4 }
 0x291   : > { %2425 = vrot.lane.b32.xlu1 %v4179_v21, %s4540_s30  ;;  %v2910_v21 = vshll.u32 %v4228_v13, 16 }
 0x292   : > { %2415 = vrot.lane.b32.xlu0 %v4174_v49, %s4540_s30  ;;  %2413 = vrot.lane.b32.xlu2 %v4173_v27, %s4540_s30  ;;  %v2916_v49 = vshll.u32 %v4229_v15, 16 }
 0x293   : > { %v2969_v34 = vpop.permute.xlu1 %2968  ;;  %v2912_v31 = vrot.slane %v2910_v21, 5 }
 0x294   : > { %3046 = vst.msk [vmem:[#allocation2 + $0x4c] sm:$0xf] %vm3026_vm14, %v2969_v34  ;;  %v2967_v35 = vpop.permute.xlu0 %2966  ;;  %v2382_v40 = vpop.permute.xlu2 %2381  ;;  %v2918_v33 = vrot.slane %v2916_v49, 5 }
 0x295   : > { %3045 = vst.msk [vmem:[#allocation2 + $0x48] sm:$0xf] %vm3026_vm14, %v2967_v35 }
 0x296   : > { %3383 = vst.msk [vmem:[#allocation2 + $0x4c] sm:$0xf] %vm3363_vm15, %v3306_v19  ;;  %v2170_v19 = vrot.slane %v4133_v9, 5  ;;  %v2923_v38 = vor.u32 %v2922_v24, %v2918_v33 }
 0x297   : > { %2472 = vst.msk [vmem:[#allocation2 + $0x18] sm:$0xf] %vm2465_vm13, %v2382_v40 }
 0x298   : > { %v2172_v27 = vrot.slane %v2170_v19, 4  ;;  %v2171_v42 = vsel %vm4772_vm6, %v4150_v37, %v2170_v19 }
 0x299   : > { %2976 = vrot.lane.b32.xlu1 %v2833_v41, %s4539_s29  ;;  %v2913_v41 = vor.u32 %v2912_v31, %v2909_v29 }
 0x29a   : > { %2974 = vrot.lane.b32.xlu0 %v2823_v44, %s4539_s29  ;;  %2427 = vrot.lane.b32.xlu2 %v4180_v48, %s4540_s30  ;;  %v2174_v40 = vsel %vm4772_vm6, %v2172_v27, %v2173_v28  ;;  %v2924_v44 = vrot.slane %v2923_v38, 4 }
 0x29b   : > { %v3304_v54 = vpop.permute.xlu1 %3303  ;;  %v2914_v47 = vrot.slane %v2913_v41, 4 }
 0x29c   : > { %3382 = vst.msk [vmem:[#allocation2 + $0x48] sm:$0xf] %vm3363_vm15, %v3304_v54  ;;  %v2981_v59 = vpop.permute.xlu0 %2980  ;;  %v2396_v61 = vpop.permute.xlu2 %2395  ;;  %v2929_v53 = vsel %vm4597_vm2, %v2924_v44, %v2928_v45 }
 0x29d   : > { %3052 = vst.msk [vmem:[#allocation2 + $0x64] sm:$0xf] %vm3026_vm14, %v2981_v59  ;;  %v2919_v54 = vsel %vm4597_vm2, %v2914_v47, %v2918_v33  ;;  %v4276_v59 = vld [vmem:[%s4586_s23 + $0xcc] sm:$0xe]  ;;  %s238_s23 = scalar_lea.vmem %s6144_s4, %s6151_s19 }
 0x29e   : > { %2479 = vst.msk [vmem:[#allocation2 + $0x34] sm:$0xf] %vm2465_vm13, %v2396_v61  ;;  %v4294_v55 = vrot.slane %v4276_v59, 9 }
 0x2a0   : > { %v3263_v4 = vsel %vm4772_vm6, %v4294_v55, %v3262_v56 }
 0x2a1   : > { %3311 = vrot.lane.b32.xlu1 %v3235_v62, %s4541_s6 }
 0x2a2   : > { %2988 = vrot.lane.b32.xlu0 %v2905_v52, %s4539_s29  ;;  %2986 = vrot.lane.b32.xlu2 %v2895_v2, %s4539_s29 }
 0x2a3   : > { %v3318_v6 = vpop.permute.xlu1 %3317  ;;  %v4395_v7 = vld [vmem:[#allocation2 + $0x48] sm:$0xff] }
 0x2a4   : > { %3389 = vst.msk [vmem:[#allocation2 + $0x64] sm:$0xf] %vm3363_vm15, %v3318_v6  ;;  %v3316_v10 = vpop.permute.xlu0 %3315  ;;  %4376 = vmatmul.msk.bf16.gmra.mxu2 %vm3532_vm0, %v4395_v7  ;;  %v2955_v14 = vpop.permute.xlu2 %2954 }
 0x2a5   : > { %3388 = vst.msk [vmem:[#allocation2 + $0x60] sm:$0xf] %vm3363_vm15, %v3316_v10 }
 0x2a9   : > { %3325 = vrot.lane.b32.xlu1 %v3259_v16, %s4541_s6 }
 0x2aa   : > { %3323 = vrot.lane.b32.xlu0 %v3256_v18, %s4541_s6  ;;  %3313 = vrot.lane.b32.xlu2 %v3238_v43, %s4541_s6 }
 0x2ab   : > { %v2394_v26 = vpop.permute.xlu1 %2393 }
 0x2ac   : > { %2478 = vst.msk [vmem:[#allocation2 + $0x30] sm:$0xf] %vm2465_vm13, %v2394_v26  ;;  %v2384_v34 = vpop.permute.xlu0 %2383  ;;  %v4398_v36 = vld [vmem:[#allocation2 + $0x60] sm:$0xff]  ;;  %v3282_v35 = vpop.permute.xlu2 %3281 }
 0x2ad   : > { %2473 = vst.msk [vmem:[#allocation2 + $0x1c] sm:$0xf] %vm2465_vm13, %v2384_v34  ;;  %4379 = vmatmul.msk.bf16.vlgmr.msra.gmra.mxu3 %vm3532_vm0, %v4398_v36 }
 0x2ae   : > { %3039 = vst.msk [vmem:[#allocation2 + $0x30] sm:$0xf] %vm3026_vm14, %v2955_v14 }
 0x2b1   : > { %2429 = vrot.lane.b32.xlu1 %v4181_v30, %s4540_s30 }
 0x2b2   : > { %2237 = vrot.lane.b32.xlu0 %v2174_v40, %s4538_s28  ;;  %2235 = vrot.lane.b32.xlu2 %v2171_v42, %s4538_s28 }
 0x2b3   : > { %v2945_v46 = vpop.permute.xlu1 %2944 }
 0x2b4   : > { %3034 = vst.msk [vmem:[#allocation2 + $0x1c] sm:$0xf] %vm3026_vm14, %v2945_v46  ;;  %v2943_v48 = vpop.permute.xlu0 %2942  ;;  %v2230_v51 = vpop.permute.xlu2 %2229 }
 0x2b5   : > { %3033 = vst.msk [vmem:[#allocation2 + $0x18] sm:$0xf] %vm3026_vm14, %v2943_v48 }
 0x2b6   : > { %3371 = vst.msk [vmem:[#allocation2 + $0x1c] sm:$0xf] %vm3363_vm15, %v3282_v35 }
 0x2b7   : > { %2299 = vst.msk [vmem:[#allocation2 + $0x6c] sm:$0xf] %vm2271_vm11, %v2230_v51 }
 0x2b9   : > { %2992 = vrot.lane.b32.xlu1 %v2929_v53, %s4539_s29 }
 0x2ba   : > { %2990 = vrot.lane.b32.xlu0 %v2919_v54, %s4539_s29  ;;  %v3594_v62 = vpop.f32.mrf.mxu0  ;;  %2431 = vrot.lane.b32.xlu2 %v4182_v58, %s4540_s30 }
 0x2bb   : > { %v3280_v61 = vpop.permute.xlu1 %3279  ;;  %v3595_v2 = vadd.f32 %v5954_v60, %v3594_v62 }
 0x2bc   : > { %3370 = vst.msk [vmem:[#allocation2 + $0x18] sm:$0xf] %vm3363_vm15, %v3280_v61  ;;  %v2957_v52 = vpop.permute.xlu0 %2956  ;;  %v2422_v0 = vpop.permute.xlu2 %2421 }
 0x2bd   : > { %3040 = vst.msk [vmem:[#allocation2 + $0x34] sm:$0xf] %vm3026_vm14, %v2957_v52  ;;  %v3674_v5 = vpack.c.bf16 %v3595_v2, %v3595_v2 }
 0x2be   : > { %2492 = vst.msk [vmem:[#allocation2 + $0x68] sm:$0xf] %vm2465_vm13, %v2422_v0 }
 0x2bf   : > { %v3738_v11 = vunpack.c.l.bf16 %v3674_v5 }
 0x2c1   : > { %v3808_v15 = vmul.f32 %v3738_v11, %v3738_v11 }
 0x2c2   : > { %3329 = vrot.lane.b32.xlu0 %v3266_v3, %s4541_s6  ;;  %v3596_v7 = vpop.f32.mrf.mxu0  ;;  %3327 = vrot.lane.b32.xlu2 %v3263_v4, %s4541_s6 }
 0x2c3   : > { %v3294_v6 = vpop.permute.xlu1 %3293  ;;  %v4389_v8 = vld [vmem:[#allocation2 + $0x18] sm:$0xff]  ;;  %v3597_v10 = vadd.f32 %v5954_v60, %v3596_v7 }
 0x2c4   : > { %3377 = vst.msk [vmem:[#allocation2 + $0x34] sm:$0xf] %vm3363_vm15, %v3294_v6  ;;  %v3292_v9 = vpop.permute.xlu0 %3291  ;;  %4370 = vmatmul.msk.bf16.gmra.mxu0 %vm3532_vm0, %v4389_v8  ;;  %v2973_v1 = vpop.permute.xlu2 %2972 }
 0x2c5   : > { %3376 = vst.msk [vmem:[#allocation2 + $0x30] sm:$0xf] %vm3363_vm15, %v3292_v9  ;;  %v3675_v12 = vpack.c.bf16 %v3597_v10, %v3597_v10  ;;  %v4407_v13 = vpack.c.bf16 %v3597_v10, %v3595_v2 }
 0x2c7   : > { %4408 = vst [vmem:[%s5974_s20] sm:$0xff] %v4407_v13   ;;  %v3739_v14 = vunpack.c.l.bf16 %v3675_v12 }
 0x2c9   : > { %v3770_v16 = vadd.f32 %v3739_v14, %v3738_v11  ;;  %v3809_v17 = vmul.f32 %v3739_v14, %v3739_v14 }
 0x2cb   : > { %v2412_v18 = vpop.permute.xlu1 %2411  ;;  %v3840_v19 = vadd.f32 %v3809_v17, %v3808_v15 }
 0x2cc   : > { %2487 = vst.msk [vmem:[#allocation2 + $0x54] sm:$0xf] %vm2465_vm13, %v2412_v18  ;;  %v2410_v20 = vpop.permute.xlu0 %2409  ;;  %v4392_v21 = vld [vmem:[#allocation2 + $0x30] sm:$0xff]  ;;  %v3308_v22 = vpop.permute.xlu2 %3307 }
 0x2cd   : > { %2486 = vst.msk [vmem:[#allocation2 + $0x50] sm:$0xf] %vm2465_vm13, %v2410_v20  ;;  %4373 = vmatmul.msk.bf16.gmra.mxu1 %vm3532_vm0, %v4392_v21 }
 0x2ce   : > { %3048 = vst.msk [vmem:[#allocation2 + $0x54] sm:$0xf] %vm3026_vm14, %v2973_v1 }
 0x2d1   : > { %v3599_v43 = vpop.f32.mrf.mxu0 }
 0x2d2   : > { %v3600_v23 = vadd.f32 %v5954_v60, %v3599_v43 }
 0x2d3   : > { %v2971_v49 = vpop.permute.xlu1 %2970 }
 0x2d4   : > { %3047 = vst.msk [vmem:[#allocation2 + $0x50] sm:$0xf] %vm3026_vm14, %v2971_v49  ;;  %v2424_v24 = vpop.permute.xlu0 %2423  ;;  %v3676_v26 = vpack.c.bf16 %v3600_v23, %v3600_v23  ;;  %v3322_v27 = vpop.permute.xlu2 %3321 }
 0x2d5   : > { %2493 = vst.msk [vmem:[#allocation2 + $0x6c] sm:$0xf] %vm2465_vm13, %v2424_v24 }
 0x2d6   : > { %3384 = vst.msk [vmem:[#allocation2 + $0x50] sm:$0xf] %vm3363_vm15, %v3308_v22  ;;  %v3740_v28 = vunpack.c.l.bf16 %v3676_v26 }
 0x2d8   : > { %v3771_v29 = vadd.f32 %v3770_v16, %v3740_v28  ;;  %v3810_v31 = vmul.f32 %v3740_v28, %v3740_v28 }
 0x2d9   : > { %v3601_v32 = vpop.f32.mrf.mxu0 }
 0x2da   : > { %v3841_v34 = vadd.f32 %v3840_v19, %v3810_v31  ;;  %v3602_v33 = vadd.f32 %v5954_v60, %v3601_v32  ;;  %v3614_v37 = vpop.f32.mrf.mxu1 }
 0x2db   : > { %v2985_v36 = vpop.permute.xlu1 %2984  ;;  %v5992_v47 = vadd.f32 %v5954_v60, %v3614_v37 }
 0x2dc   : > { %3054 = vst.msk [vmem:[#allocation2 + $0x6c] sm:$0xf] %vm3026_vm14, %v2985_v36  ;;  %v2983_v35 = vpop.permute.xlu0 %2982  ;;  %v3677_v30 = vpack.c.bf16 %v3602_v33, %v3602_v33  ;;  %v4412_v38 = vpack.c.bf16 %v3602_v33, %v3600_v23  ;;  %v2959_v39 = vpop.permute.xlu2 %2958 }
 0x2dd   : > { %3053 = vst.msk [vmem:[#allocation2 + $0x68] sm:$0xf] %vm3026_vm14, %v2983_v35 }
 0x2de   : > { %3391 = vst.msk [vmem:[#allocation2 + $0x6c] sm:$0xf] %vm3363_vm15, %v3322_v27  ;;  %v3741_v40 = vunpack.c.l.bf16 %v3677_v30 }
 0x2df   : > { %4484 = vst [vmem:[%s5974_s20 + $0x8] sm:$0xff] %v4412_v38  }
 0x2e0   : > { %v3772_v41 = vadd.f32 %v3771_v29, %v3741_v40  ;;  %v3811_v42 = vmul.f32 %v3741_v40, %v3741_v40 }
 0x2e2   : > { %v3842_v44 = vadd.f32 %v3841_v34, %v3811_v42  ;;  %v3616_v46 = vpop.f32.mrf.mxu1 }
 0x2e3   : > { %v3320_v45 = vpop.permute.xlu1 %3319  ;;  %v5996_v50 = vadd.f32 %v5954_v60, %v3616_v46 }
 0x2e4   : > { %3390 = vst.msk [vmem:[#allocation2 + $0x68] sm:$0xf] %vm3363_vm15, %v3320_v45  ;;  %v3310_v48 = vpop.permute.xlu0 %3309  ;;  %v3298_v51 = vpop.permute.xlu2 %3297 }
 0x2e5   : > { %3385 = vst.msk [vmem:[#allocation2 + $0x54] sm:$0xf] %vm3363_vm15, %v3310_v48  ;;  %v4427_v53 = vpack.c.bf16 %v5996_v50, %v5992_v47 }
 0x2e7   : > { %4487 = vst [vmem:[%s5974_s20 + $0x20] sm:$0xff] %v4427_v53  }
 0x2eb   : > { %v2400_v54 = vpop.permute.xlu1 %2399  ;;  %v4399_v56 = vld [vmem:[#allocation2 + $0x68] sm:$0xff] }
 0x2ec   : > { %2481 = vst.msk [vmem:[#allocation2 + $0x3c] sm:$0xf] %vm2465_vm13, %v2400_v54  ;;  %v2398_v57 = vpop.permute.xlu0 %2397  ;;  %v4396_v58 = vld [vmem:[#allocation2 + $0x50] sm:$0xff]  ;;  %4380 = vmatmul.msk.bf16.gmra.mxu3 %vm3532_vm0, %v4399_v56  ;;  %v2414_v59 = vpop.permute.xlu2 %2413 }
 0x2ed   : > { %2480 = vst.msk [vmem:[#allocation2 + $0x38] sm:$0xf] %vm2465_vm13, %v2398_v57  ;;  %4377 = vmatmul.msk.bf16.gmra.mxu2 %vm3532_vm0, %v4396_v58 }
 0x2ee   : > { %3041 = vst.msk [vmem:[#allocation2 + $0x38] sm:$0xf] %vm3026_vm14, %v2959_v39 }
 0x2ef   : > { %2488 = vst.msk [vmem:[#allocation2 + $0x58] sm:$0xf] %vm2465_vm13, %v2414_v59 }
 0x2f0   : > { %v3634_v61 = vpop.f32.mrf.mxu2 }
 0x2f1   : > { %v6012_v55 = vadd.f32 %v5954_v60, %v3634_v61 }
 0x2f3   : > { %v3296_v62 = vpop.permute.xlu1 %3295 }
 0x2f4   : > { %3378 = vst.msk [vmem:[#allocation2 + $0x38] sm:$0xf] %vm3363_vm15, %v3296_v62  ;;  %v2961_v25 = vpop.permute.xlu0 %2960  ;;  %v2428_v63 = vpop.permute.xlu2 %2427 }
 0x2f5   : > { %3042 = vst.msk [vmem:[#allocation2 + $0x3c] sm:$0xf] %vm3026_vm14, %v2961_v25 }
 0x2f6   : > { %3379 = vst.msk [vmem:[#allocation2 + $0x3c] sm:$0xf] %vm3363_vm15, %v3298_v51 }
 0x2f8   : > { %v3636_v52 = vpop.f32.mrf.mxu2 }
 0x2f9   : > { %v6015_v0 = vadd.f32 %v5954_v60, %v3636_v52 }
 0x2fb   : > { %v2234_v2 = vpop.permute.xlu1 %2233  ;;  %v4447_v3 = vpack.c.bf16 %v6015_v0, %v6012_v55 }
 0x2fc   : > { %2301 = vst.msk [vmem:[#allocation2 + $0x74] sm:$0xf] %vm2271_vm11, %v2234_v2  ;;  %v2232_v4 = vpop.permute.xlu0 %2231  ;;  %v2987_v6 = vpop.permute.xlu2 %2986 }
 0x2fd   : > { %2300 = vst.msk [vmem:[#allocation2 + $0x70] sm:$0xf] %vm2271_vm11, %v2232_v4  ;;  %v4393_v5 = vld [vmem:[#allocation2 + $0x38] sm:$0xff]  ;;  %v3682_v4 = vpack.c.bf16 %v5992_v47, %v5992_v47 }
 0x2fe   : > { %4491 = vst [vmem:[%s5974_s20 + $0x40] sm:$0xff] %v4447_v3   ;;  %4374 = vmatmul.msk.bf16.gmra.mxu1 %vm3532_vm0, %v4393_v5 }
 0x2ff   : > { %2495 = vst.msk [vmem:[#allocation2 + $0x74] sm:$0xf] %vm2465_vm13, %v2428_v63 }
 0x301   : > { %v3604_v7 = vpop.f32.mrf.mxu0 }
 0x302   : > { %v3605_v9 = vadd.f32 %v5954_v60, %v3604_v7 }
 0x303   : > { %v2426_v8 = vpop.permute.xlu1 %2425 }
 0x304   : > { %2494 = vst.msk [vmem:[#allocation2 + $0x70] sm:$0xf] %vm2465_vm13, %v2426_v8  ;;  %v2416_v10 = vpop.permute.xlu0 %2415  ;;  %v3678_v1 = vpack.c.bf16 %v3605_v9, %v3605_v9  ;;  %v3314_v11 = vpop.permute.xlu2 %3313 }
 0x305   : > { %2489 = vst.msk [vmem:[#allocation2 + $0x5c] sm:$0xf] %vm2465_vm13, %v2416_v10 }
 0x306   : > { %3055 = vst.msk [vmem:[#allocation2 + $0x70] sm:$0xf] %vm3026_vm14, %v2987_v6  ;;  %v3742_v12 = vunpack.c.l.bf16 %v3678_v1 }
 0x308   : > { %v3773_v13 = vadd.f32 %v3772_v41, %v3742_v12  ;;  %v3812_v14 = vmul.f32 %v3742_v12, %v3742_v12 }
 0x309   : > { %v3606_v15 = vpop.f32.mrf.mxu0 }
 0x30a   : > { %v3843_v16 = vadd.f32 %v3842_v44, %v3812_v14  ;;  %v3607_v18 = vadd.f32 %v5954_v60, %v3606_v15  ;;  %v3619_v19 = vpop.f32.mrf.mxu1 }
 0x30b   : > { %v2977_v17 = vpop.permute.xlu1 %2976  ;;  %v6035_v29 = vadd.f32 %v5954_v60, %v3619_v19 }
 0x30c   : > { %3050 = vst.msk [vmem:[#allocation2 + $0x5c] sm:$0xf] %vm3026_vm14, %v2977_v17  ;;  %v2975_v20 = vpop.permute.xlu0 %2974  ;;  %v3679_v21 = vpack.c.bf16 %v3607_v18, %v3607_v18  ;;  %v4417_v22 = vpack.c.bf16 %v3607_v18, %v3605_v9  ;;  %v2236_v43 = vpop.permute.xlu2 %2235  ;;  %v3683_v9 = vpack.c.bf16 %v5996_v50, %v5996_v50 }
 0x30d   : > { %3049 = vst.msk [vmem:[#allocation2 + $0x58] sm:$0xf] %vm3026_vm14, %v2975_v20  ;;  %v3684_v12 = vpack.c.bf16 %v6035_v29, %v6035_v29 }
 0x30e   : > { %3387 = vst.msk [vmem:[#allocation2 + $0x5c] sm:$0xf] %vm3363_vm15, %v3314_v11  ;;  %v3743_v49 = vunpack.c.l.bf16 %v3679_v21  ;;  %v3746_v11 = vunpack.c.l.bf16 %v3682_v4  ;;  %v3747_v15 = vunpack.c.l.bf16 %v3683_v9 }
 0x30f   : > { %4485 = vst [vmem:[%s5974_s20 + $0x10] sm:$0xff] %v4417_v22   ;;  %v3748_v19 = vunpack.c.l.bf16 %v3684_v12 }
 0x310   : > { %2302 = vst.msk [vmem:[#allocation2 + $0x78] sm:$0xf] %vm2271_vm11, %v2236_v43  ;;  %v3774_v23 = vadd.f32 %v3773_v13, %v3743_v49  ;;  %v3813_v24 = vmul.f32 %v3743_v49, %v3743_v49  ;;  %v3816_v18 = vmul.f32 %v3746_v11, %v3746_v11  ;;  %v3817_v49 = vmul.f32 %v3747_v15, %v3747_v15 }
 0x312   : > { %v3844_v26 = vadd.f32 %v3843_v16, %v3813_v24  ;;  %v3621_v28 = vpop.f32.mrf.mxu1 }
 0x313   : > { %v3312_v27 = vpop.permute.xlu1 %3311  ;;  %v6039_v32 = vadd.f32 %v5954_v60, %v3621_v28 }
 0x314   : > { %3386 = vst.msk [vmem:[#allocation2 + $0x58] sm:$0xf] %vm3363_vm15, %v3312_v27  ;;  %v2989_v31 = vpop.permute.xlu0 %2988  ;;  %v2432_v35 = vpop.permute.xlu2 %2431 }
 0x315   : > { %3056 = vst.msk [vmem:[#allocation2 + $0x74] sm:$0xf] %vm3026_vm14, %v2989_v31  ;;  %v4432_v34 = vpack.c.bf16 %v6039_v32, %v6035_v29  ;;  %v3685_v47 = vpack.c.bf16 %v6039_v32, %v6039_v32  ;;  %v3818_v29 = vmul.f32 %v3748_v19, %v3748_v19 }
 0x317   : > { %4488 = vst [vmem:[%s5974_s20 + $0x28] sm:$0xff] %v4432_v34  }
 0x31b   : > { %v3326_v36 = vpop.permute.xlu1 %3325  ;;  %v4397_v33 = vld [vmem:[#allocation2 + $0x58] sm:$0xff] }
 0x31c   : > { %3393 = vst.msk [vmem:[#allocation2 + $0x74] sm:$0xf] %vm3363_vm15, %v3326_v36  ;;  %v3324_v37 = vpop.permute.xlu0 %3323  ;;  %4378 = vmatmul.msk.bf16.gmra.mxu2 %vm3532_vm0, %v4397_v33  ;;  %v3328_v42 = vpop.permute.xlu2 %3327 }
 0x31d   : > { %3392 = vst.msk [vmem:[#allocation2 + $0x70] sm:$0xf] %vm3363_vm15, %v3324_v37 }
 0x323   : > { %v2430_v30 = vpop.permute.xlu1 %2429 }
 0x324   : > { %v2238_v38 = vpop.permute.xlu0 %2237  ;;  %v4400_v39 = vld [vmem:[#allocation2 + $0x70] sm:$0xff]  ;;  %2496 = vst.msk [vmem:[#allocation2 + $0x78] sm:$0xf] %vm2465_vm13, %v2430_v30 }
 0x325   : > { %2303 = vst.msk [vmem:[#allocation2 + $0x7c] sm:$0xf] %vm2271_vm11, %v2238_v38  ;;  %4381 = vmatmul.msk.bf16.gmra.mxu3 %vm3532_vm0, %v4400_v39 }
 0x326   : > { %2497 = vst.msk [vmem:[#allocation2 + $0x7c] sm:$0xf] %vm2465_vm13, %v2432_v35 }
 0x327   : > { %v3639_v40 = vpop.f32.mrf.mxu2 }
 0x328   : > { %v6056_v45 = vadd.f32 %v5954_v60, %v3639_v40 }
 0x32a   : > { %v3692_v12 = vpack.c.bf16 %v6056_v45, %v6056_v45 }
 0x32b   : > { %v2993_v41 = vpop.permute.xlu1 %2992 }
 0x32c   : > { %v2991_v44 = vpop.permute.xlu0 %2990  ;;  %3058 = vst.msk [vmem:[#allocation2 + $0x7c] sm:$0xf] %vm3026_vm14, %v2993_v41 }
 0x32d   : > { %3057 = vst.msk [vmem:[#allocation2 + $0x78] sm:$0xf] %vm3026_vm14, %v2991_v44 }
 0x32e   : > { %3394 = vst.msk [vmem:[#allocation2 + $0x78] sm:$0xf] %vm3363_vm15, %v3328_v42 }
 0x32f   : > { %v3641_v46 = vpop.f32.mrf.mxu2 }
 0x330   : > { %v6059_v48 = vadd.f32 %v5954_v60, %v3641_v46  ;;  %v3654_v51 = vpop.f32.mrf.mxu3 }
 0x331   : > { %v6066_v57 = vadd.f32 %v5954_v60, %v3654_v51 }
 0x332   : > { %v4452_v53 = vpack.c.bf16 %v6059_v48, %v6056_v45 }
 0x334   : > { %v3330_v54 = vpop.permute.xlu0 %3329  ;;  %4492 = vst [vmem:[%s5974_s20 + $0x48] sm:$0xff] %v4452_v53  }
 0x335   : > { %3395 = vst.msk [vmem:[#allocation2 + $0x7c] sm:$0xf] %vm3363_vm15, %v3330_v54 }
 0x338   : > { %v3656_v56 = vpop.f32.mrf.mxu3 }
 0x339   : > { %v6069_v58 = vadd.f32 %v5954_v60, %v3656_v56 }
 0x33b   : > { %v4467_v59 = vpack.c.bf16 %v6069_v58, %v6066_v57 }
 0x33c   : > { %v4401_v61 = vld [vmem:[#allocation2 + $0x78] sm:$0xff] }
 0x33d   : > { %4495 = vst [vmem:[%s5974_s20 + $0x60] sm:$0xff] %v4467_v59   ;;  %4382 = vmatmul.msk.bf16.gmra.mxu3 %vm3532_vm0, %v4401_v61 }
 0x341   : > { %v3609_v62 = vpop.f32.mrf.mxu0 }
 0x342   : > { %v3610_v25 = vadd.f32 %v5954_v60, %v3609_v62 }
 0x344   : > { %v3680_v63 = vpack.c.bf16 %v3610_v25, %v3610_v25 }
 0x346   : > { %v3744_v52 = vunpack.c.l.bf16 %v3680_v63 }
 0x348   : > { %v3775_v2 = vadd.f32 %v3774_v23, %v3744_v52  ;;  %v3814_v3 = vmul.f32 %v3744_v52, %v3744_v52  ;;  %v3749_v23 = vunpack.c.l.bf16 %v3685_v47  ;;  %v3693_v47 = vpack.c.bf16 %v6059_v48, %v6059_v48 }
 0x349   : > { %v3611_v5 = vpop.f32.mrf.mxu0 }
 0x34a   : > { %v3845_v6 = vadd.f32 %v3844_v26, %v3814_v3  ;;  %v3612_v7 = vadd.f32 %v5954_v60, %v3611_v5  ;;  %v3624_v8 = vpop.f32.mrf.mxu1  ;;  %v3819_v36 = vmul.f32 %v3749_v23, %v3749_v23 }
 0x34b   : > { %v3625_v14 = vadd.f32 %v5954_v60, %v3624_v8  ;;  %v3691_v8 = vpack.c.bf16 %v6015_v0, %v6015_v0 }
 0x34c   : > { %v3681_v10 = vpack.c.bf16 %v3612_v7, %v3612_v7  ;;  %v4422_v1 = vpack.c.bf16 %v3612_v7, %v3610_v25 }
 0x34d   : > { %v3686_v21 = vpack.c.bf16 %v3625_v14, %v3625_v14 }
 0x34e   : > { %4486 = vst [vmem:[%s5974_s20 + $0x18] sm:$0xff] %v4422_v1   ;;  %v3745_v13 = vunpack.c.l.bf16 %v3681_v10 }
 0x34f   : > { %v3750_v32 = vunpack.c.l.bf16 %v3686_v21  ;;  %v3757_v21 = vunpack.c.l.bf16 %v3693_v47 }
 0x350   : > { %v3776_v16 = vadd.f32 %v3775_v2, %v3745_v13  ;;  %v3815_v17 = vmul.f32 %v3745_v13, %v3745_v13 }
 0x351   : > { %v3820_v38 = vmul.f32 %v3750_v32, %v3750_v32 }
 0x352   : > { %v3777_v50 = vadd.f32 %v3776_v16, %v3746_v11  ;;  %v3846_v20 = vadd.f32 %v3845_v6, %v3815_v17  ;;  %v3626_v22 = vpop.f32.mrf.mxu1  ;;  %v3690_v6 = vpack.c.bf16 %v6012_v55, %v6012_v55 }
 0x353   : > { %v3627_v43 = vadd.f32 %v5954_v60, %v3626_v22 }
 0x354   : > { %v3778_v24 = vadd.f32 %v3777_v50, %v3747_v15  ;;  %v3847_v26 = vadd.f32 %v3846_v20, %v3816_v18  ;;  %v3754_v11 = vunpack.c.l.bf16 %v3690_v6  ;;  %v3755_v15 = vunpack.c.l.bf16 %v3691_v8 }
 0x355   : > { %v3687_v27 = vpack.c.bf16 %v3627_v43, %v3627_v43  ;;  %v4437_v28 = vpack.c.bf16 %v3627_v43, %v3625_v14 }
 0x356   : > { %v3848_v31 = vadd.f32 %v3847_v26, %v3817_v49  ;;  %v3779_v34 = vadd.f32 %v3778_v24, %v3748_v19  ;;  %v3824_v18 = vmul.f32 %v3754_v11, %v3754_v11  ;;  %v3756_v19 = vunpack.c.l.bf16 %v3692_v12 }
 0x357   : > { %4489 = vst [vmem:[%s5974_s20 + $0x30] sm:$0xff] %v4437_v28   ;;  %v3751_v35 = vunpack.c.l.bf16 %v3687_v27  ;;  %v3825_v20 = vmul.f32 %v3755_v15, %v3755_v15  ;;  %v3827_v24 = vmul.f32 %v3757_v21, %v3757_v21 }
 0x358   : > { %v3780_v33 = vadd.f32 %v3779_v34, %v3749_v23  ;;  %v3849_v37 = vadd.f32 %v3848_v31, %v3818_v29  ;;  %v3826_v49 = vmul.f32 %v3756_v19, %v3756_v19 }
 0x359   : > { %v3821_v42 = vmul.f32 %v3751_v35, %v3751_v35 }
 0x35a   : > { %v3781_v30 = vadd.f32 %v3780_v33, %v3750_v32  ;;  %v3850_v39 = vadd.f32 %v3849_v37, %v3819_v36 }
 0x35c   : > { %v3851_v40 = vadd.f32 %v3850_v39, %v3820_v38  ;;  %v3782_v41 = vadd.f32 %v3781_v30, %v3751_v35  ;;  %v3698_v38 = vpack.c.bf16 %v6066_v57, %v6066_v57 }
 0x35e   : > { %v3852_v44 = vadd.f32 %v3851_v40, %v3821_v42 }
 0x36f   : > { %v3659_v46 = vpop.f32.mrf.mxu3 }
 0x370   : > { %v3644_v51 = vpop.f32.mrf.mxu2  ;;  %v6090_v53 = vadd.f32 %v5954_v60, %v3659_v46 }
 0x371   : > { %v3645_v61 = vadd.f32 %v5954_v60, %v3644_v51 }
 0x373   : > { %v3694_v29 = vpack.c.bf16 %v3645_v61, %v3645_v61 }
 0x375   : > { %v3758_v34 = vunpack.c.l.bf16 %v3694_v29 }
 0x377   : > { %v3661_v54 = vpop.f32.mrf.mxu3  ;;  %v3828_v37 = vmul.f32 %v3758_v34, %v3758_v34 }
 0x378   : > { %v3646_v56 = vpop.f32.mrf.mxu2  ;;  %v6093_v59 = vadd.f32 %v5954_v60, %v3661_v54 }
 0x379   : > { %v3647_v62 = vadd.f32 %v5954_v60, %v3646_v56 }
 0x37a   : > { %v4472_v25 = vpack.c.bf16 %v6093_v59, %v6090_v53 }
 0x37b   : > { %v4457_v63 = vpack.c.bf16 %v3647_v62, %v3645_v61  ;;  %v3629_v52 = vpop.f32.mrf.mxu1  ;;  %v3695_v32 = vpack.c.bf16 %v3647_v62, %v3647_v62  ;;  %v3762_v62 = vunpack.c.l.bf16 %v3698_v38 }
 0x37c   : > { %4496 = vst [vmem:[%s5974_s20 + $0x68] sm:$0xff] %v4472_v25   ;;  %v3630_v2 = vadd.f32 %v5954_v60, %v3629_v52  ;;  %v3700_v25 = vpack.c.bf16 %v6090_v53, %v6090_v53 }
 0x37d   : > { %4493 = vst [vmem:[%s5974_s20 + $0x50] sm:$0xff] %v4457_v63   ;;  %v3759_v33 = vunpack.c.l.bf16 %v3695_v32  ;;  %v3832_v6 = vmul.f32 %v3762_v62, %v3762_v62 }
 0x37e   : > { %v3688_v3 = vpack.c.bf16 %v3630_v2, %v3630_v2 }
 0x37f   : > { %v3829_v46 = vmul.f32 %v3759_v33, %v3759_v33 }
 0x380   : > { %v3752_v4 = vunpack.c.l.bf16 %v3688_v3  ;;  %v3701_v3 = vpack.c.bf16 %v6093_v59, %v6093_v59 }
 0x382   : > { %v3822_v9 = vmul.f32 %v3752_v4, %v3752_v4  ;;  %v3783_v13 = vadd.f32 %v3782_v41, %v3752_v4  ;;  %v3765_v12 = vunpack.c.l.bf16 %v3701_v3 }
 0x383   : > { %v3631_v5 = vpop.f32.mrf.mxu1 }
 0x384   : > { %v3632_v7 = vadd.f32 %v5954_v60, %v3631_v5  ;;  %v3853_v55 = vadd.f32 %v3852_v44, %v3822_v9  ;;  %v3699_v44 = vpack.c.bf16 %v6069_v58, %v6069_v58 }
 0x386   : > { %v3689_v10 = vpack.c.bf16 %v3632_v7, %v3632_v7  ;;  %v4442_v1 = vpack.c.bf16 %v3632_v7, %v3630_v2  ;;  %v3763_v2 = vunpack.c.l.bf16 %v3699_v44  ;;  %v3764_v7 = vunpack.c.l.bf16 %v3700_v25 }
 0x388   : > { %4490 = vst [vmem:[%s5974_s20 + $0x38] sm:$0xff] %v4442_v1   ;;  %v3753_v14 = vunpack.c.l.bf16 %v3689_v10  ;;  %v3834_v47 = vmul.f32 %v3764_v7, %v3764_v7 }
 0x38a   : > { %v3784_v16 = vadd.f32 %v3783_v13, %v3753_v14  ;;  %v3823_v17 = vmul.f32 %v3753_v14, %v3753_v14 }
 0x38c   : > { %v3785_v0 = vadd.f32 %v3784_v16, %v3754_v11  ;;  %v3854_v50 = vadd.f32 %v3853_v55, %v3823_v17  ;;  %v3833_v11 = vmul.f32 %v3763_v2, %v3763_v2  ;;  %v3835_v16 = vmul.f32 %v3765_v12, %v3765_v12 }
 0x38e   : > { %v3786_v22 = vadd.f32 %v3785_v0, %v3755_v15  ;;  %v3855_v43 = vadd.f32 %v3854_v50, %v3824_v18 }
 0x390   : > { %v3787_v45 = vadd.f32 %v3786_v22, %v3756_v19  ;;  %v3856_v23 = vadd.f32 %v3855_v43, %v3825_v20 }
 0x392   : > { %v3857_v26 = vadd.f32 %v3856_v23, %v3826_v49  ;;  %v3788_v27 = vadd.f32 %v3787_v45, %v3757_v21 }
 0x394   : > { %v3858_v28 = vadd.f32 %v3857_v26, %v3827_v24  ;;  %v3789_v30 = vadd.f32 %v3788_v27, %v3758_v34 }
 0x396   : > { %v3859_v40 = vadd.f32 %v3858_v28, %v3828_v37  ;;  %v3790_v51 = vadd.f32 %v3789_v30, %v3759_v33 }
 0x398   : > { %v3860_v52 = vadd.f32 %v3859_v40, %v3829_v46 }
 0x39f   : > { %v3649_v48 = vpop.f32.mrf.mxu2 }
 0x3a0   : > { %v3650_v31 = vadd.f32 %v5954_v60, %v3649_v48 }
 0x3a2   : > { %v3696_v36 = vpack.c.bf16 %v3650_v31, %v3650_v31 }
 0x3a4   : > { %v3760_v35 = vunpack.c.l.bf16 %v3696_v36 }
 0x3a6   : > { %v3830_v54 = vmul.f32 %v3760_v35, %v3760_v35  ;;  %v3791_v63 = vadd.f32 %v3790_v51, %v3760_v35 }
 0x3a7   : > { %v3651_v39 = vpop.f32.mrf.mxu2 }
 0x3a8   : > { %v3652_v41 = vadd.f32 %v5954_v60, %v3651_v39  ;;  %v3664_v42 = vpop.f32.mrf.mxu3  ;;  %v3861_v4 = vadd.f32 %v3860_v52, %v3830_v54 }
 0x3a9   : > { %v3665_v1 = vadd.f32 %v5954_v60, %v3664_v42 }
 0x3aa   : > { %v3697_v56 = vpack.c.bf16 %v3652_v41, %v3652_v41  ;;  %v4462_v61 = vpack.c.bf16 %v3652_v41, %v3650_v31 }
 0x3ab   : > { %v3702_v0 = vpack.c.bf16 %v3665_v1, %v3665_v1 }
 0x3ac   : > { %4494 = vst [vmem:[%s5974_s20 + $0x58] sm:$0xff] %v4462_v61   ;;  %v3761_v57 = vunpack.c.l.bf16 %v3697_v56 }
 0x3ad   : > { %v3766_v22 = vunpack.c.l.bf16 %v3702_v0 }
 0x3ae   : > { %v3792_v5 = vadd.f32 %v3791_v63, %v3761_v57  ;;  %v3831_v58 = vmul.f32 %v3761_v57, %v3761_v57 }
 0x3af   : > { %v3836_v23 = vmul.f32 %v3766_v22, %v3766_v22 }
 0x3b0   : > { %v3793_v8 = vadd.f32 %v3792_v5, %v3762_v62  ;;  %v3862_v9 = vadd.f32 %v3861_v4, %v3831_v58  ;;  %v3666_v10 = vpop.f32.mrf.mxu3 }
 0x3b1   : > { %v3667_v53 = vadd.f32 %v5954_v60, %v3666_v10 }
 0x3b2   : > { %v3794_v13 = vadd.f32 %v3793_v8, %v3763_v2  ;;  %v3863_v14 = vadd.f32 %v3862_v9, %v3832_v6 }
 0x3b3   : > { %v4477_v15 = vpack.c.bf16 %v3667_v53, %v3665_v1  ;;  %v3703_v21 = vpack.c.bf16 %v3667_v53, %v3667_v53 }
 0x3b4   : > { %v3864_v59 = vadd.f32 %v3863_v14, %v3833_v11  ;;  %v3795_v55 = vadd.f32 %v3794_v13, %v3764_v7 }
 0x3b5   : > { %4497 = vst [vmem:[%s5974_s20 + $0x70] sm:$0xff] %v4477_v15   ;;  %v3767_v49 = vunpack.c.l.bf16 %v3703_v21 }
 0x3b6   : > { %v3796_v17 = vadd.f32 %v3795_v55, %v3765_v12  ;;  %v3865_v18 = vadd.f32 %v3864_v59, %v3834_v47 }
 0x3b7   : > { %v3837_v29 = vmul.f32 %v3767_v49, %v3767_v49 }
 0x3b8   : > { %v3866_v19 = vadd.f32 %v3865_v18, %v3835_v16  ;;  %v3797_v45 = vadd.f32 %v3796_v17, %v3766_v22 }
 0x3ba   : > { %v3867_v27 = vadd.f32 %v3866_v19, %v3836_v23  ;;  %v3798_v48 = vadd.f32 %v3797_v45, %v3767_v49 }
 0x3bc   : > { %v3868_v36 = vadd.f32 %v3867_v27, %v3837_v29 }
 0x3c0   : > { %v3669_v50 = vpop.f32.mrf.mxu3 }
 0x3c1   : > { %v3670_v20 = vadd.f32 %v5954_v60, %v3669_v50 }
 0x3c3   : > { %v3704_v43 = vpack.c.bf16 %v3670_v20, %v3670_v20 }
 0x3c5   : > { %v3768_v24 = vunpack.c.l.bf16 %v3704_v43 }
 0x3c7   : > { %v3838_v31 = vmul.f32 %v3768_v24, %v3768_v24  ;;  %v3799_v33 = vadd.f32 %v3798_v48, %v3768_v24 }
 0x3c8   : > { %v3671_v26 = vpop.f32.mrf.mxu3 }
 0x3c9   : > { %v3672_v28 = vadd.f32 %v5954_v60, %v3671_v26  ;;  %v3869_v35 = vadd.f32 %v3868_v36, %v3838_v31 }
 0x3cb   : > { %v3705_v32 = vpack.c.bf16 %v3672_v28, %v3672_v28  ;;  %v4482_v34 = vpack.c.bf16 %v3672_v28, %v3670_v20 }
 0x3cd   : > { %4498 = vst [vmem:[%s5974_s20 + $0x78] sm:$0xff] %v4482_v34   ;;  %v3769_v37 = vunpack.c.l.bf16 %v3705_v32 }
 0x3cf   : > { %v3800_v30 = vadd.f32 %v3799_v33, %v3769_v37  ;;  %v3839_v38 = vmul.f32 %v3769_v37, %v3769_v37 }
 0x3d1   : > { %v3801_v39 = vrot.slane %v3800_v30, 4  ;;  %v3870_v40 = vadd.f32 %v3869_v35, %v3839_v38 }
 0x3d3   : > { %v3802_v41 = vadd.f32 %v3801_v39, %v3800_v30  ;;  %v3871_v42 = vrot.slane %v3870_v40, 4 }
 0x3d5   : > { %v3803_v44 = vrot.slane %v3802_v41, 2  ;;  %v3872_v60 = vadd.f32 %v3871_v42, %v3870_v40 }
 0x3d7   : > { %v3804_v46 = vadd.f32 %v3803_v44, %v3802_v41  ;;  %v3873_v51 = vrot.slane %v3872_v60, 2 }
 0x3d9   : > { %v3805_v54 = vrot.slane %v3804_v46, 1  ;;  %v3874_v56 = vadd.f32 %v3873_v51, %v3872_v60 }
 0x3db   : > { %v3806_v61 = vadd.f32 %v3805_v54, %v3804_v46  ;;  %v3875_v62 = vrot.slane %v3874_v56, 1 }
 0x3dd   : > { %3807 = vst [vmem:[%s238_s23] sm:$0x1] %v3806_v61  ;;  %v3876_v25 = vadd.f32 %v3875_v62, %v3874_v56 }
 0x3df   : > { %3877 = vst [vmem:[%s241_s26] sm:$0x1] %v3876_v25 }
 0x3e0 PF: > { %s16_s18 = sadd.s32 1, %s4532_s18  }
 0x3e1   : > { %p13_p4 = scmp.ge.s32.totalorder %s16_s18, 4  }
 0x3e3   :  { %15 = sbr.rel (!%p13_p4) target bundleno = 1 (0x1), region = 88 }

</bundles_post_ra>
